<compile_context>
chip_gen: v5e
topology: v5e:2x2
jax: 0.10.0
libtpu: 0.0.40
codegen_flags: <defaults>
</compile_context>

<pallas_src>
import jax
import jax.numpy as jnp
from jax.experimental import pallas as pl
from jax.experimental.pallas import tpu as pltpu


_SQRT_HALF = 0.7071067811865476  # 1/sqrt(2) for exact (erf) GELU

# Abramowitz & Stegun 7.1.25 rational approximation of erf, |error| <= 2.5e-5.
_ERF_P = 0.47047
_ERF_A1 = 0.3480242
_ERF_A2 = -0.0958798
_ERF_A3 = 0.7478556

_CONV_CHUNK = 256   # lane chunk fed to the 1x1-conv matmul (full MXU width)
_POOL_CHUNK = 128   # lane sub-chunk compacted per [even|odd] selection matmul


def _transition_kernel(x_ref, scale_ref, shift_ref, w_hi_ref, w_lo_ref, b_ref,
                       sel_ref, o_ref):
    # x_ref:     (1, C_in, TILE_L)   one batch element, one L tile (lane = L)
    # scale_ref: (C_in, 1)           folded BN scale = gamma / sqrt(var + eps)
    # shift_ref: (C_in, 1)           folded BN shift = beta - mean * scale
    # w_hi_ref:  (C_out, C_in) bf16  hi part of the 1x1-conv weight
    # w_lo_ref:  (C_out, C_in) bf16  lo part (w - w_hi) of the 1x1-conv weight
    # b_ref:     (C_out, 1)          conv bias
    # sel_ref:   (128, 128) bf16     0/1 compaction matrix [even | odd]
    # o_ref:     (1, C_out, TILE_L // 2)
    scale = scale_ref[...]
    shift = shift_ref[...]
    w_hi = w_hi_ref[...]
    w_lo = w_lo_ref[...]
    bias = b_ref[...]
    sel = sel_ref[...]

    tile_l = x_ref.shape[-1]
    half = _POOL_CHUNK // 2  # 64 pooled lanes produced per selection matmul

    # Static (trace-time) loop over 256-lane chunks: bounds live ranges /
    # scratch and keeps every conv matmul at full MXU lane width.
    for c in range(tile_l // _CONV_CHUNK):
        x = x_ref[0, :, c * _CONV_CHUNK:(c + 1) * _CONV_CHUNK]
        x = x.astype(jnp.float32)                          # (C_in, 256)

        # BatchNorm1d (eval) folded into a per-channel affine (VPU).
        y = x * scale + shift

        # Exact-erf GELU (matches torch.nn.GELU default).  erf via A&S 7.1.25:
        # |err| <= 2.5e-5, short VPU polynomial + one EUP exp.
        a = y * _SQRT_HALF
        aa = jnp.abs(a)
        t = 1.0 / (1.0 + _ERF_P * aa)
        poly = ((_ERF_A3 * t + _ERF_A2) * t + _ERF_A1) * t
        erf_abs = 1.0 - poly * jnp.exp(-aa * aa)
        erf = jnp.where(a >= 0.0, erf_abs, -erf_abs)
        y = 0.5 * y * (1.0 + erf)

        # Dropout(0.25): identity in eval mode.

        # Conv1d(kernel_size=1) == channel matmul on the MXU.  Explicit bf16x3
        # (hi/lo) split with f32 accumulation pins the precision (~1e-5 rel)
        # independently of the backend's default f32-matmul lowering.
        y_hi = y.astype(jnp.bfloat16)
        y_lo = (y - y_hi.astype(jnp.float32)).astype(jnp.bfloat16)
        z = (jnp.dot(w_hi, y_hi, preferred_element_type=jnp.float32)
             + jnp.dot(w_hi, y_lo, preferred_element_type=jnp.float32)
             + jnp.dot(w_lo, y_hi, preferred_element_type=jnp.float32))
        z = z + bias                                       # (C_out, 256)

        # MaxPool1d(kernel_size=2, stride=2) over the lane (L) axis.
        # Block-diagonal compaction: per 128-lane sub-chunk, one reused
        # (128, 128) [even | odd] 0/1 selection matmul on the otherwise-idle
        # MXU (hi/lo bf16 split keeps the copy exact to ~1e-5 rel), then the
        # pairwise max is a VPU max of the two 64-wide halves.  Cost is linear
        # in TILE_L and ~0.9x the conv FLOPs.
        for h in range(_CONV_CHUNK // _POOL_CHUNK):
            zc = z[:, h * _POOL_CHUNK:(h + 1) * _POOL_CHUNK]
            z_hi = zc.astype(jnp.bfloat16)
            z_lo = (zc - z_hi.astype(jnp.float32)).astype(jnp.bfloat16)
            eo = (jnp.dot(z_hi, sel, preferred_element_type=jnp.float32)
                  + jnp.dot(z_lo, sel, preferred_element_type=jnp.float32))
            r = jnp.maximum(eo[:, :half], eo[:, half:])    # (C_out, 64)
            off = (c * _CONV_CHUNK + h * _POOL_CHUNK) // 2
            o_ref[0, :, off:off + half] = r


def _pick_tile_l(L, N):
    candidates = [t for t in (1024, 512, 256) if L % t == 0]
    if not candidates:
        return None
    # Prefer the largest tile that still leaves >= 8 total grid steps
    # (>= 4 per v7x TensorCore) so the automatic double-buffered pipeline can
    # overlap DMA with compute; otherwise take the smallest divisor.
    for t in candidates:
        if N * (L // t) >= 8:
            return t
    return candidates[-1]


def transition_block(x, gamma, beta, running_mean, running_var, conv_w, conv_b,
                     eps=1e-5, tile_l=None):
    """x: (N, C_in, L) float32 -> (N, C_out, L//2) float32 (eval-mode)."""
    N, C_in, L = x.shape
    C_out = conv_w.shape[0]
    assert C_in % 8 == 0, "C_in must be a multiple of 8 (TPU sublane tiling)"
    if tile_l is None:
        tile_l = _pick_tile_l(L, N)
    assert (tile_l is not None and L % tile_l == 0
            and tile_l % _CONV_CHUNK == 0), (
        "this kernel requires L to be a multiple of 256")
    tile_p = tile_l // 2

    x = x.astype(jnp.float32)

    # Fold BN (eval) into a per-channel scale / shift, broadcast along lanes.
    scale = (gamma / jnp.sqrt(running_var + eps)).astype(jnp.float32)
    shift = (beta - running_mean * scale).astype(jnp.float32)
    scale2 = scale.reshape(C_in, 1)
    shift2 = shift.reshape(C_in, 1)

    # 1x1-conv weight pre-split into bf16 hi/lo (explicit bf16x3 precision).
    w = conv_w[:, :, 0].astype(jnp.float32)                 # (C_out, C_in)
    w_hi = w.astype(jnp.bfloat16)
    w_lo = (w - w_hi.astype(jnp.float32)).astype(jnp.bfloat16)
    b = conv_b.reshape(C_out, 1).astype(jnp.float32)

    # Constant 0/1 compaction matrix [E | O] for a 128-lane sub-chunk:
    # column k < 64 picks lane 2k, column 64+k picks lane 2k+1.  Exact in bf16.
    rows = jnp.arange(_POOL_CHUNK)[:, None]
    cols = jnp.arange(_POOL_CHUNK // 2)[None, :]
    sel = jnp.concatenate(
        [rows == 2 * cols, rows == 2 * cols + 1], axis=1).astype(jnp.bfloat16)

    grid = (N, L // tile_l)

    # Advisory cost estimate for the XLA scheduler.
    conv_flops = 3 * 2 * N * L * C_in * C_out               # bf16x3 passes
    pool_flops = 4 * N * L * C_out * _POOL_CHUNK            # linear in L
    bytes_accessed = (x.size + N * C_out * (L // 2)) * 4 \
        + (2 * w.size + sel.size) * 2 + (2 * C_in + C_out) * 4
    cost = pl.CostEstimate(flops=int(conv_flops + pool_flops),
                           transcendentals=int(N * L * C_in),
                           bytes_accessed=int(bytes_accessed))

    return pl.pallas_call(
        _transition_kernel,
        out_shape=jax.ShapeDtypeStruct((N, C_out, L // 2), jnp.float32),
        grid=grid,
        in_specs=[
            pl.BlockSpec((1, C_in, tile_l), lambda n, l: (n, 0, l)),        # x
            pl.BlockSpec((C_in, 1), lambda n, l: (0, 0)),                   # scale
            pl.BlockSpec((C_in, 1), lambda n, l: (0, 0)),                   # shift
            pl.BlockSpec((C_out, C_in), lambda n, l: (0, 0)),               # w_hi
            pl.BlockSpec((C_out, C_in), lambda n, l: (0, 0)),               # w_lo
            pl.BlockSpec((C_out, 1), lambda n, l: (0, 0)),                  # b
            pl.BlockSpec((_POOL_CHUNK, _POOL_CHUNK), lambda n, l: (0, 0)),  # sel
        ],
        out_specs=pl.BlockSpec((1, C_out, tile_p), lambda n, l: (n, 0, l)),
        compiler_params=pltpu.CompilerParams(
            dimension_semantics=("parallel", "parallel")),
        cost_estimate=cost,
    )(x, scale2, shift2, w_hi, w_lo, b, sel)


def _reference(x, gamma, beta, running_mean, running_var, conv_w, conv_b,
               eps=1e-5):
    # Pure-JAX reference mirroring PyTorch eval-mode semantics (exact-erf GELU,
    # full-f32 conv).
    xn = (x - running_mean[None, :, None]) / jnp.sqrt(
        running_var[None, :, None] + eps)
    xn = xn * gamma[None, :, None] + beta[None, :, None]
    xg = 0.5 * xn * (1.0 + jax.lax.erf(xn * _SQRT_HALF))
    z = jnp.einsum('ncl,oc->nol', xg, conv_w[:, :, 0],
                   precision=jax.lax.Precision.HIGHEST) + conv_b[None, :, None]
    Nb, Co, L = z.shape
    return jnp.max(z.reshape(Nb, Co, L // 2, 2), axis=-1)


if __name__ == "__main__":
    key = jax.random.PRNGKey(0)
    # Shapes consistent with trans1 = TransitionBlock(96, 96) of ValenceEEGModel.
    N, C_in, C_out, L = 2, 96, 96, 512

    k = jax.random.split(key, 7)
    x = jax.random.normal(k[0], (N, C_in, L), dtype=jnp.float32)
    gamma = 1.0 + 0.1 * jax.random.normal(k[1], (C_in,), dtype=jnp.float32)
    beta = 0.1 * jax.random.normal(k[2], (C_in,), dtype=jnp.float32)
    running_mean = 0.1 * jax.random.normal(k[3], (C_in,), dtype=jnp.float32)
    running_var = jnp.abs(1.0 + 0.1 * jax.random.normal(k[4], (C_in,),
                                                        dtype=jnp.float32))
    conv_w = (1.0 / jnp.sqrt(C_in)) * jax.random.normal(
        k[5], (C_out, C_in, 1), dtype=jnp.float32)
    conv_b = 0.1 * jax.random.normal(k[6], (C_out,), dtype=jnp.float32)

    out = transition_block(x, gamma, beta, running_mean, running_var,
                           conv_w, conv_b)
    out = jax.block_until_ready(out)

    ref = _reference(x, gamma, beta, running_mean, running_var, conv_w, conv_b)
    assert out.shape == (N, C_out, L // 2), out.shape
    max_err = float(jnp.max(jnp.abs(out - ref)))
    assert max_err < 5e-4, max_err

    print("KERNEL_OK")
</pallas_src>

<mosaic_0001>
module attributes {stable_mosaic.version = 11 : i64} {
  func.func @_transition_kernel(%arg0: i32, %arg1: i32, %arg2: memref<1x96x256xf32, #tpu.memory_space<vmem>>, %arg3: memref<96x1xf32, #tpu.memory_space<vmem>>, %arg4: memref<96x1xf32, #tpu.memory_space<vmem>>, %arg5: memref<96x96xbf16, #tpu.memory_space<vmem>>, %arg6: memref<96x96xbf16, #tpu.memory_space<vmem>>, %arg7: memref<96x1xf32, #tpu.memory_space<vmem>>, %arg8: memref<128x128xbf16, #tpu.memory_space<vmem>>, %arg9: memref<1x96x128xf32, #tpu.memory_space<vmem>>) attributes {dimension_semantics = [#tpu.dimension_semantics<parallel>, #tpu.dimension_semantics<parallel>], iteration_bounds = array<i64: 2, 2>, scalar_prefetch = 0 : i64, scratch_operands = 0 : i64, tpu.core_type = #tpu.core_type<tc>, window_params = [{transform_indices = @transform_0, window_bounds = array<i64: 1, 96, 256>}, {pipeline_mode = #tpu.pipeline_mode<synchronous>, transform_indices = @transform_1, window_bounds = array<i64: 96, 1>}, {pipeline_mode = #tpu.pipeline_mode<synchronous>, transform_indices = @transform_2, window_bounds = array<i64: 96, 1>}, {pipeline_mode = #tpu.pipeline_mode<synchronous>, transform_indices = @transform_3, window_bounds = array<i64: 96, 96>}, {pipeline_mode = #tpu.pipeline_mode<synchronous>, transform_indices = @transform_4, window_bounds = array<i64: 96, 96>}, {pipeline_mode = #tpu.pipeline_mode<synchronous>, transform_indices = @transform_5, window_bounds = array<i64: 96, 1>}, {pipeline_mode = #tpu.pipeline_mode<synchronous>, transform_indices = @transform_6, window_bounds = array<i64: 128, 128>}, {transform_indices = @transform_7, window_bounds = array<i64: 1, 96, 128>}]} {
    %c0 = arith.constant 0 : index
    %c0_0 = arith.constant 0 : index
    %0 = vector.load %arg3[%c0, %c0_0] : memref<96x1xf32, #tpu.memory_space<vmem>>, vector<96x1xf32>
    %c0_1 = arith.constant 0 : index
    %c0_2 = arith.constant 0 : index
    %1 = vector.load %arg4[%c0_1, %c0_2] : memref<96x1xf32, #tpu.memory_space<vmem>>, vector<96x1xf32>
    %c0_3 = arith.constant 0 : index
    %c0_4 = arith.constant 0 : index
    %2 = vector.load %arg5[%c0_3, %c0_4] : memref<96x96xbf16, #tpu.memory_space<vmem>>, vector<96x96xbf16>
    %c0_5 = arith.constant 0 : index
    %c0_6 = arith.constant 0 : index
    %3 = vector.load %arg6[%c0_5, %c0_6] : memref<96x96xbf16, #tpu.memory_space<vmem>>, vector<96x96xbf16>
    %c0_7 = arith.constant 0 : index
    %c0_8 = arith.constant 0 : index
    %4 = vector.load %arg7[%c0_7, %c0_8] : memref<96x1xf32, #tpu.memory_space<vmem>>, vector<96x1xf32>
    %c0_9 = arith.constant 0 : index
    %c0_10 = arith.constant 0 : index
    %5 = vector.load %arg8[%c0_9, %c0_10] : memref<128x128xbf16, #tpu.memory_space<vmem>>, vector<128x128xbf16>
    %c0_11 = arith.constant 0 : index
    %c0_12 = arith.constant 0 : index
    %c0_13 = arith.constant 0 : index
    %6 = vector.load %arg2[%c0_11, %c0_12, %c0_13] : memref<1x96x256xf32, #tpu.memory_space<vmem>>, vector<1x96x256xf32>
    %7 = vector.shape_cast %6 : vector<1x96x256xf32> to vector<96x256xf32>
    %8 = vector.broadcast %0 : vector<96x1xf32> to vector<96x256xf32>
    %9 = arith.mulf %7, %8 : vector<96x256xf32>
    %10 = vector.broadcast %1 : vector<96x1xf32> to vector<96x256xf32>
    %11 = arith.addf %9, %10 : vector<96x256xf32>
    %cst = arith.constant 0.707106769 : f32
    %12 = vector.broadcast %cst : f32 to vector<96x256xf32>
    %13 = arith.mulf %11, %12 : vector<96x256xf32>
    %14 = math.absf %13 : vector<96x256xf32>
    %cst_14 = arith.constant 4.704700e-01 : f32
    %15 = vector.broadcast %cst_14 : f32 to vector<96x256xf32>
    %16 = arith.mulf %15, %14 : vector<96x256xf32>
    %cst_15 = arith.constant 1.000000e+00 : f32
    %17 = vector.broadcast %cst_15 : f32 to vector<96x256xf32>
    %18 = arith.addf %17, %16 : vector<96x256xf32>
    %cst_16 = arith.constant 1.000000e+00 : f32
    %19 = vector.broadcast %cst_16 : f32 to vector<96x256xf32>
    %20 = arith.divf %19, %18 : vector<96x256xf32>
    %cst_17 = arith.constant 0.747855603 : f32
    %21 = vector.broadcast %cst_17 : f32 to vector<96x256xf32>
    %22 = arith.mulf %21, %20 : vector<96x256xf32>
    %cst_18 = arith.constant -9.587980e-02 : f32
    %23 = vector.broadcast %cst_18 : f32 to vector<96x256xf32>
    %24 = arith.addf %22, %23 : vector<96x256xf32>
    %25 = arith.mulf %24, %20 : vector<96x256xf32>
    %cst_19 = arith.constant 0.348024189 : f32
    %26 = vector.broadcast %cst_19 : f32 to vector<96x256xf32>
    %27 = arith.addf %25, %26 : vector<96x256xf32>
    %28 = arith.mulf %27, %20 : vector<96x256xf32>
    %cst_20 = arith.constant 0.000000e+00 : f32
    %29 = vector.broadcast %cst_20 : f32 to vector<96x256xf32>
    %30 = arith.subf %29, %14 : vector<96x256xf32>
    %31 = arith.mulf %30, %14 : vector<96x256xf32>
    %32 = math.exp %31 : vector<96x256xf32>
    %33 = arith.mulf %28, %32 : vector<96x256xf32>
    %cst_21 = arith.constant 1.000000e+00 : f32
    %34 = vector.broadcast %cst_21 : f32 to vector<96x256xf32>
    %35 = arith.subf %34, %33 : vector<96x256xf32>
    %cst_22 = arith.constant 0.000000e+00 : f32
    %36 = vector.broadcast %cst_22 : f32 to vector<96x256xf32>
    %37 = arith.cmpf oge, %13, %36 : vector<96x256xf32>
    %cst_23 = arith.constant 0.000000e+00 : f32
    %38 = vector.broadcast %cst_23 : f32 to vector<96x256xf32>
    %39 = arith.subf %38, %35 : vector<96x256xf32>
    %40 = arith.select %37, %35, %39 : vector<96x256xi1>, vector<96x256xf32>
    %cst_24 = arith.constant 5.000000e-01 : f32
    %41 = vector.broadcast %cst_24 : f32 to vector<96x256xf32>
    %42 = arith.mulf %41, %11 : vector<96x256xf32>
    %cst_25 = arith.constant 1.000000e+00 : f32
    %43 = vector.broadcast %cst_25 : f32 to vector<96x256xf32>
    %44 = arith.addf %43, %40 : vector<96x256xf32>
    %45 = arith.mulf %42, %44 : vector<96x256xf32>
    %46 = arith.truncf %45 : vector<96x256xf32> to vector<96x256xbf16>
    %47 = arith.extf %46 : vector<96x256xbf16> to vector<96x256xf32>
    %48 = arith.subf %45, %47 : vector<96x256xf32>
    %49 = arith.truncf %48 : vector<96x256xf32> to vector<96x256xbf16>
    %cst_26 = arith.constant dense<0.000000e+00> : vector<96x256xf32>
    %50 = tpu.matmul %2, %46, %cst_26 {dimension_numbers = #tpu.dot_dimension_numbers<[1], [0], [0], [1], [0, 0, 1, 1], [], []>} : vector<96x96xbf16>, vector<96x256xbf16>, vector<96x256xf32> -> vector<96x256xf32>
    %cst_27 = arith.constant dense<0.000000e+00> : vector<96x256xf32>
    %51 = tpu.matmul %2, %49, %cst_27 {dimension_numbers = #tpu.dot_dimension_numbers<[1], [0], [0], [1], [0, 0, 1, 1], [], []>} : vector<96x96xbf16>, vector<96x256xbf16>, vector<96x256xf32> -> vector<96x256xf32>
    %52 = arith.addf %50, %51 : vector<96x256xf32>
    %cst_28 = arith.constant dense<0.000000e+00> : vector<96x256xf32>
    %53 = tpu.matmul %3, %46, %cst_28 {dimension_numbers = #tpu.dot_dimension_numbers<[1], [0], [0], [1], [0, 0, 1, 1], [], []>} : vector<96x96xbf16>, vector<96x256xbf16>, vector<96x256xf32> -> vector<96x256xf32>
    %54 = arith.addf %52, %53 : vector<96x256xf32>
    %55 = vector.broadcast %4 : vector<96x1xf32> to vector<96x256xf32>
    %56 = arith.addf %54, %55 : vector<96x256xf32>
    %57 = vector.extract_strided_slice %56 {offsets = [0, 0], sizes = [96, 128], strides = [1, 1]} : vector<96x256xf32> to vector<96x128xf32>
    %58 = arith.truncf %57 : vector<96x128xf32> to vector<96x128xbf16>
    %59 = arith.extf %58 : vector<96x128xbf16> to vector<96x128xf32>
    %60 = arith.subf %57, %59 : vector<96x128xf32>
    %61 = arith.truncf %60 : vector<96x128xf32> to vector<96x128xbf16>
    %cst_29 = arith.constant dense<0.000000e+00> : vector<96x128xf32>
    %62 = tpu.matmul %58, %5, %cst_29 {dimension_numbers = #tpu.dot_dimension_numbers<[1], [0], [0], [1], [0, 0, 1, 1], [], []>} : vector<96x128xbf16>, vector<128x128xbf16>, vector<96x128xf32> -> vector<96x128xf32>
    %cst_30 = arith.constant dense<0.000000e+00> : vector<96x128xf32>
    %63 = tpu.matmul %61, %5, %cst_30 {dimension_numbers = #tpu.dot_dimension_numbers<[1], [0], [0], [1], [0, 0, 1, 1], [], []>} : vector<96x128xbf16>, vector<128x128xbf16>, vector<96x128xf32> -> vector<96x128xf32>
    %64 = arith.addf %62, %63 : vector<96x128xf32>
    %65 = vector.extract_strided_slice %64 {offsets = [0, 0], sizes = [96, 64], strides = [1, 1]} : vector<96x128xf32> to vector<96x64xf32>
    %66 = vector.extract_strided_slice %64 {offsets = [0, 64], sizes = [96, 64], strides = [1, 1]} : vector<96x128xf32> to vector<96x64xf32>
    %67 = arith.maximumf %65, %66 : vector<96x64xf32>
    %c0_31 = arith.constant 0 : index
    %c0_32 = arith.constant 0 : index
    %c0_33 = arith.constant 0 : index
    %68 = vector.load %arg9[%c0_31, %c0_32, %c0_33] : memref<1x96x128xf32, #tpu.memory_space<vmem>>, vector<1x96x64xf32>
    %69 = vector.shape_cast %68 : vector<1x96x64xf32> to vector<96x64xf32>
    %70 = vector.shape_cast %67 : vector<96x64xf32> to vector<1x96x64xf32>
    tpu.vector_store %arg9[%c0_31, %c0_32, %c0_33], %70 {strides = array<i32>} : memref<1x96x128xf32, #tpu.memory_space<vmem>>, vector<1x96x64xf32>,
    %71 = vector.extract_strided_slice %56 {offsets = [0, 128], sizes = [96, 128], strides = [1, 1]} : vector<96x256xf32> to vector<96x128xf32>
    %72 = arith.truncf %71 : vector<96x128xf32> to vector<96x128xbf16>
    %73 = arith.extf %72 : vector<96x128xbf16> to vector<96x128xf32>
    %74 = arith.subf %71, %73 : vector<96x128xf32>
    %75 = arith.truncf %74 : vector<96x128xf32> to vector<96x128xbf16>
    %cst_34 = arith.constant dense<0.000000e+00> : vector<96x128xf32>
    %76 = tpu.matmul %72, %5, %cst_34 {dimension_numbers = #tpu.dot_dimension_numbers<[1], [0], [0], [1], [0, 0, 1, 1], [], []>} : vector<96x128xbf16>, vector<128x128xbf16>, vector<96x128xf32> -> vector<96x128xf32>
    %cst_35 = arith.constant dense<0.000000e+00> : vector<96x128xf32>
    %77 = tpu.matmul %75, %5, %cst_35 {dimension_numbers = #tpu.dot_dimension_numbers<[1], [0], [0], [1], [0, 0, 1, 1], [], []>} : vector<96x128xbf16>, vector<128x128xbf16>, vector<96x128xf32> -> vector<96x128xf32>
    %78 = arith.addf %76, %77 : vector<96x128xf32>
    %79 = vector.extract_strided_slice %78 {offsets = [0, 0], sizes = [96, 64], strides = [1, 1]} : vector<96x128xf32> to vector<96x64xf32>
    %80 = vector.extract_strided_slice %78 {offsets = [0, 64], sizes = [96, 64], strides = [1, 1]} : vector<96x128xf32> to vector<96x64xf32>
    %81 = arith.maximumf %79, %80 : vector<96x64xf32>
    %c0_36 = arith.constant 0 : index
    %c0_37 = arith.constant 0 : index
    %c64 = arith.constant 64 : index
    %82 = vector.load %arg9[%c0_36, %c0_37, %c64] : memref<1x96x128xf32, #tpu.memory_space<vmem>>, vector<1x96x64xf32>
    %83 = vector.shape_cast %82 : vector<1x96x64xf32> to vector<96x64xf32>
    %84 = vector.shape_cast %81 : vector<96x64xf32> to vector<1x96x64xf32>
    tpu.vector_store %arg9[%c0_36, %c0_37, %c64], %84 {strides = array<i32>} : memref<1x96x128xf32, #tpu.memory_space<vmem>>, vector<1x96x64xf32>,
    return
  }
  func.func @transform_0(%arg0: i32, %arg1: i32) -> (i32, i32, i32) {
    %c0_i32 = arith.constant 0 : i32
    %c0_i32_0 = arith.constant 0 : i32
    return %arg0, %c0_i32, %arg1 : i32, i32, i32
  }
  func.func @transform_1(%arg0: i32, %arg1: i32) -> (i32, i32) {
    %c0_i32 = arith.constant 0 : i32
    %c0_i32_0 = arith.constant 0 : i32
    %c0_i32_1 = arith.constant 0 : i32
    return %c0_i32, %c0_i32_0 : i32, i32
  }
  func.func @transform_2(%arg0: i32, %arg1: i32) -> (i32, i32) {
    %c0_i32 = arith.constant 0 : i32
    %c0_i32_0 = arith.constant 0 : i32
    %c0_i32_1 = arith.constant 0 : i32
    return %c0_i32, %c0_i32_0 : i32, i32
  }
  func.func @transform_3(%arg0: i32, %arg1: i32) -> (i32, i32) {
    %c0_i32 = arith.constant 0 : i32
    %c0_i32_0 = arith.constant 0 : i32
    %c0_i32_1 = arith.constant 0 : i32
    return %c0_i32, %c0_i32_0 : i32, i32
  }
  func.func @transform_4(%arg0: i32, %arg1: i32) -> (i32, i32) {
    %c0_i32 = arith.constant 0 : i32
    %c0_i32_0 = arith.constant 0 : i32
    %c0_i32_1 = arith.constant 0 : i32
    return %c0_i32, %c0_i32_0 : i32, i32
  }
  func.func @transform_5(%arg0: i32, %arg1: i32) -> (i32, i32) {
    %c0_i32 = arith.constant 0 : i32
    %c0_i32_0 = arith.constant 0 : i32
    %c0_i32_1 = arith.constant 0 : i32
    return %c0_i32, %c0_i32_0 : i32, i32
  }
  func.func @transform_6(%arg0: i32, %arg1: i32) -> (i32, i32) {
    %c0_i32 = arith.constant 0 : i32
    %c0_i32_0 = arith.constant 0 : i32
    %c0_i32_1 = arith.constant 0 : i32
    return %c0_i32, %c0_i32_0 : i32, i32
  }
  func.func @transform_7(%arg0: i32, %arg1: i32) -> (i32, i32, i32) {
    %c0_i32 = arith.constant 0 : i32
    %c0_i32_0 = arith.constant 0 : i32
    return %arg0, %c0_i32, %arg1 : i32, i32, i32
  }
}

</mosaic_0001>

<bundles_post_ra>
// kernel: tpu_custom_call.1
= control target key start
LH: loop header
LB: loop body
LE: loop exit
PB: predicated region body
PF: predicated region fallthrough
CT: control target
= control target key end

     0   :  { %12 = vsyncpa [#allocation3], 0  ;;  %s4849_s0 = inlined_call_operand.hbm [shape: f32[2,96,512], index: 0, kind: input, shape index: {}]   ;;  %s4850_s1 = inlined_call_operand.vmem [shape: f32[96,1], index: 1, kind: input, shape index: {}]   ;;  %s4851_s2 = inlined_call_operand.vmem [shape: f32[96,1], index: 2, kind: input, shape index: {}]   ;;  %s4852_s3 = inlined_call_operand.vmem [shape: bf16[96,96], index: 3, kind: input, shape index: {}]   ;;  %s4853_s4 = inlined_call_operand.vmem [shape: bf16[96,96], index: 4, kind: input, shape index: {}]   ;;  %s4854_s5 = inlined_call_operand.vmem [shape: f32[96,1], index: 5, kind: input, shape index: {}]   ;;  %s4855_s6 = inlined_call_operand.vmem [shape: bf16[128,128], index: 6, kind: input, shape index: {}]   ;;  %s4856_s7 = inlined_call_operand.hbm [shape: f32[2,96,256], index: 7, kind: output, shape index: {}]  }
   0x1   :  { %14 = vsyncpa [#allocation3 + $0x1], 0 }
   0x2   :  { %15 = vsyncpa [#allocation4], 0 }
   0x3   :  { %17 = vsyncpa [#allocation4 + $0x1], 0  ;;  %s3208_s24 = smov 0   ;;  %s3210_s25 = smov 0  }
   0x4   :  { %s3212_s26 = smov 0   ;;  %s3214_s27 = smov 0  }
   0x5   :  { %s3216_s28 = smov 0   ;;  %s3218_s29 = smov 0  }
   0x6   :  { %s3220_s30 = smov 0   ;;  %s3222_s8 = smov 0  }
   0x7 LB: > { %4909 = sst [smem:[#allocation8_spill]] %s3130_s24  ;;  %s2682_s9 = sadd.s32 4294967295, %s3158_s8   ;;  %s3158_s8 = sphi %s3222_s8, %s23_s8   ;;  %s3154_s30 = sphi %s3220_s30, %s5072_s30   ;;  %s3150_s29 = sphi %s3218_s29, %s5068_s29   ;;  %s3146_s28 = sphi %s3216_s28, %s5067_s28   ;;  %s3142_s27 = sphi %s3214_s27, %s5066_s27   ;;  %s3138_s26 = sphi %s3212_s26, %s5065_s26   ;;  %s3134_s25 = sphi %s3210_s25, %s5071_s25   ;;  %s3130_s24 = sphi %s3208_s24, %s5070_s24  }
   0x8   : > { %4910 = sst [smem:[#allocation9_spill]] %s3138_s26  ;;  %s2683_s10 = sadd.s32 4294967294, %s3158_s8  }
   0x9   : > { %4911 = sst [smem:[#allocation10_spill]] %s3150_s29  ;;  %s32_s11 = sadd.s32 1, %s3150_s29 }
   0xa   : > { %4912 = sst [smem:[#allocation11_spill]] %s3154_s30  ;;  %s35_s12 = sadd.s32 1, %s3154_s30 }
   0xb   : > { %p33_p0 = scmp.ge.s32.totalorder %s32_s11, 2  ;;  %s44_s13 = sadd.s32 1, %s3138_s26 }
   0xc   : > { %p51_p1 = scmp.ne.s32.totalorder %s3138_s26, %s3134_s25  ;;  %p52_p2 = scmp.eq.s32.totalorder %s3158_s8, 0 }
   0xd   : > { %s5074_s11 = smov (%p33_p0, %s32_s11), 0  ;;  %s5076_s12 = smov (!%p33_p0, %s35_s12), %s3154_s30 }
   0xe   : > { %4913 = sst [smem:[#allocation12_spill]] %s5074_s11  ;;  %s40_s14 = ssub.s32 %s3150_s29, %s5074_s11 }
   0xf   : > { %p3261_p3 = por %p52_p2, %p51_p1  ;;  %p37_p4 = scmp.ge.s32.totalorder %s5076_s12, 2 }
  0x10   : > { %p57_p5 = scmp.ne.s32.totalorder %s3134_s25, %s3130_s24  ;;  %p58_p6 = scmp.eq.s32.totalorder %s2682_s9, 0 }
  0x11   : > { %p209_p7 = scmp.eq.s32.totalorder %s2682_s9, 3  ;;  %s5078_s12 = smov (%p37_p4, %s5076_s12), 0 }
  0x12   : > { %4915 = sst [smem:[#allocation13_spill]] %s5078_s12  ;;  %p3269_p8 = por %p58_p6, %p57_p5 }
  0x13   : > { %p3273_p9 = por %p209_p7, %p51_p1  ;;  %s39_s18 = ssub.s32 %s3154_s30, %s5078_s12 }
  0x14   : > { %p215_p10 = scmp.eq.s32.totalorder %s2683_s10, 3  ;;  %s41_s19 = sor.u32 %s40_s14, %s39_s18 }
  0x15   : > { %p42_p11 = scmp.eq.s32.totalorder %s41_s19, 0  ;;  %p2857_p13 = scmp.lt.s32.totalorder %s3158_s8, 4 }
  0x16   : > { %p3279_p12 = por %p215_p10, %p57_p5  ;;  %s253_s21 = sand.u32 1, %s3138_s26  }
  0x17   : > { %s3286_s22 = scalar_select %p42_p11, %s3138_s26, %s44_s13  }
  0x18   : > { %s4918_s20 = scalar_select %p3279_p12, 1, 0 }
  0x19   : > { %4920 = sst [smem:[#allocation15_spill]] %s3286_s22  ;;  %s2840_s23 = smul.u32 192, %s253_s21 }
  0x1a   : > { %4919 = sst [smem:[#allocation14_spill]] %s4918_s20  ;;  %s2686_s9 = sshll.u32 %s3150_s29, 1 }
  0x1b   : > { %s2841_s11 = smul.u32 48, %s3154_s30  ;;  %p3292_p0 = pnand %p2857_p13, %p3261_p3 }
  0x1c   : > { %s257_s14 = scalar_lea.vmem [#allocation2], %s2840_s23  ;;  %p2688_p1 = scmp.ge.s32.totalorder %s3158_s8, 1 }
  0x1d   : > { %s262_s10 = sadd.s32 %s2841_s11, %s2686_s9  ;;  %s267_s18 = sshll.u32 %s257_s14, 4  ;;  %s268_s18 = int_to_ptr.vmem [resolvable:$true] %s267_s18 }
  0x1e   : > { %s2687_s19 = sshll.u32 %s262_s10, 3  ;;  %s254_s30 = scalar_lea.sflag [#allocation3], %s253_s21 }
  0x1f   : > { %s264_s13 = scalar_lea.hbm %s4849_s0, %s2687_s19  ;;  %s3160_s15 = smov 512  }
  0x20   : > { %s265_s22 = sshll.u32 %s264_s13, 4  ;;  %s3161_s29 = smov 256   ;;  %s266_s22 = int_to_ptr.hbm [resolvable:$true] %s265_s22 }
  0x21   : > { %s3162_s26 = smov 16   ;;  %p275_p2 = scmp.lt.s32.totalorder %s3158_s8, 5 }
  0x22   : > { %2852 = dma.hbm_to_vmem [thread:$0]  (!%p3292_p0), %s266_s22, 3072, %s268_s18, %s254_s30, %s3160_s15, %s3161_s29, %s3162_s26  }
  0x23   : > { %p276_p3 = pnand %p2688_p1, %p275_p2 }
  0x25   : > { %279 = sbr.rel (%p276_p3) target bundleno = 1072 (0x430), region = 48 }
  0x2a   : > { %s3304_s11 = sand.u32 1, %s3134_s25  }
  0x2b   : > { %s2842_s12 = smul.u32 192, %s3304_s11  ;;  %s282_s20 = scalar_lea.sflag [#allocation3], %s3304_s11 }
  0x2d   : > { %s3308_s23 = scalar_lea.vmem [#allocation2], %s2842_s12 }
  0x2e   : > { %3121 = dma.done.wait (%p3269_p8), %s282_s20, 3072  }
  0x2f   : > { %3123 = vsyncadd (%p3269_p8), %s282_s20, 4294964224  ;;  %v3163_v0 = vmov 0   ;;  %v341_v1 = vld [vmem:[%s4851_s2 + $0x50] sm:$0xff]  ;;  %v327_v3 = vld [vmem:[%s4850_s1 + $0x40] sm:$0xff]  ;;  %s3164_s15 = smov 64   ;;  %s2843_s12 = smul.u32 96, %s3304_s11 }
  0x30   : > { %2933 = vset.pattern.permute.xlu2 %v3163_v0  ;;  %2932 = vset.pattern.permute.xlu1 %v3163_v0  ;;  %v329_v2 = vld [vmem:[%s4850_s1 + $0x50] sm:$0xff]  ;;  %v342_v4 = vld [vmem:[%s4851_s2 + $0x58] sm:$0xff]  ;;  %v328_v6 = vld [vmem:[%s4850_s1 + $0x48] sm:$0xff]  ;;  %s2844_s24 = smul.u32 24, %s3146_s28  ;;  %s3080_s18 = scalar_lea.hbm %s4856_s7, 384 }
  0x31   : > { %2931 = vset.pattern.permute.xlu0 %v3163_v0  ;;  %555 = vperm.xlu1 %2932, %v341_v1   ;;  %v330_v5 = vld [vmem:[%s4850_s1 + $0x58] sm:$0xff]  ;;  %v340_v7 = vld [vmem:[%s4851_s2 + $0x48] sm:$0xff]  ;;  %v339_v8 = vld [vmem:[%s4851_s2 + $0x40] sm:$0xff]  ;;  %s4722_s20 = scalar_lea.vmem [#allocation5], %s2843_s12 }
  0x32   : > { %471 = vperm.xlu0 %2931, %v329_v2   ;;  %461 = vperm.xlu2 %2933, %v327_v3   ;;  %v325_v9 = vld [vmem:[%s4850_s1 + $0x30] sm:$0xff]  ;;  %v326_v11 = vld [vmem:[%s4850_s1 + $0x38] sm:$0xff]  ;;  %v324_v13 = vld [vmem:[%s4850_s1 + $0x28] sm:$0xff]  ;;  %s2587_s26 = sadd.s32 %s3142_s27, %s2844_s24  ;;  %s2590_s16 = sshll.u32 %s4722_s20, 4  ;;  %s2591_s16 = int_to_ptr.vmem [resolvable:$true] %s2590_s16 }
  0x33   : > { %v337_v10 = vld [vmem:[%s4851_s2 + $0x30] sm:$0xff]  ;;  %v338_v12 = vld [vmem:[%s4851_s2 + $0x38] sm:$0xff]  ;;  %v323_v14 = vld [vmem:[%s4850_s1 + $0x20] sm:$0xff]  ;;  %s2805_s29 = sshll.u32 %s2587_s26, 3 }
  0x34   : > { %v335_v15 = vld [vmem:[%s4851_s2 + $0x20] sm:$0xff]  ;;  %v336_v16 = vld [vmem:[%s4851_s2 + $0x28] sm:$0xff]  ;;  %v321_v17 = vld [vmem:[%s4850_s1 + $0x10] sm:$0xff]  ;;  %s2589_s22 = scalar_lea.hbm %s4856_s7, %s2805_s29 }
  0x35   : > { %v322_v18 = vld [vmem:[%s4850_s1 + $0x18] sm:$0xff]  ;;  %v333_v19 = vld [vmem:[%s4851_s2 + $0x10] sm:$0xff]  ;;  %v319_v21 = vld [vmem:[%s4850_s1] sm:$0xff]  ;;  %s2592_s9 = sshll.u32 %s2589_s22, 4  ;;  %s2593_s9 = int_to_ptr.hbm [resolvable:$true] %s2592_s9 }
  0x36   : > { %v334_v20 = vld [vmem:[%s4851_s2 + $0x18] sm:$0xff]  ;;  %v331_v22 = vld [vmem:[%s4851_s2] sm:$0xff]  ;;  %v320_v23 = vld [vmem:[%s4850_s1 + $0x8] sm:$0xff]  ;;  %s3074_s10 = sshra.s32 %s2593_s9, 4  ;;  %s3075_s10 = int_to_ptr.hbm [resolvable:$true] %s3074_s10 }
  0x37   : > { %v332_v24 = vld [vmem:[%s4851_s2 + $0x8] sm:$0xff]  ;;  %v367_v26 = vld [vmem:[%s4854_s5] sm:$0xff]  ;;  %v369_v27 = vld [vmem:[%s4854_s5 + $0x10] sm:$0xff]  ;;  %s3076_s27 = scalar_lea.hbm %s3075_s10, 96  ;;  %p3081_p7 = scmp.lt.s32.totalorder %s3075_s10, %s4856_s7 }
  0x38   : > { %v368_v25 = vld [vmem:[%s4854_s5 + $0x8] sm:$0xff]  ;;  %v371_v28 = vld [vmem:[%s4854_s5 + $0x20] sm:$0xff]  ;;  %v370_v29 = vld [vmem:[%s4854_s5 + $0x18] sm:$0xff]  ;;  %p3077_p4 = scmp.ne.s32.totalorder %s3075_s10, %s3076_s27  ;;  %p3082_p8 = scmp.lt.s32.totalorder %s3080_s18, %s3076_s27 }
  0x39   : > { %560 = vperm.xlu1 %2932, %v342_v4   ;;  %v372_v30 = vld [vmem:[%s4854_s5 + $0x28] sm:$0xff]  ;;  %v374_v31 = vld [vmem:[%s4854_s5 + $0x38] sm:$0xff]  ;;  %v373_v32 = vld [vmem:[%s4854_s5 + $0x30] sm:$0xff] }
  0x3a   : > { %476 = vperm.xlu0 %2931, %v330_v5   ;;  %466 = vperm.xlu2 %2933, %v328_v6   ;;  %v375_v33 = vld [vmem:[%s4854_s5 + $0x40] sm:$0xff]  ;;  %v377_v34 = vld [vmem:[%s4854_s5 + $0x50] sm:$0xff]  ;;  %v376_v35 = vld [vmem:[%s4854_s5 + $0x48] sm:$0xff]  ;;  %p3078_p5 = pnand %p3077_p4, %p3273_p9  ;;  %p3083_p10 = por %p3082_p8, %p3081_p7 }
  0x3b   : > { %v378_v36 = vld [vmem:[%s4854_s5 + $0x58] sm:$0xff]  ;;  %v415_v37 = vld [vmem:[%s3308_s23 + $0xa0] sm:$0xff]  ;;  %v416_v38 = vld [vmem:[%s3308_s23 + $0xa8] sm:$0xff] }
  0x3c   : > { %v418_v48 = vld [vmem:[%s3308_s23 + $0xb8] sm:$0xff]  ;;  %v417_v53 = vld [vmem:[%s3308_s23 + $0xb0] sm:$0xff]  ;;  %v411_v5 = vld [vmem:[%s3308_s23 + $0x80] sm:$0xff]  ;;  %p3079_p6 = pneg %p3078_p5 }
  0x3d   : > { %v414_v58 = vld [vmem:[%s3308_s23 + $0x98] sm:$0xff]  ;;  %v412_v6 = vld [vmem:[%s3308_s23 + $0x88] sm:$0xff] }
  0x3e   : > { %p3084_p11 = pnand %p3083_p10, %p3079_p6 }
  0x41   : > { %550 = vperm.xlu1 %2932, %v340_v7  }
  0x42   : > { %545 = vperm.xlu0 %2931, %v339_v8   ;;  %451 = vperm.xlu2 %2933, %v325_v9  }
  0x49   : > { %535 = vperm.xlu1 %2932, %v337_v10   ;;  %v413_v10 = vld [vmem:[%s3308_s23 + $0x90] sm:$0xff] }
  0x4a   : > { %456 = vperm.xlu0 %2931, %v326_v11   ;;  %540 = vperm.xlu2 %2933, %v338_v12  }
  0x51   : > { %446 = vperm.xlu1 %2932, %v324_v13   ;;  %v407_v13 = vld [vmem:[%s3308_s23 + $0x60] sm:$0xff] }
  0x52   : > { %441 = vperm.xlu0 %2931, %v323_v14   ;;  %525 = vperm.xlu2 %2933, %v335_v15  }
  0x59   : > { %431 = vperm.xlu1 %2932, %v321_v17  }
  0x5a   : > { %530 = vperm.xlu0 %2931, %v336_v16   ;;  %436 = vperm.xlu2 %2933, %v322_v18  }
  0x61   : > { %520 = vperm.xlu1 %2932, %v334_v20  }
  0x62   : > { %515 = vperm.xlu0 %2931, %v333_v19   ;;  %421 = vperm.xlu2 %2933, %v319_v21   ;;  %v408_v21 = vld [vmem:[%s3308_s23 + $0x68] sm:$0xff] }
  0x69   : > { %505 = vperm.xlu1 %2932, %v331_v22  }
  0x6a   : > { %426 = vperm.xlu0 %2931, %v320_v23   ;;  %510 = vperm.xlu2 %2933, %v332_v24  }
  0x71   : > { %1945 = vperm.xlu1 %2932, %v368_v25  }
  0x72   : > { %1940 = vperm.xlu0 %2931, %v367_v26   ;;  %1950 = vperm.xlu2 %2933, %v369_v27  }
  0x79   : > { %1960 = vperm.xlu1 %2932, %v371_v28  }
  0x7a   : > { %1955 = vperm.xlu0 %2931, %v370_v29   ;;  %1965 = vperm.xlu2 %2933, %v372_v30  }
  0x81   : > { %1975 = vperm.xlu1 %2932, %v374_v31  }
  0x82   : > { %1970 = vperm.xlu0 %2931, %v373_v32   ;;  %1980 = vperm.xlu2 %2933, %v375_v33  }
  0x89   : > { %1990 = vperm.xlu1 %2932, %v377_v34  }
  0x8a   : > { %1985 = vperm.xlu0 %2931, %v376_v35   ;;  %1995 = vperm.xlu2 %2933, %v378_v36  }
  0x8c   : > { %v462_v43 = vpop.permute.xlu2 %461 }
  0x8d   : > { %v495_v17 = vmul.f32 %v462_v43, %v411_v5  ;;  %v496_v18 = vmul.f32 %v462_v43, %v412_v6 }
  0x94   : > { %v467_v59 = vpop.permute.xlu2 %466 }
  0x95   : > { %v498_v62 = vmul.f32 %v467_v59, %v414_v58  ;;  %v497_v20 = vmul.f32 %v467_v59, %v413_v10 }
  0x9c   : > { %v452_v22 = vpop.permute.xlu2 %451 }
  0x9d   : > { %v3462_v25 = vmul.f32 %v452_v22, %v407_v13  ;;  %v3468_v32 = vmul.f32 %v452_v22, %v408_v21 }
  0xa3   : > { %v556_v39 = vpop.permute.xlu1 %555 }
  0xa4   : > { %v472_v40 = vpop.permute.xlu0 %471 }
  0xa5   : > { %v499_v41 = vmul.f32 %v472_v40, %v415_v37  ;;  %v500_v42 = vmul.f32 %v472_v40, %v416_v38 }
  0xa7   : > { %v3424_v44 = vadd.f32 %v556_v39, %v500_v42  ;;  %v583_v45 = vadd.f32 %v556_v39, %v499_v41 }
  0xa9   : > { %v3427_v46 = vmul.f32 0.70710677, %v3424_v44  ;;  %v3431_v51 = vmul.f32 0.70710677, %v583_v45  ;;  %v3472_v37 = vmul.f32 0.5, %v583_v45  ;;  %v3475_v39 = vmul.f32 0.5, %v3424_v44 }
  0xab   : > { %v632_v47 = vand.u32 2147483647, %v3427_v46  ;;  %v561_v49 = vpop.permute.xlu1 %560  ;;  %v631_v60 = vand.u32 2147483647, %v3431_v51  ;;  %4923 = vst [vmem:[#allocation17_spill] sm:$0xff] %v3472_v37  ;;  %vm1328_vm12 = vcmp.ge.f32.partialorder %v3427_v46, 0.0 }
  0xac   : > { %v477_v50 = vpop.permute.xlu0 %476 }
  0xad   : > { %v656_v52 = vmul.f32 0.47047, %v632_v47  ;;  %v502_v54 = vmul.f32 %v477_v50, %v418_v48  ;;  %v501_v56 = vmul.f32 %v477_v50, %v417_v53  ;;  %v1183_v1 = vsub.f32 0.0, %v631_v60 }
  0xae   : > { %v655_v3 = vmul.f32 0.47047, %v631_v60  ;;  %v1184_v7 = vsub.f32 0.0, %v632_v47 }
  0xaf   : > { %v680_v55 = vadd.f32 1.0, %v656_v52  ;;  %v3434_v57 = vadd.f32 %v561_v49, %v502_v54  ;;  %v585_v63 = vadd.f32 %v561_v49, %v501_v56  ;;  %v1207_v15 = vmul.f32 %v1183_v1, %v631_v60 }
  0xb0   : > { %v3458_v19 = vadd.f32 1.0, %v655_v3  ;;  %v1208_v24 = vmul.f32 %v1184_v7, %v632_v47 }
  0xb1   : > { %2934 = vrcp.f32 %v680_v55  ;;  %v3439_v61 = vmul.f32 0.70710677, %v3434_v57  ;;  %v3450_v11 = vmul.f32 0.70710677, %v585_v63  ;;  %v1009_v26 = vand.u32 2147483648, %v680_v55 }
  0xb2   : > { %v1007_v30 = vand.u32 2147483647, %v680_v55  ;;  %v1251_v31 = vmul.f32 1.442695, %v1207_v15  ;;  %vm1003_vm1 = vweird.f32 %v680_v55  ;;  %v1253_v36 = vmul.f32 1.442695, %v1208_v24 }
  0xb3   : > { %v551_v0 = vpop.permute.xlu1 %550  ;;  %v3442_v2 = vand.u32 2147483647, %v3439_v61  ;;  %4922 = vst [vmem:[#allocation16_spill] sm:$0xff] %v3450_v11  ;;  %v633_v27 = vand.u32 2147483647, %v3450_v11  ;;  %v1010_v38 = vor.u32 1.1754944e-38, %v1009_v26  ;;  %v3521_v26 = vpop.permute.xlu2 %540 }
  0xb4   : > { %v3444_v4 = vadd.f32 %v551_v0, %v498_v62  ;;  %v581_v33 = vadd.f32 %v551_v0, %v497_v20  ;;  %vm1008_vm3 = vcmp.eq.f32.partialorder %v1007_v30, 8.507059e+37  ;;  %v546_v48 = vpop.permute.xlu0 %545  ;;  %v3484_v44 = vmul.f32 0.5, %v585_v63 }
  0xb5   : > { %v658_v8 = vmul.f32 0.47047, %v3442_v2  ;;  %v657_v40 = vmul.f32 0.47047, %v633_v27  ;;  %v1186_v47 = vsub.f32 0.0, %v3442_v2  ;;  %v3487_v53 = vmul.f32 0.5, %v3434_v57 }
  0xb6   : > { %v3453_v12 = vmul.f32 0.70710677, %v3444_v4  ;;  %v3481_v45 = vmul.f32 0.70710677, %v581_v33  ;;  %4925 = vst [vmem:[#allocation19_spill] sm:$0xff] %v3484_v44  ;;  %v1185_v58 = vsub.f32 0.0, %v633_v27  ;;  %v3493_v59 = vadd.f32 %v546_v48, %v495_v17 }
  0xb7   : > { %v2935_v9 = vpop.eup %2934  ;;  %v3456_v16 = vadd.f32 1.0, %v658_v8  ;;  %v1210_v0 = vmul.f32 %v1186_v47, %v3442_v2  ;;  %v3497_v1 = vadd.f32 %v546_v48, %v496_v18  ;;  %v3507_v8 = vmul.f32 0.5, %v581_v33 }
  0xb8   : > { %v999_v14 = vmul.f32 %v2935_v9, %v680_v55  ;;  %v3466_v28 = vand.u32 2147483647, %v3453_v12  ;;  %vm1004_vm0 = vweird.f32 %v2935_v9  ;;  %4924 = vst [vmem:[#allocation18_spill] sm:$0xff] %v3481_v45  ;;  %v3491_v55 = vadd.f32 1.0, %v657_v40 }
  0xb9   : > { %2936 = vrcp.f32 %v3456_v16  ;;  %vm1005_vm2 = vmor %vm1003_vm1, %vm1004_vm0  ;;  %v1039_v62 = vand.u32 2147483648, %v3456_v16  ;;  %v1037_v57 = vand.u32 2147483647, %v3456_v16  ;;  %v629_v3 = vand.u32 2147483647, %v3481_v45  ;;  %4926 = vst [vmem:[#allocation20_spill] sm:$0xff] %v3507_v8 }
  0xba   : > { %v1000_v23 = vsub.f32 1.0, %v999_v14  ;;  %2938 = vrcp.f32 %v3458_v19  ;;  %v654_v34 = vmul.f32 0.47047, %v3466_v28  ;;  %vm1033_vm5 = vweird.f32 %v3456_v16 }
  0xbb   : > { %2940 = vpow2.f32 %v1251_v31  ;;  %v1209_v13 = vmul.f32 %v1185_v58, %v633_v27  ;;  %v1040_v15 = vor.u32 1.1754944e-38, %v1039_v62  ;;  %v1257_v17 = vmul.f32 1.442695, %v1210_v0  ;;  %v536_v62 = vpop.permute.xlu1 %535 }
  0xbc   : > { %v1001_v29 = vmul.f32 %v2935_v9, %v1000_v23  ;;  %v3477_v41 = vadd.f32 1.0, %v654_v34  ;;  %vm1038_vm7 = vcmp.eq.f32.partialorder %v1037_v57, 8.507059e+37  ;;  %v1181_v22 = vsub.f32 0.0, %v629_v3 }
  0xbd   : > { %v3519_v23 = vmul.f32 0.70710677, %v3493_v59  ;;  %v653_v31 = vmul.f32 0.47047, %v629_v3  ;;  %v1182_v34 = vsub.f32 0.0, %v3466_v28  ;;  %vm1330_vm14 = vcmp.ge.f32.partialorder %v3439_v61, 0.0 }
  0xbe   : > { %v1002_v35 = vadd.f32 %v2935_v9, %v1001_v29  ;;  %2942 = vrcp.f32 %v3477_v41  ;;  %v979_v33 = vand.u32 2147483648, %v3477_v41  ;;  %v1205_v47 = vmul.f32 %v1181_v22, %v629_v3 }
  0xbf   : > { %v2937_v42 = vpop.eup %2936  ;;  %2944 = vpow2.f32 %v1253_v36  ;;  %4927 = vst [vmem:[#allocation21_spill] sm:$0xff] %v3519_v23  ;;  %v977_v36 = vand.u32 2147483647, %v3477_v41  ;;  %v627_v48 = vand.u32 2147483647, %v3519_v23  ;;  %vm973_vm9 = vweird.f32 %v3477_v41 }
  0xc0   : > { %v1006_v43 = vsel %vm1005_vm2, %v2935_v9, %v1002_v35  ;;  %v1029_v50 = vmul.f32 %v2937_v42, %v3456_v16  ;;  %v3489_v54 = vpop.eup %2938  ;;  %vm1034_vm4 = vweird.f32 %v2937_v42  ;;  %v3510_v9 = vmul.f32 0.70710677, %v3497_v1 }
  0xc1   : > { %v1011_v49 = vsel %vm1008_vm3, %v1010_v38, %v1006_v43  ;;  %v3501_v5 = vpop.eup %2940  ;;  %v3505_v6 = vmul.f32 %v3489_v54, %v3458_v19  ;;  %2946 = vrcp.f32 %v3491_v55  ;;  %vm1035_vm6 = vmor %vm1033_vm5, %vm1034_vm4  ;;  %v1255_v43 = vmul.f32 1.442695, %v1209_v13 }
  0xc2   : > { %v1064_v52 = vmul.f32 0.7478556, %v1011_v49  ;;  %v1030_v56 = vsub.f32 1.0, %v1029_v50  ;;  %v3516_v20 = vand.u32 2147483647, %v3510_v9  ;;  %v980_v58 = vor.u32 1.1754944e-38, %v979_v33 }
  0xc3   : > { %vm978_vm11 = vcmp.eq.f32.partialorder %v977_v36, 8.507059e+37  ;;  %vm1326_vm2 = vcmp.ge.f32.partialorder %v3453_v12, 0.0 }
  0xc4   : > { %v1088_v60 = vadd.f32 -0.0958798, %v1064_v52  ;;  %v1031_v63 = vmul.f32 %v2937_v42, %v1030_v56  ;;  %v2943_v2 = vpop.eup %2942  ;;  %v652_v29 = vmul.f32 0.47047, %v3516_v20 }
  0xc5   : > { %v2945_v14 = vpop.eup %2944  ;;  %v969_v18 = vmul.f32 %v2943_v2, %v3477_v41  ;;  %vm974_vm8 = vweird.f32 %v2943_v2  ;;  %v1247_v41 = vmul.f32 1.442695, %v1205_v47 }
  0xc6   : > { %v1112_v7 = vmul.f32 %v1088_v60, %v1011_v49  ;;  %v1032_v10 = vadd.f32 %v2937_v42, %v1031_v63  ;;  %v3527_v38 = vadd.f32 1.0, %v652_v29  ;;  %vm975_vm10 = vmor %vm973_vm9, %vm974_vm8  ;;  %v1206_v60 = vmul.f32 %v1182_v34, %v3466_v28  ;;  %v410_v34 = vld [vmem:[%s3308_s23 + $0x78] sm:$0xff] }
  0xc7   : > { %v970_v27 = vsub.f32 1.0, %v969_v18  ;;  %v3529_v40 = vpop.eup %2946  ;;  %v3539_v63 = vadd.f32 1.0, %v653_v31  ;;  %vm1324_vm8 = vcmp.ge.f32.partialorder %v3510_v9, 0.0 }
  0xc8   : > { %v1036_v21 = vsel %vm1035_vm6, %v2937_v42, %v1032_v10  ;;  %v1136_v24 = vadd.f32 0.3480242, %v1112_v7  ;;  %2948 = vrcp.f32 %v3527_v38  ;;  %v3537_v0 = vmul.f32 %v3529_v40, %v3491_v55 }
  0xc9   : > { %v1041_v16 = vsel %vm1038_vm7, %v1040_v15, %v1036_v21  ;;  %v971_v35 = vmul.f32 %v2943_v2, %v970_v27  ;;  %2950 = vpow2.f32 %v1257_v17  ;;  %v651_v7 = vmul.f32 0.47047, %v627_v48 }
  0xca   : > { %v1066_v30 = vmul.f32 0.7478556, %v1041_v16  ;;  %v1160_v50 = vmul.f32 %v1136_v24, %v1011_v49  ;;  %v3543_v17 = vadd.f32 %v536_v62, %v3462_v25  ;;  %2952 = vpow2.f32 %v1255_v43 }
  0xcb   : > { %v972_v52 = vadd.f32 %v2943_v2, %v971_v35  ;;  %v1249_v18 = vmul.f32 1.442695, %v1206_v60  ;;  %v3546_v21 = vadd.f32 %v536_v62, %v3468_v32  ;;  %2954 = vrcp.f32 %v3539_v63  ;;  %v457_v35 = vpop.permute.xlu0 %456 }
  0xcc   : > { %v1090_v42 = vadd.f32 -0.0958798, %v1066_v30  ;;  %v1280_v13 = vmul.f32 %v2945_v14, %v1160_v50  ;;  %v3552_v27 = vmul.f32 0.5, %v3444_v4  ;;  %v1179_v14 = vsub.f32 0.0, %v627_v48 }
  0xcd   : > { %v976_v57 = vsel %vm975_vm10, %v2943_v2, %v972_v52  ;;  %v3548_v2 = vpop.permute.xlu2 %525  ;;  %2956 = vpow2.f32 %v1247_v41  ;;  %v3560_v33 = vmul.f32 0.70710677, %v3543_v17  ;;  %v3563_v4 = vmul.f32 0.70710677, %v3546_v21 }
  0xce   : > { %v1114_v56 = vmul.f32 %v1090_v42, %v1041_v16  ;;  %v981_v3 = vsel %vm978_vm11, %v980_v58, %v976_v57  ;;  %v2949_v22 = vpop.eup %2948  ;;  %v1304_v30 = vsub.f32 1.0, %v1280_v13  ;;  %2958 = vpow2.f32 %v1249_v18  ;;  %v409_v58 = vld [vmem:[%s3308_s23 + $0x70] sm:$0xff] }
  0xcf   : > { %v1062_v15 = vmul.f32 0.7478556, %v981_v3  ;;  %v2951_v29 = vpop.eup %2950  ;;  %v939_v32 = vmul.f32 %v2949_v22, %v3527_v38  ;;  %4928 = vst [vmem:[#allocation22_spill] sm:$0xff] %v3560_v33  ;;  %v1180_v43 = vsub.f32 0.0, %v3516_v20  ;;  %v947_v47 = vand.u32 2147483647, %v3527_v38 }
  0xd0   : > { %v1138_v49 = vadd.f32 0.3480242, %v1114_v56  ;;  %v949_v50 = vand.u32 2147483648, %v3527_v38  ;;  %v1203_v52 = vmul.f32 %v1179_v14, %v627_v48  ;;  %v3570_v56 = vand.u32 2147483647, %v3563_v4  ;;  %v3573_v60 = vpop.eup %2952 }
  0xd1   : > { %v1086_v24 = vadd.f32 -0.0958798, %v1062_v15  ;;  %v940_v42 = vsub.f32 1.0, %v939_v32  ;;  %4929 = vst [vmem:[#allocation23_spill] sm:$0xff] %v3573_v60  ;;  %vm944_vm13 = vweird.f32 %v2949_v22  ;;  %v3575_v41 = vpop.eup %2954  ;;  %v623_v13 = vand.u32 2147483647, %v3560_v33 }
  0xd2   : > { %v1162_v28 = vmul.f32 %v1138_v49, %v1041_v16  ;;  %v3556_v16 = vadd.f32 1.0, %v651_v7  ;;  %v494_v49 = vmul.f32 %v457_v35, %v410_v34  ;;  %v1352_v7 = vsub.f32 0.0, %v1304_v30 }
  0xd3   : > { %v1110_v31 = vmul.f32 %v1086_v24, %v981_v3  ;;  %v941_v57 = vmul.f32 %v2949_v22, %v940_v42  ;;  %v648_v48 = vmul.f32 0.47047, %v3570_v56  ;;  %v3581_v15 = vpop.eup %2956  ;;  %vm943_vm15 = vweird.f32 %v3527_v38  ;;  %v401_v38 = vld [vmem:[%s3308_s23 + $0x30] sm:$0xff] }
  0xd4   : > { %v1282_v36 = vmul.f32 %v2951_v29, %v1162_v28  ;;  %2960 = vrcp.f32 %v3556_v16  ;;  %4930 = vst [vmem:[#allocation24_spill] sm:$0xff] %v3581_v15  ;;  %v493_v24 = vmul.f32 %v457_v35, %v409_v58  ;;  %vm945_vm0 = vmor %vm943_vm15, %vm944_vm13  ;;  %v950_v14 = vor.u32 1.1754944e-38, %v949_v50  ;;  %v2959_v34 = vpop.eup %2958 }
  0xd5   : > { %v1134_v62 = vadd.f32 0.3480242, %v1110_v31  ;;  %v942_v18 = vadd.f32 %v2949_v22, %v941_v57  ;;  %v1204_v29 = vmul.f32 %v1180_v43, %v3516_v20  ;;  %v1243_v32 = vmul.f32 1.442695, %v1203_v52  ;;  %v437_v35 = vpop.permute.xlu2 %436 }
  0xd6   : > { %v1306_v28 = vsub.f32 1.0, %v1282_v36  ;;  %v3585_v31 = vadd.f32 1.0, %v648_v48  ;;  %vm948_vm1 = vcmp.eq.f32.partialorder %v947_v47, 8.507059e+37  ;;  %v3588_v10 = vadd.f32 %v3521_v26, %v494_v49  ;;  %v402_v49 = vld [vmem:[%s3308_s23 + $0x38] sm:$0xff]  ;;  %v3620_v48 = vpop.permute.xlu0 %441 }
  0xd7   : > { %v1158_v42 = vmul.f32 %v1134_v62, %v981_v3  ;;  %v946_v25 = vsel %vm945_vm0, %v2949_v22, %v942_v18  ;;  %v1376_v36 = vsel %vm1328_vm12, %v1304_v30, %v1352_v7  ;;  %v647_v50 = vmul.f32 0.47047, %v623_v13 }
  0xd8   : > { %v3592_v57 = vsel %vm948_vm1, %v950_v14, %v946_v25  ;;  %2962 = vrcp.f32 %v3585_v31  ;;  %v1354_v20 = vsub.f32 0.0, %v1306_v28  ;;  %v1175_v3 = vsub.f32 0.0, %v623_v13 }
  0xd9   : > { %v1060_v43 = vmul.f32 0.7478556, %v3592_v57  ;;  %v3598_v22 = vadd.f32 %v3521_v26, %v493_v24  ;;  %v3604_v46 = vmul.f32 %v3575_v41, %v3539_v63  ;;  %v1245_v25 = vmul.f32 1.442695, %v1204_v29 }
  0xda   : > { %v3600_v47 = vpop.eup %2960  ;;  %v3607_v30 = vmul.f32 0.5, %v3493_v59  ;;  %v3610_v52 = vmul.f32 0.5, %v3497_v1  ;;  %v3612_v58 = vmul.f32 %v2959_v34, %v1158_v42  ;;  %v3615_v7 = vmul.f32 %v437_v35, %v401_v38 }
  0xdb   : > { %v1084_v62 = vadd.f32 -0.0958798, %v1060_v43  ;;  %v3618_v26 = vmul.f32 0.70710677, %v3588_v10  ;;  %v1424_v18 = vadd.f32 1.0, %v1376_v36  ;;  %2964 = vpow2.f32 %v1243_v32 }
  0xdc   : > { %4931 = vst [vmem:[#allocation25_spill] sm:$0xff] %v3607_v30  ;;  %v3622_v24 = vadd.f32 1.0, %v647_v50  ;;  %v1176_v59 = vsub.f32 0.0, %v3570_v56  ;;  %v1378_v1 = vsel %vm1330_vm14, %v1306_v28, %v1354_v20  ;;  %v1199_v14 = vmul.f32 %v1175_v3, %v623_v13  ;;  %v404_v30 = vld [vmem:[%s3308_s23 + $0x48] sm:$0xff] }
  0xdd   : > { %v3628_v29 = vmul.f32 0.70710677, %v3598_v22  ;;  %v3631_v34 = vand.u32 2147483647, %v3618_v26  ;;  %v3637_v32 = vmul.f32 %v3600_v47, %v3556_v16  ;;  %2966 = vpow2.f32 %v1245_v25 }
  0xde   : > { %4932 = vst [vmem:[#allocation26_spill] sm:$0xff] %v3622_v24  ;;  %v2963_v42 = vpop.eup %2962  ;;  %v3639_v36 = vmul.f32 %v437_v35, %v402_v49  ;;  %v1302_v61 = vsub.f32 1.0, %v3612_v58  ;;  %v1108_v13 = vmul.f32 %v1084_v62, %v3592_v57  ;;  %v3645_v50 = vmul.f32 0.5, %v3543_v17  ;;  %v531_v15 = vpop.permute.xlu0 %530 }
  0xdf   : > { %4933 = vst [vmem:[#allocation27_spill] sm:$0xff] %v3628_v29  ;;  %v879_v28 = vmul.f32 %v2963_v42, %v3585_v31  ;;  %v3648_v20 = vmul.f32 %v1424_v18, %v3475_v39  ;;  %v1426_v43 = vadd.f32 1.0, %v1378_v1  ;;  %2968 = vrcp.f32 %v3622_v24 }
  0xe0   : > { %4934 = vst [vmem:[#allocation28_spill] sm:$0xff] %v3645_v50  ;;  %v650_v35 = vmul.f32 0.47047, %v3631_v34  ;;  %v1200_v25 = vmul.f32 %v1176_v59, %v3570_v56  ;;  %v1235_v58 = vmul.f32 1.442695, %v1199_v14  ;;  %v889_v18 = vand.u32 2147483648, %v3585_v31  ;;  %v447_v14 = vpop.permute.xlu1 %446 }
  0xe1   : > { %4935 = vst [vmem:[#allocation29_spill] sm:$0xff] %v3648_v20  ;;  %v880_v3 = vsub.f32 1.0, %v879_v28  ;;  %v3654_v62 = vand.u32 2147483647, %v3628_v29  ;;  %v3656_v49 = vpop.eup %2964  ;;  %v887_v39 = vand.u32 2147483647, %v3585_v31  ;;  %vm884_vm3 = vweird.f32 %v2963_v42 }
  0xe2   : > { %4936 = vst [vmem:[#allocation30_spill] sm:$0xff] %v3656_v49  ;;  %v3661_v1 = vadd.f32 1.0, %v650_v35  ;;  %v1350_v38 = vsub.f32 0.0, %v1302_v61  ;;  %v1132_v50 = vadd.f32 0.3480242, %v1108_v13  ;;  %v405_v56 = vld [vmem:[%s3308_s23 + $0x50] sm:$0xff]  ;;  %v3666_v33 = vmul.f32 %v1426_v43, %v3487_v53 }
  0xe3   : > { %v881_v28 = vmul.f32 %v2963_v42, %v880_v3  ;;  %v406_v59 = vld [vmem:[%s3308_s23 + $0x58] sm:$0xff]  ;;  %v2967_v29 = vpop.eup %2966  ;;  %vm883_vm4 = vweird.f32 %v3585_v31  ;;  %v3670_v17 = vmul.f32 0.5, %v3546_v21  ;;  %v403_v35 = vld [vmem:[%s3308_s23 + $0x40] sm:$0xff]  ;;  %v1237_v13 = vmul.f32 1.442695, %v1200_v25 }
  0xe4   : > { %4937 = vst [vmem:[#allocation31_spill] sm:$0xff] %v3666_v33  ;;  %2970 = vrcp.f32 %v3661_v1  ;;  %v649_v3 = vmul.f32 0.47047, %v3654_v62  ;;  %vm885_vm5 = vmor %vm883_vm4, %vm884_vm3  ;;  %vm888_vm6 = vcmp.eq.f32.partialorder %v887_v39, 8.507059e+37  ;;  %v890_v53 = vor.u32 1.1754944e-38, %v889_v18 }
  0xe5   : > { %v882_v8 = vadd.f32 %v2963_v42, %v881_v28  ;;  %2972 = vpow2.f32 %v1235_v58  ;;  %v3676_v44 = vpop.eup %2968  ;;  %v489_v31 = vmul.f32 %v447_v14, %v405_v56  ;;  %v490_v43 = vmul.f32 %v447_v14, %v406_v59 }
  0xe6   : > { %4938 = vst [vmem:[#allocation32_spill] sm:$0xff] %v3676_v44  ;;  %v1374_v21 = vsel %vm1326_vm2, %v1302_v61, %v1350_v38  ;;  %v1156_v33 = vmul.f32 %v1132_v50, %v3592_v57  ;;  %v487_v25 = vmul.f32 %v3620_v48, %v403_v35  ;;  %v488_v20 = vmul.f32 %v3620_v48, %v404_v30 }
  0xe7   : > { %v886_v28 = vsel %vm885_vm5, %v2963_v42, %v882_v8  ;;  %v3684_v45 = vadd.f32 %v531_v15, %v489_v31  ;;  %v3686_v49 = vadd.f32 %v531_v15, %v490_v43  ;;  %2974 = vpow2.f32 %v1237_v13 }
  0xe8   : > { %v891_v58 = vsel %vm888_vm6, %v890_v53, %v886_v28  ;;  %v3688_v39 = vadd.f32 1.0, %v649_v3  ;;  %v3691_v18 = vadd.f32 %v3548_v2, %v487_v25  ;;  %v1422_v38 = vadd.f32 1.0, %v1374_v21 }
  0xe9   : > { %v1056_v37 = vmul.f32 0.7478556, %v891_v58  ;;  %v3695_v8 = vmul.f32 %v3676_v44, %v3622_v24  ;;  %v1177_v57 = vsub.f32 0.0, %v3654_v62  ;;  %v3699_v30 = vadd.f32 %v3548_v2, %v488_v20  ;;  %v396_v24 = vld [vmem:[%s3308_s23 + $0x8] sm:$0xff] }
  0xea   : > { %4939 = vst [vmem:[#allocation33_spill] sm:$0xff] %v3688_v39  ;;  %v2971_v12 = vpop.eup %2970  ;;  %v3705_v61 = vmul.f32 0.70710677, %v3684_v45  ;;  %v3708_v50 = vmul.f32 0.70710677, %v3686_v49  ;;  %v1276_v56 = vmul.f32 %v2967_v29, %v1156_v33  ;;  %v3711_v59 = vmul.f32 0.5, %v3598_v22 }
  0xeb   : > { %4940 = vst [vmem:[#allocation34_spill] sm:$0xff] %v3695_v8  ;;  %v3701_v15 = vpop.eup %2972  ;;  %v1080_v48 = vadd.f32 -0.0958798, %v1056_v37  ;;  %v909_v42 = vmul.f32 %v2971_v12, %v3661_v1  ;;  %v3714_v14 = vmul.f32 0.70710677, %v3691_v18  ;;  %2976 = vrcp.f32 %v3688_v39 }
  0xec   : > { %4941 = vst [vmem:[#allocation35_spill] sm:$0xff] %v3701_v15  ;;  %v3717_v2 = vmul.f32 0.70710677, %v3699_v30  ;;  %v1178_v35 = vsub.f32 0.0, %v3631_v34  ;;  %vm914_vm7 = vweird.f32 %v2971_v12  ;;  %v917_v13 = vand.u32 2147483647, %v3661_v1 }
  0xed   : > { %4942 = vst [vmem:[#allocation36_spill] sm:$0xff] %v3705_v61  ;;  %v1104_v20 = vmul.f32 %v1080_v48, %v891_v58  ;;  %v910_v37 = vsub.f32 1.0, %v909_v42  ;;  %v919_v33 = vand.u32 2147483648, %v3661_v1  ;;  %v2975_v29 = vpop.eup %2974  ;;  %v3726_v31 = vand.u32 2147483647, %v3705_v61 }
  0xee   : > { %4943 = vst [vmem:[#allocation37_spill] sm:$0xff] %v3711_v59  ;;  %v620_v22 = vand.u32 2147483647, %v3717_v2  ;;  %v3729_v43 = vand.u32 2147483647, %v3708_v50  ;;  %v3732_v21 = vmul.f32 %v1422_v38, %v3552_v27  ;;  %v1300_v28 = vsub.f32 1.0, %v1276_v56 }
  0xef   : > { %4944 = vst [vmem:[#allocation38_spill] sm:$0xff] %v3714_v14  ;;  %v1128_v3 = vadd.f32 0.3480242, %v1104_v20  ;;  %v911_v53 = vmul.f32 %v2971_v12, %v910_v37  ;;  %v619_v25 = vand.u32 2147483647, %v3714_v14  ;;  %vm913_vm9 = vweird.f32 %v3661_v1 }
  0xf0   : > { %4945 = vst [vmem:[#allocation39_spill] sm:$0xff] %v3732_v21  ;;  %v644_v48 = vmul.f32 0.47047, %v620_v22  ;;  %v1202_v20 = vmul.f32 %v1178_v35, %v3631_v34  ;;  %v646_v37 = vmul.f32 0.47047, %v3729_v43  ;;  %vm915_vm10 = vmor %vm913_vm9, %vm914_vm7  ;;  %v920_v61 = vor.u32 1.1754944e-38, %v919_v33 }
  0xf1   : > { %v912_v42 = vadd.f32 %v2971_v12, %v911_v53  ;;  %v1152_v59 = vmul.f32 %v1128_v3, %v891_v58  ;;  %v1201_v27 = vmul.f32 %v1177_v57, %v3654_v62  ;;  %v3742_v56 = vpop.eup %2976  ;;  %vm918_vm11 = vcmp.eq.f32.partialorder %v917_v13, 8.507059e+37  ;;  %v395_v3 = vld [vmem:[%s3308_s23] sm:$0xff]  ;;  %v422_v62 = vpop.permute.xlu2 %421 }
  0xf2   : > { %v3740_v38 = vadd.f32 1.0, %v644_v48  ;;  %4946 = vst [vmem:[#allocation40_spill] sm:$0xff] %v3742_v56  ;;  %v645_v1 = vmul.f32 0.47047, %v3726_v31  ;;  %v3745_v53 = vadd.f32 1.0, %v646_v37  ;;  %v1348_v34 = vsub.f32 0.0, %v1300_v28 }
  0xf3   : > { %v916_v14 = vsel %vm915_vm10, %v2971_v12, %v912_v42  ;;  %v643_v15 = vmul.f32 0.47047, %v619_v25  ;;  %v1241_v33 = vmul.f32 1.442695, %v1202_v20  ;;  %v1171_v57 = vsub.f32 0.0, %v619_v25 }
  0xf4   : > { %v921_v58 = vsel %vm918_vm11, %v920_v61, %v916_v14  ;;  %2978 = vrcp.f32 %v3740_v38  ;;  %v1272_v48 = vmul.f32 %v2975_v29, %v1152_v59  ;;  %v1239_v12 = vmul.f32 1.442695, %v1201_v27  ;;  %v432_v27 = vpop.permute.xlu1 %431 }
  0xf5   : > { %v1058_v21 = vmul.f32 0.7478556, %v921_v58  ;;  %v1172_v13 = vsub.f32 0.0, %v620_v22  ;;  %2980 = vrcp.f32 %v3745_v53  ;;  %v3754_v42 = vmul.f32 %v3742_v56, %v3688_v39 }
  0xf6   : > { %v3757_v61 = vmul.f32 0.5, %v3588_v10  ;;  %v3759_v14 = vadd.f32 1.0, %v645_v1  ;;  %v1372_v20 = vsel %vm1324_vm8, %v1300_v28, %v1348_v34  ;;  %v3763_v35 = vmul.f32 %v422_v62, %v395_v3 }
  0xf7   : > { %4947 = vst [vmem:[#allocation41_spill] sm:$0xff] %v3754_v42  ;;  %v1082_v37 = vadd.f32 -0.0958798, %v1058_v21  ;;  %v3765_v59 = vmul.f32 %v422_v62, %v396_v24  ;;  %v3767_v29 = vadd.f32 1.0, %v643_v15  ;;  %vm1320_vm12 = vcmp.ge.f32.partialorder %v3563_v4, 0.0  ;;  %v400_v24 = vld [vmem:[%s3308_s23 + $0x28] sm:$0xff] }
  0xf8   : > { %2982 = vpow2.f32 %v1241_v33  ;;  %v827_v21 = vand.u32 2147483647, %v3740_v38  ;;  %v1195_v10 = vmul.f32 %v1171_v57, %v619_v25  ;;  %v1296_v56 = vsub.f32 1.0, %v1272_v48  ;;  %v399_v48 = vld [vmem:[%s3308_s23 + $0x20] sm:$0xff] }
  0xf9   : > { %v1106_v39 = vmul.f32 %v1082_v37, %v921_v58  ;;  %2984 = vpow2.f32 %v1239_v12  ;;  %v829_v1 = vand.u32 2147483648, %v3740_v38  ;;  %v1196_v9 = vmul.f32 %v1172_v13, %v620_v22 }
  0xfa   : > { %v2979_v28 = vpop.eup %2978  ;;  %v1420_v34 = vadd.f32 1.0, %v1372_v20  ;;  %2986 = vrcp.f32 %v3759_v14  ;;  %vm823_vm13 = vweird.f32 %v3740_v38  ;;  %v3778_v25 = vmul.f32 0.5, %v3691_v18 }
  0xfb   : > { %v1130_v15 = vadd.f32 0.3480242, %v1106_v39  ;;  %v2981_v3 = vpop.eup %2980  ;;  %2988 = vrcp.f32 %v3767_v29  ;;  %v819_v33 = vmul.f32 %v2979_v28, %v3740_v38  ;;  %vm3780_vm14 = vcmp.eq.f32.partialorder %v827_v21, 8.507059e+37 }
  0xfc   : > { %4948 = vst [vmem:[#allocation42_spill] sm:$0xff] %v3778_v25  ;;  %v3784_v57 = vmul.f32 1.442695, %v1195_v10  ;;  %v849_v39 = vmul.f32 %v2981_v3, %v3745_v53  ;;  %v1344_v12 = vsub.f32 0.0, %v1296_v56  ;;  %v830_v37 = vor.u32 1.1754944e-38, %v829_v1 }
  0xfd   : > { %v1154_v62 = vmul.f32 %v1130_v15, %v921_v58  ;;  %v820_v13 = vsub.f32 1.0, %v819_v33  ;;  %v1229_v20 = vmul.f32 1.442695, %v1196_v9  ;;  %v857_v18 = vand.u32 2147483647, %v3745_v53  ;;  %v516_v15 = vpop.permute.xlu0 %515 }
  0xfe   : > { %v2983_v42 = vpop.eup %2982  ;;  %v850_v23 = vsub.f32 1.0, %v849_v39  ;;  %v859_v58 = vand.u32 2147483648, %v3745_v53  ;;  %v1174_v21 = vsub.f32 0.0, %v3729_v43  ;;  %vm824_vm15 = vweird.f32 %v2979_v28 }
  0xff   : > { %v3792_v25 = vpop.eup %2984  ;;  %v3794_v10 = vmul.f32 %v2983_v42, %v1154_v62  ;;  %v821_v60 = vmul.f32 %v2979_v28, %v820_v13  ;;  %v483_v44 = vmul.f32 %v432_v27, %v399_v48  ;;  %vm853_vm0 = vweird.f32 %v3745_v53  ;;  %v521_v62 = vpop.permute.xlu1 %520  ;;  %vm825_vm2 = vmor %vm823_vm13, %vm824_vm15 }
 0x100   : > { %4951 = vst [vmem:[#allocation43_spill] sm:$0xff] %v3792_v25  ;;  %v3796_v33 = vpop.eup %2986  ;;  %v851_v1 = vmul.f32 %v2981_v3, %v850_v23  ;;  %vm854_vm1 = vweird.f32 %v2981_v3  ;;  %v484_v9 = vmul.f32 %v432_v27, %v400_v24  ;;  %v1368_v8 = vsel %vm1320_vm12, %v1296_v56, %v1344_v12 }
 0x101   : > { %v3799_v39 = vpop.eup %2988  ;;  %v822_v11 = vadd.f32 %v2979_v28, %v821_v60  ;;  %v1173_v25 = vsub.f32 0.0, %v3726_v31  ;;  %v3804_v42 = vadd.f32 %v516_v15, %v483_v44  ;;  %vm858_vm3 = vcmp.eq.f32.partialorder %v857_v18, 8.507059e+37  ;;  %vm855_vm4 = vmor %vm853_vm0, %vm854_vm1 }
 0x102   : > { %v852_v48 = vadd.f32 %v2981_v3, %v851_v1  ;;  %v1198_v23 = vmul.f32 %v1174_v21, %v3729_v43  ;;  %v3809_v13 = vadd.f32 %v516_v15, %v484_v9  ;;  %v1298_v27 = vsub.f32 1.0, %v3794_v10 }
 0x103   : > { %v826_v24 = vsel %vm825_vm2, %v2979_v28, %v822_v11  ;;  %v860_v4 = vor.u32 1.1754944e-38, %v859_v58  ;;  %v3816_v44 = vmul.f32 0.70710677, %v3804_v42  ;;  %vm1322_vm5 = vcmp.ge.f32.partialorder %v3618_v26, 0.0 }
 0x104   : > { %v831_v60 = vsel %vm3780_vm14, %v830_v37, %v826_v24  ;;  %v856_v38 = vsel %vm855_vm4, %v2981_v3, %v852_v48  ;;  %v3822_v43 = vmul.f32 0.70710677, %v3809_v13  ;;  %v3825_v56 = vadd.f32 %v521_v62, %v3615_v7 }
 0x105   : > { %4952 = vst [vmem:[#allocation44_spill] sm:$0xff] %v3816_v44  ;;  %v1052_v11 = vmul.f32 0.7478556, %v831_v60  ;;  %v861_v28 = vsel %vm858_vm3, %v860_v4, %v856_v38  ;;  %v615_v53 = vand.u32 2147483647, %v3816_v44  ;;  %v3829_v12 = vadd.f32 %v521_v62, %v3639_v36 }
 0x106   : > { %v3832_v18 = vmul.f32 %v1420_v34, %v3610_v52  ;;  %v1054_v58 = vmul.f32 0.7478556, %v861_v28  ;;  %v1233_v22 = vmul.f32 1.442695, %v1198_v23  ;;  %v616_v3 = vand.u32 2147483647, %v3822_v43 }
 0x107   : > { %v1416_v37 = vadd.f32 1.0, %v1368_v8  ;;  %v1076_v21 = vadd.f32 -0.0958798, %v1052_v11  ;;  %2990 = vpow2.f32 %v1229_v20  ;;  %v639_v15 = vmul.f32 0.47047, %v615_v53 }
 0x108   : > { %v1346_v7 = vsub.f32 0.0, %v1298_v27  ;;  %v1078_v10 = vadd.f32 -0.0958798, %v1054_v58  ;;  %v1197_v1 = vmul.f32 %v1173_v25, %v3726_v31  ;;  %v640_v9 = vmul.f32 0.47047, %v616_v3 }
 0x109   : > { %v1100_v48 = vmul.f32 %v1076_v21, %v831_v60  ;;  %v3836_v24 = vadd.f32 1.0, %v639_v15  ;;  %v3839_v36 = vmul.f32 0.70710677, %v3825_v56  ;;  %v3842_v52 = vmul.f32 0.70710677, %v3829_v12 }
 0x10a   : > { %v1102_v34 = vmul.f32 %v1078_v10, %v861_v28  ;;  %2992 = vpow2.f32 %v1233_v22  ;;  %v3844_v8 = vadd.f32 1.0, %v640_v9  ;;  %v1167_v20 = vsub.f32 0.0, %v615_v53 }
 0x10b   : > { %4953 = vst [vmem:[#allocation45_spill] sm:$0xff] %v3836_v24  ;;  %v3848_v62 = vmul.f32 %v3799_v39, %v3767_v29  ;;  %v1124_v31 = vadd.f32 0.3480242, %v1100_v48  ;;  %v3852_v25 = vmul.f32 %v3796_v33, %v3759_v14  ;;  %v3855_v23 = vand.u32 2147483647, %v3842_v52 }
 0x10c   : > { %4954 = vst [vmem:[#allocation46_spill] sm:$0xff] %v3839_v36  ;;  %v1126_v4 = vadd.f32 0.3480242, %v1102_v34  ;;  %v1231_v38 = vmul.f32 1.442695, %v1197_v1  ;;  %2994 = vrcp.f32 %v3844_v8  ;;  %v1168_v11 = vsub.f32 0.0, %v616_v3 }
 0x10d   : > { %v2991_v58 = vpop.eup %2990  ;;  %v1370_v22 = vsel %vm1322_vm5, %v1298_v27, %v1346_v7  ;;  %v1148_v21 = vmul.f32 %v1124_v31, %v831_v60  ;;  %2996 = vrcp.f32 %v3836_v24  ;;  %v617_v15 = vand.u32 2147483647, %v3839_v36  ;;  %v506_v27 = vpop.permute.xlu1 %505 }
 0x10e   : > { %v3863_v10 = vmul.f32 0.5, %v3699_v30  ;;  %v1150_v9 = vmul.f32 %v1126_v4, %v861_v28  ;;  %v1191_v48 = vmul.f32 %v1167_v20, %v615_v53  ;;  %v642_v34 = vmul.f32 0.47047, %v3855_v23 }
 0x10f   : > { %v3867_v1 = vmul.f32 %v1416_v37, %v3670_v17  ;;  %2998 = vpow2.f32 %v3784_v57  ;;  %v1268_v44 = vmul.f32 %v2991_v58, %v1148_v21  ;;  %v1418_v7 = vadd.f32 1.0, %v1370_v22 }
 0x110   : > { %v2993_v60 = vpop.eup %2992  ;;  %v1192_v36 = vmul.f32 %v1168_v11, %v616_v3  ;;  %v3872_v30 = vadd.f32 1.0, %v642_v34  ;;  %3000 = vpow2.f32 %v1231_v38  ;;  %v3877_v53 = vmul.f32 0.5, %v3684_v45 }
 0x111   : > { %4955 = vst [vmem:[#allocation47_spill] sm:$0xff] %v3867_v1  ;;  %v3874_v28 = vmul.f32 %v2993_v60, %v1150_v9  ;;  %v641_v17 = vmul.f32 0.47047, %v617_v15  ;;  %vm1316_vm6 = vcmp.ge.f32.partialorder %v3717_v2, 0.0  ;;  %v3881_v57 = vmul.f32 0.5, %v3686_v49 }
 0x112   : > { %4956 = vst [vmem:[#allocation48_spill] sm:$0xff] %v3877_v53  ;;  %v2995_v37 = vpop.eup %2994  ;;  %v767_v20 = vand.u32 2147483647, %v3844_v8  ;;  %v1219_v4 = vmul.f32 1.442695, %v1191_v48  ;;  %v3885_v3 = vadd.f32 %v506_v27, %v3763_v35  ;;  %v1292_v38 = vsub.f32 1.0, %v1268_v44 }
 0x113   : > { %v3887_v11 = vpop.eup %2996  ;;  %v759_v58 = vmul.f32 %v2995_v37, %v3844_v8  ;;  %v769_v45 = vand.u32 2147483648, %v3844_v8  ;;  %3002 = vrcp.f32 %v3872_v30  ;;  %v3893_v22 = vmul.f32 %v1418_v7, %v3757_v61 }
 0x114   : > { %4957 = vst [vmem:[#allocation49_spill] sm:$0xff] %v3885_v3  ;;  %v1221_v49 = vmul.f32 1.442695, %v1192_v36  ;;  %v3896_v21 = vmul.f32 0.5, %v3804_v42  ;;  %v1169_v9 = vsub.f32 0.0, %v617_v15  ;;  %v1294_v35 = vsub.f32 1.0, %v3874_v28 }
 0x115   : > { %4958 = vst [vmem:[#allocation50_spill] sm:$0xff] %v3887_v11  ;;  %v3898_v48 = vpop.eup %2998  ;;  %v760_v34 = vsub.f32 1.0, %v759_v58  ;;  %v3902_v44 = vmul.f32 0.5, %v3809_v13  ;;  %v3904_v60 = vadd.f32 1.0, %v641_v17  ;;  %v3908_v26 = vmul.f32 %v3887_v11, %v3836_v24 }
 0x116   : > { %4959 = vst [vmem:[#allocation51_spill] sm:$0xff] %v3893_v22  ;;  %vm763_vm7 = vweird.f32 %v3844_v8  ;;  %vm3911_vm8 = vcmp.eq.f32.partialorder %v767_v20, 8.507059e+37  ;;  %3004 = vpow2.f32 %v1219_v4  ;;  %v3915_v42 = vpop.eup %3000  ;;  %v1340_v36 = vsub.f32 0.0, %v1292_v38  ;;  %v398_v22 = vld [vmem:[%s3308_s23 + $0x18] sm:$0xff] }
 0x117   : > { %4960 = vst [vmem:[#allocation52_spill] sm:$0xff] %v3896_v21  ;;  %vm1318_vm9 = vcmp.ge.f32.partialorder %v3708_v50, 0.0  ;;  %v761_v13 = vmul.f32 %v2995_v37, %v760_v34  ;;  %vm764_vm10 = vweird.f32 %v2995_v37  ;;  %v770_v7 = vor.u32 1.1754944e-38, %v769_v45 }
 0x118   : > { %4961 = vst [vmem:[#allocation53_spill] sm:$0xff] %v3898_v48  ;;  %3006 = vpow2.f32 %v1221_v49  ;;  %v1170_v28 = vsub.f32 0.0, %v3855_v23  ;;  %v1193_v17 = vmul.f32 %v1169_v9, %v617_v15  ;;  %v3920_v58 = vadd.f32 %v506_v27, %v3765_v59  ;;  %vm765_vm12 = vmor %vm763_vm7, %vm764_vm10  ;;  %v397_v27 = vld [vmem:[%s3308_s23 + $0x10] sm:$0xff]  ;;  %v427_v49 = vpop.permute.xlu0 %426  ;;  %s2577_s23 = scalar_lea.sflag [#allocation4], %s3304_s11 }
 0x119   : > { %4964 = vst [vmem:[#allocation54_spill] sm:$0xff] %v3915_v42  ;;  %v3003_v20 = vpop.eup %3002  ;;  %v1342_v31 = vsub.f32 0.0, %v1294_v35  ;;  %v762_v21 = vadd.f32 %v2995_v37, %v761_v13  ;;  %3008 = vrcp.f32 %v3904_v60  ;;  %vm793_vm11 = vweird.f32 %v3872_v30 }
 0x11a   : > { %4965 = vst [vmem:[#allocation55_spill] sm:$0xff] %v3920_v58  ;;  %v789_v45 = vmul.f32 %v3003_v20, %v3872_v30  ;;  %v3929_v15 = vmul.f32 0.70710677, %v3885_v3  ;;  %v3932_v59 = vmul.f32 0.70710677, %v3920_v58  ;;  %v1364_v9 = vsel %vm1316_vm6, %v1292_v38, %v1340_v36  ;;  %v511_v36 = vpop.permute.xlu2 %510 }
 0x11b   : > { %v766_v34 = vsel %vm765_vm12, %v2995_v37, %v762_v21  ;;  %v797_v13 = vand.u32 2147483647, %v3872_v30  ;;  %v799_v8 = vand.u32 2147483648, %v3872_v30  ;;  %v1194_v2 = vmul.f32 %v1170_v28, %v3855_v23 }
 0x11c   : > { %4966 = vst [vmem:[#allocation56_spill] sm:$0xff] %v3929_v15  ;;  %v3939_v4 = vpop.eup %3004  ;;  %v771_v53 = vsel %vm3911_vm8, %v770_v7, %v766_v34  ;;  %v790_v3 = vsub.f32 1.0, %v789_v45  ;;  %v611_v42 = vand.u32 2147483647, %v3929_v15  ;;  %v612_v58 = vand.u32 2147483647, %v3932_v59 }
 0x11d   : > { %4967 = vst [vmem:[#allocation57_spill] sm:$0xff] %v3932_v59  ;;  %v1048_v48 = vmul.f32 0.7478556, %v771_v53  ;;  %v1223_v38 = vmul.f32 1.442695, %v1193_v17  ;;  %v481_v37 = vmul.f32 %v427_v49, %v397_v27  ;;  %vm794_vm13 = vweird.f32 %v3003_v20 }
 0x11e   : > { %4968 = vst [vmem:[#allocation58_spill] sm:$0xff] %v3939_v4  ;;  %v3007_v21 = vpop.eup %3006  ;;  %v791_v1 = vmul.f32 %v3003_v20, %v790_v3  ;;  %v635_v24 = vmul.f32 0.47047, %v611_v42  ;;  %v636_v4 = vmul.f32 0.47047, %v612_v58  ;;  %v1412_v61 = vadd.f32 1.0, %v1364_v9  ;;  %vm795_vm14 = vmor %vm793_vm11, %vm794_vm13 }
 0x11f   : > { %v3947_v11 = vpop.eup %3008  ;;  %v1072_v7 = vadd.f32 -0.0958798, %v1048_v48  ;;  %v482_v45 = vmul.f32 %v427_v49, %v398_v22  ;;  %v3949_v34 = vadd.f32 %v511_v36, %v481_v37  ;;  %v1366_v15 = vsel %vm1318_vm9, %v1294_v35, %v1342_v31 }
 0x120   : > { %v792_v59 = vadd.f32 %v3003_v20, %v791_v1  ;;  %v3953_v23 = vadd.f32 1.0, %v635_v24  ;;  %v3955_v28 = vadd.f32 1.0, %v636_v4  ;;  %vm798_vm15 = vcmp.eq.f32.partialorder %v797_v13, 8.507059e+37 }
 0x121   : > { %4969 = vst [vmem:[#allocation59_spill] sm:$0xff] %v3949_v34  ;;  %v1096_v17 = vmul.f32 %v1072_v7, %v771_v53  ;;  %v800_v3 = vor.u32 1.1754944e-38, %v799_v8  ;;  %v3959_v27 = vadd.f32 %v511_v36, %v482_v45  ;;  %v1163_v22 = vsub.f32 0.0, %v611_v42 }
 0x122   : > { %v796_v48 = vsel %vm795_vm14, %v3003_v20, %v792_v59  ;;  %3010 = vrcp.f32 %v3953_v23  ;;  %v3963_v50 = vmul.f32 0.70710677, %v3949_v34  ;;  %v1164_v31 = vsub.f32 0.0, %v612_v58 }
 0x123   : > { %4970 = vst [vmem:[#allocation60_spill] sm:$0xff] %v3959_v27  ;;  %v1120_v1 = vadd.f32 0.3480242, %v1096_v17  ;;  %v801_v24 = vsel %vm798_vm15, %v800_v3, %v796_v48  ;;  %3012 = vrcp.f32 %v3955_v28  ;;  %v1414_v35 = vadd.f32 1.0, %v1366_v15 }
 0x124   : > { %4971 = vst [vmem:[#allocation61_spill] sm:$0xff] %v3963_v50  ;;  %v3968_v30 = vmul.f32 %v3947_v11, %v3904_v60  ;;  %v1050_v4 = vmul.f32 0.7478556, %v801_v24  ;;  %v1225_v49 = vmul.f32 1.442695, %v1194_v2  ;;  %v3971_v20 = vmul.f32 %v1412_v61, %v3863_v10 }
 0x125   : > { %v1144_v59 = vmul.f32 %v1120_v1, %v771_v53  ;;  %3014 = vpow2.f32 %v1223_v38  ;;  %v3974_v9 = vmul.f32 0.70710677, %v3959_v27  ;;  %v3977_v8 = vmul.f32 0.5, %v3825_v56 }
 0x126   : > { %v1074_v13 = vadd.f32 -0.0958798, %v1050_v4  ;;  %v1187_v37 = vmul.f32 %v1163_v22, %v611_v42  ;;  %v613_v15 = vand.u32 2147483647, %v3963_v50  ;;  %vm1312_vm0 = vcmp.ge.f32.partialorder %v3822_v43, 0.0 }
 0x127   : > { %v1264_v36 = vmul.f32 %v3007_v21, %v1144_v59  ;;  %v3982_v2 = vmul.f32 0.5, %v3829_v12  ;;  %v1188_v10 = vmul.f32 %v1164_v31, %v612_v58  ;;  %v614_v53 = vand.u32 2147483647, %v3974_v9 }
 0x128   : > { %v3985_v38 = vpop.eup %3010  ;;  %v3988_v61 = vmul.f32 %v1414_v35, %v3881_v57  ;;  %v1098_v7 = vmul.f32 %v1074_v13, %v801_v24  ;;  %3016 = vpow2.f32 %v1225_v49  ;;  %v707_v21 = vand.u32 2147483647, %v3955_v28 }
 0x129   : > { %v3013_v42 = vpop.eup %3012  ;;  %v1288_v45 = vsub.f32 1.0, %v1264_v36  ;;  %v709_v17 = vand.u32 2147483648, %v3955_v28  ;;  %v638_v12 = vmul.f32 0.47047, %v614_v53  ;;  %v1211_v48 = vmul.f32 1.442695, %v1187_v37 }
 0x12a   : > { %v1122_v3 = vadd.f32 0.3480242, %v1098_v7  ;;  %v699_v58 = vmul.f32 %v3013_v42, %v3955_v28  ;;  %v637_v22 = vmul.f32 0.47047, %v613_v15  ;;  %v3998_v57 = vmul.f32 %v3985_v38, %v3953_v23 }
 0x12b   : > { %v3994_v1 = vpop.eup %3014  ;;  %v1213_v31 = vmul.f32 1.442695, %v1188_v10  ;;  %v4000_v35 = vadd.f32 1.0, %v638_v12  ;;  %v1165_v4 = vsub.f32 0.0, %v613_v15  ;;  %v1336_v49 = vsub.f32 0.0, %v1288_v45 }
 0x12c   : > { %v700_v59 = vsub.f32 1.0, %v699_v58  ;;  %vm703_vm1 = vweird.f32 %v3955_v28  ;;  %v1166_v13 = vsub.f32 0.0, %v614_v53  ;;  %v1146_v36 = vmul.f32 %v1122_v3, %v801_v24 }
 0x12d   : > { %vm4003_vm2 = vcmp.eq.f32.partialorder %v707_v21, 8.507059e+37  ;;  %v710_v37 = vor.u32 1.1754944e-38, %v709_v17  ;;  %3018 = vrcp.f32 %v4000_v35  ;;  %vm704_vm3 = vweird.f32 %v3013_v42 }
 0x12e   : > { %v3017_v56 = vpop.eup %3016  ;;  %v701_v34 = vmul.f32 %v3013_v42, %v700_v59  ;;  %3020 = vpow2.f32 %v1211_v48  ;;  %v4008_v10 = vadd.f32 1.0, %v637_v22  ;;  %v685_v12 = vsub.f32 1.0, %v3998_v57  ;;  %vm705_vm4 = vmor %vm703_vm1, %vm704_vm3 }
 0x12f   : > { %3022 = vpow2.f32 %v1213_v31  ;;  %v1189_v58 = vmul.f32 %v1165_v4, %v613_v15  ;;  %v4974_v27 = vsub.f32 1.0, %v3505_v6  ;;  %v1360_v21 = vsel %vm1312_vm0, %v1288_v45, %v1336_v49 }
 0x130   : > { %v702_v17 = vadd.f32 %v3013_v42, %v701_v34  ;;  %v737_v3 = vand.u32 2147483647, %v4000_v35  ;;  %v1190_v50 = vmul.f32 %v1166_v13, %v614_v53  ;;  %v4017_v59 = vmul.f32 %v3017_v56, %v1146_v36 }
 0x131   : > { %v986_v24 = vmul.f32 %v3489_v54, %v4974_v27  ;;  %v739_v48 = vand.u32 2147483648, %v4000_v35  ;;  %vm989_vm5 = vweird.f32 %v3489_v54  ;;  %3024 = vrcp.f32 %v4008_v10 }
 0x132   : > { %v706_v6 = vsel %vm705_vm4, %v3013_v42, %v702_v17  ;;  %vm988_vm6 = vweird.f32 %v3458_v19  ;;  %v992_v43 = vand.u32 2147483647, %v3458_v19  ;;  %v1408_v27 = vadd.f32 1.0, %v1360_v21 }
 0x133   : > { %v987_v15 = vadd.f32 %v3489_v54, %v986_v24  ;;  %v3019_v34 = vpop.eup %3018  ;;  %v4029_v53 = vsel %vm4003_vm2, %v710_v37, %v706_v6  ;;  %vm733_vm7 = vweird.f32 %v4000_v35  ;;  %vm4032_vm8 = vmor %vm988_vm6, %vm989_vm5  ;;  %v994_v56 = vand.u32 2147483648, %v3458_v19 }
 0x134   : > { %v4037_v42 = vpop.eup %3020  ;;  %v1044_v45 = vmul.f32 0.7478556, %v4029_v53  ;;  %v729_v22 = vmul.f32 %v3019_v34, %v4000_v35  ;;  %vm4041_vm9 = vcmp.eq.f32.partialorder %v737_v3, 8.507059e+37  ;;  %v1215_v4 = vmul.f32 1.442695, %v1189_v58 }
 0x135   : > { %v991_v49 = vsel %vm4032_vm8, %v3489_v54, %v987_v15  ;;  %v4048_v13 = vpop.eup %3022  ;;  %v1290_v36 = vsub.f32 1.0, %v4017_v59  ;;  %v740_v19 = vor.u32 1.1754944e-38, %v739_v48  ;;  %v4051_v7 = vmul.f32 1.442695, %v1190_v50  ;;  %v4989_v59 = vld [vmem:[#allocation34_spill] sm:$0xff] }
 0x136   : > { %v995_v37 = vor.u32 1.1754944e-38, %v994_v56  ;;  %v1068_v24 = vadd.f32 -0.0958798, %v1044_v45  ;;  %v730_v21 = vsub.f32 1.0, %v729_v22  ;;  %vm993_vm10 = vcmp.eq.f32.partialorder %v992_v43, 8.507059e+37 }
 0x137   : > { %v4979_v17 = vsub.f32 1.0, %v3537_v0  ;;  %vm734_vm11 = vweird.f32 %v3019_v34  ;;  %vm1019_vm12 = vweird.f32 %v3529_v40  ;;  %v1022_v54 = vand.u32 2147483647, %v3491_v55  ;;  %v4058_v15 = vpop.eup %3024 }
 0x138   : > { %v996_v58 = vsel %vm993_vm10, %v995_v37, %v991_v49  ;;  %v731_v6 = vmul.f32 %v3019_v34, %v730_v21  ;;  %vm1018_vm13 = vweird.f32 %v3491_v55  ;;  %v1024_v48 = vand.u32 2147483648, %v3491_v55  ;;  %vm735_vm2 = vmor %vm733_vm7, %vm734_vm11 }
 0x139   : > { %v1016_v3 = vmul.f32 %v3529_v40, %v4979_v17  ;;  %v1092_v43 = vmul.f32 %v1068_v24, %v4029_v53  ;;  %vm4064_vm14 = vmor %vm1018_vm13, %vm1019_vm12  ;;  %vm1023_vm15 = vcmp.eq.f32.partialorder %v1022_v54, 8.507059e+37  ;;  %v1063_v28 = vmul.f32 0.7478556, %v996_v58 }
 0x13a   : > { %v4982_v56 = vsub.f32 1.0, %v3637_v32  ;;  %vm1314_vm0 = vcmp.ge.f32.partialorder %v3842_v52, 0.0  ;;  %v732_v22 = vadd.f32 %v3019_v34, %v731_v6  ;;  %v1025_v55 = vor.u32 1.1754944e-38, %v1024_v48 }
 0x13b   : > { %v1017_v50 = vadd.f32 %v3529_v40, %v1016_v3  ;;  %vm928_vm1 = vweird.f32 %v3556_v16  ;;  %v1087_v37 = vadd.f32 -0.0958798, %v1063_v28  ;;  %vm929_vm3 = vweird.f32 %v3600_v47 }
 0x13c   : > { %v926_v45 = vmul.f32 %v3600_v47, %v4982_v56  ;;  %v932_v32 = vand.u32 2147483647, %v3556_v16  ;;  %v4083_v21 = vmul.f32 %v1408_v27, %v3902_v44  ;;  %v736_v17 = vsel %vm735_vm2, %v3019_v34, %v732_v22  ;;  %vm4085_vm4 = vmor %vm928_vm1, %vm929_vm3 }
 0x13d   : > { %v1021_v49 = vsel %vm4064_vm14, %v3529_v40, %v1017_v50  ;;  %v934_v54 = vand.u32 2147483648, %v3556_v16  ;;  %v741_v35 = vsel %vm4041_vm9, %v740_v19, %v736_v17  ;;  %v1111_v50 = vmul.f32 %v1087_v37, %v996_v58 }
 0x13e   : > { %v927_v24 = vadd.f32 %v3600_v47, %v926_v45  ;;  %v1026_v3 = vsel %vm1023_vm15, %v1025_v55, %v1021_v49  ;;  %v1338_v44 = vsub.f32 0.0, %v1290_v36  ;;  %v1116_v34 = vadd.f32 0.3480242, %v1092_v43 }
 0x13f   : > { %v1065_v6 = vmul.f32 0.7478556, %v1026_v3  ;;  %v1046_v27 = vmul.f32 0.7478556, %v741_v35  ;;  %v935_v0 = vor.u32 1.1754944e-38, %v934_v54  ;;  %vm933_vm5 = vcmp.eq.f32.partialorder %v932_v32, 8.507059e+37 }
 0x140   : > { %v931_v48 = vsel %vm4085_vm4, %v3600_v47, %v927_v24  ;;  %v1135_v56 = vadd.f32 0.3480242, %v1111_v50  ;;  %v4985_v16 = vsub.f32 1.0, %v3604_v46  ;;  %vm1327_vm6 = vcmp.ge.f32.partialorder %v3431_v51, 0.0  ;;  %v4995_v51 = vld [vmem:[#allocation17_spill] sm:$0xff] }
 0x141   : > { %v1089_v28 = vadd.f32 -0.0958798, %v1065_v6  ;;  %v1070_v19 = vadd.f32 -0.0958798, %v1046_v27  ;;  %v936_v45 = vsel %vm933_vm5, %v935_v0, %v931_v48  ;;  %vm958_vm7 = vweird.f32 %v3539_v63 }
 0x142   : > { %v956_v31 = vmul.f32 %v3575_v41, %v4985_v16  ;;  %vm959_vm8 = vweird.f32 %v3575_v41  ;;  %v1159_v22 = vmul.f32 %v1135_v56, %v996_v58  ;;  %v962_v49 = vand.u32 2147483647, %v3539_v63 }
 0x143   : > { %v1113_v47 = vmul.f32 %v1089_v28, %v1026_v3  ;;  %v1094_v55 = vmul.f32 %v1070_v19, %v741_v35  ;;  %3026 = vpow2.f32 %v1215_v4  ;;  %vm4105_vm9 = vmor %vm958_vm7, %vm959_vm8  ;;  %v964_v37 = vand.u32 2147483648, %v3539_v63  ;;  %v4988_v4 = vld [vmem:[#allocation16_spill] sm:$0xff] }
 0x144   : > { %v957_v43 = vadd.f32 %v3575_v41, %v956_v31  ;;  %v1059_v24 = vmul.f32 0.7478556, %v936_v45  ;;  %v1362_v32 = vsel %vm1314_vm0, %v1290_v36, %v1338_v44  ;;  %v1279_v58 = vmul.f32 %v3501_v5, %v1159_v22  ;;  %v4991_v36 = vld [vmem:[#allocation32_spill] sm:$0xff] }
 0x145   : > { %v1137_v17 = vadd.f32 0.3480242, %v1113_v47  ;;  %vm1329_vm10 = vcmp.ge.f32.partialorder %v4988_v4, 0.0  ;;  %v1140_v54 = vmul.f32 %v1116_v34, %v4029_v53  ;;  %v1118_v6 = vadd.f32 0.3480242, %v1094_v55  ;;  %v4992_v53 = vld [vmem:[#allocation23_spill] sm:$0xff] }
 0x146   : > { %v961_v40 = vsel %vm4105_vm9, %v3575_v41, %v957_v43  ;;  %v965_v50 = vor.u32 1.1754944e-38, %v964_v37  ;;  %v1083_v63 = vadd.f32 -0.0958798, %v1059_v24  ;;  %v1303_v27 = vsub.f32 1.0, %v1279_v58  ;;  %v4993_v43 = vld [vmem:[#allocation21_spill] sm:$0xff]  ;;  %v5005_v4 = vld [vmem:[#allocation19_spill] sm:$0xff] }
 0x147   : > { %v1161_v48 = vmul.f32 %v1137_v17, %v1026_v3  ;;  %vm963_vm11 = vcmp.eq.f32.partialorder %v962_v49, 8.507059e+37  ;;  %v4990_v52 = vsub.f32 1.0, %v4989_v59  ;;  %v4125_v5 = vmul.f32 %v4058_v15, %v4008_v10  ;;  %v5001_v59 = vld [vmem:[#allocation40_spill] sm:$0xff] }
 0x148   : > { %3028 = vpow2.f32 %v4051_v7  ;;  %v966_v41 = vsel %vm963_vm11, %v965_v50, %v961_v40  ;;  %v1107_v0 = vmul.f32 %v1083_v63, %v936_v45  ;;  %v4128_v28 = vadd.f32 1.0, %v1362_v32  ;;  %v4994_v32 = vld [vmem:[#allocation26_spill] sm:$0xff] }
 0x149   : > { %v866_v44 = vmul.f32 %v4991_v36, %v4990_v52  ;;  %v1281_v34 = vmul.f32 %v4992_v53, %v1161_v48  ;;  %v1351_v56 = vsub.f32 0.0, %v1303_v27  ;;  %v1061_v3 = vmul.f32 0.7478556, %v966_v41  ;;  %v4131_v16 = vpop.eup %3026  ;;  %v4996_v50 = vld [vmem:[#allocation30_spill] sm:$0xff] }
 0x14a   : > { %v4134_v31 = vmul.f32 %v4048_v13, %v1140_v54  ;;  %v1142_v19 = vmul.f32 %v1118_v6, %v741_v35  ;;  %v1131_v47 = vadd.f32 0.3480242, %v1107_v0  ;;  %vm1323_vm12 = vcmp.ge.f32.partialorder %v4993_v43, 0.0 }
 0x14b   : > { %v867_v22 = vadd.f32 %v4991_v36, %v866_v44  ;;  %v1305_v7 = vsub.f32 1.0, %v1281_v34  ;;  %v1375_v49 = vsel %vm1327_vm6, %v1303_v27, %v1351_v56  ;;  %v1085_v55 = vadd.f32 -0.0958798, %v1061_v3  ;;  %v5002_v56 = vld [vmem:[#allocation18_spill] sm:$0xff] }
 0x14c   : > { %vm869_vm13 = vweird.f32 %v4991_v36  ;;  %v715_v46 = vsub.f32 1.0, %v4125_v5  ;;  %v1423_v37 = vadd.f32 1.0, %v1375_v49  ;;  %v1155_v24 = vmul.f32 %v1131_v47, %v936_v45  ;;  %v4999_v45 = vld [vmem:[#allocation41_spill] sm:$0xff] }
 0x14d   : > { %v872_v13 = vand.u32 2147483647, %v4994_v32  ;;  %v1353_v17 = vsub.f32 0.0, %v1305_v7  ;;  %v1109_v35 = vmul.f32 %v1085_v55, %v966_v41  ;;  %vm868_vm14 = vweird.f32 %v4994_v32  ;;  %v5003_v47 = vld [vmem:[#allocation29_spill] sm:$0xff] }
 0x14e   : > { %v874_v58 = vand.u32 2147483648, %v4994_v32  ;;  %v3029_v40 = vpop.eup %3028  ;;  %v1284_v54 = vsub.f32 1.0, %v4134_v31  ;;  %v1447_v6 = vmul.f32 %v1423_v37, %v4995_v51  ;;  %v1275_v63 = vmul.f32 %v4996_v50, %v1155_v24  ;;  %vm4148_vm15 = vmor %vm868_vm14, %vm869_vm13  ;;  %v5004_v32 = vld [vmem:[#allocation33_spill] sm:$0xff] }
 0x14f   : > { %v5000_v27 = vsub.f32 1.0, %v4999_v45  ;;  %v4155_v44 = vmul.f32 %v3029_v40, %v1142_v19  ;;  %v1377_v0 = vsel %vm1329_vm10, %v1305_v7, %v1353_v17  ;;  %v1133_v53 = vadd.f32 0.3480242, %v1109_v35  ;;  %v5006_v35 = vld [vmem:[#allocation24_spill] sm:$0xff] }
 0x150   : > { %v871_v34 = vsel %vm4148_vm15, %v4991_v36, %v867_v22  ;;  %vm1325_vm0 = vcmp.ge.f32.partialorder %v5002_v56, 0.0  ;;  %v1425_v3 = vadd.f32 1.0, %v1377_v0  ;;  %v4164_v49 = vpack.c.bf16 %v5003_v47, %v1447_v6 }
 0x151   : > { %v896_v52 = vmul.f32 %v5001_v59, %v5000_v27  ;;  %v1299_v55 = vsub.f32 1.0, %v1275_v63  ;;  %vm873_vm1 = vcmp.eq.f32.partialorder %v872_v13, 8.507059e+37  ;;  %v1157_v37 = vmul.f32 %v1133_v53, %v966_v41  ;;  %v5007_v41 = vld [vmem:[#allocation31_spill] sm:$0xff] }
 0x152   : > { %v875_v24 = vor.u32 1.1754944e-38, %v874_v58  ;;  %vm898_vm2 = vweird.f32 %v5004_v32  ;;  %v1449_v7 = vmul.f32 %v1425_v3, %v5005_v4  ;;  %v1483_v17 = vunpack.c.l.bf16 %v4164_v49 }
 0x153   : > { %v897_v19 = vadd.f32 %v5001_v59, %v896_v52  ;;  %v1484_v36 = vunpack.c.h.bf16 %v4164_v49  ;;  %v1347_v22 = vsub.f32 0.0, %v1299_v55  ;;  %v1277_v40 = vmul.f32 %v5006_v35, %v1157_v37 }
 0x154   : > { %v876_v51 = vsel %vm873_vm1, %v875_v24, %v871_v34  ;;  %vm899_vm3 = vweird.f32 %v5001_v59  ;;  %v902_v13 = vand.u32 2147483647, %v5004_v32  ;;  %v4175_v58 = vpack.c.bf16 %v5007_v41, %v1449_v7 }
 0x155   : > { %v1507_v50 = vsub.f32 %v1447_v6, %v1483_v17  ;;  %v1508_v63 = vsub.f32 %v5003_v47, %v1484_v36  ;;  %v1371_v48 = vsel %vm1323_vm12, %v1299_v55, %v1347_v22  ;;  %vm4180_vm4 = vmor %vm898_vm2, %vm899_vm3  ;;  %v1301_v27 = vsub.f32 1.0, %v1277_v40  ;;  %v5012_v55 = vld [vmem:[#allocation25_spill] sm:$0xff] }
 0x156   : > { %v1419_v52 = vadd.f32 1.0, %v1371_v48  ;;  %v901_v0 = vsel %vm4180_vm4, %v5001_v59, %v897_v19  ;;  %vm4187_vm5 = vcmp.eq.f32.partialorder %v902_v13, 8.507059e+37  ;;  %v1485_v6 = vunpack.c.l.bf16 %v4175_v58 }
 0x157   : > { %v1486_v34 = vunpack.c.h.bf16 %v4175_v58  ;;  %v904_v43 = vand.u32 2147483648, %v5004_v32  ;;  %v1055_v3 = vmul.f32 0.7478556, %v876_v51  ;;  %v1349_v47 = vsub.f32 0.0, %v1301_v27 }
 0x158   : > { %v1443_v37 = vmul.f32 %v1419_v52, %v5012_v55  ;;  %v5013_v24 = vsub.f32 1.0, %v3848_v62  ;;  %vm808_vm6 = vweird.f32 %v3767_v29  ;;  %v1509_v59 = vsub.f32 %v1449_v7, %v1485_v6  ;;  %v5018_v55 = vld [vmem:[#allocation39_spill] sm:$0xff] }
 0x159   : > { %v1510_v19 = vsub.f32 %v5007_v41, %v1486_v34  ;;  %v905_v17 = vor.u32 1.1754944e-38, %v904_v43  ;;  %v1079_v36 = vadd.f32 -0.0958798, %v1055_v3  ;;  %v1373_v22 = vsel %vm1325_vm0, %v1301_v27, %v1349_v47  ;;  %v5017_v47 = vld [vmem:[#allocation22_spill] sm:$0xff] }
 0x15a   : > { %v806_v4 = vmul.f32 %v3799_v39, %v5013_v24  ;;  %v4203_v32 = vpack.c.bf16 %v3832_v18, %v1443_v37  ;;  %vm809_vm7 = vweird.f32 %v3799_v39  ;;  %v1521_v62 = vpack.c.bf16 %v1509_v59, %v1507_v50  ;;  %v5016_v50 = vld [vmem:[#allocation20_spill] sm:$0xff] }
 0x15b   : > { %v1522_v40 = vpack.c.bf16 %v1510_v19, %v1508_v63  ;;  %v1421_v13 = vadd.f32 1.0, %v1373_v22  ;;  %v906_v7 = vsel %vm4187_vm5, %v905_v17, %v901_v0  ;;  %v1103_v56 = vmul.f32 %v1079_v36, %v876_v51  ;;  %vm4213_vm8 = vmor %vm808_vm6, %vm809_vm7 }
 0x15c   : > { %v807_v35 = vadd.f32 %v3799_v39, %v806_v4  ;;  %v1479_v41 = vunpack.c.l.bf16 %v4203_v32  ;;  %v1480_v48 = vunpack.c.h.bf16 %v4203_v32  ;;  %v1057_v45 = vmul.f32 0.7478556, %v906_v7  ;;  %1574 = vmatpush.bf16.msra.mxu0 %v1521_v62  ;;  %2828 = vmatpush.bf16.msra.mxu2 %v1521_v62 }
 0x15d   : > { %v1445_v63 = vmul.f32 %v1421_v13, %v5016_v50  ;;  %v812_v0 = vand.u32 2147483647, %v3767_v29  ;;  %v814_v53 = vand.u32 2147483648, %v3767_v29  ;;  %1613 = vmatpush.bf16.msra.mxu1 %v1522_v40  ;;  %2834 = vmatpush.bf16.msra.mxu3 %v1522_v40  ;;  %v1127_v3 = vadd.f32 0.3480242, %v1103_v56  ;;  %v5023_v13 = vld [vmem:[#allocation27_spill] sm:$0xff] }
 0x15e   : > { %v811_v52 = vsel %vm4213_vm8, %v3799_v39, %v807_v35  ;;  %v1503_v6 = vsub.f32 %v1443_v37, %v1479_v41  ;;  %v1504_v34 = vsub.f32 %v3832_v18, %v1480_v48  ;;  %v1081_v43 = vadd.f32 -0.0958798, %v1057_v45  ;;  %v5020_v35 = vld [vmem:[#allocation35_spill] sm:$0xff] }
 0x15f   : > { %vm1319_vm9 = vcmp.ge.f32.partialorder %v5017_v47, 0.0  ;;  %v4226_v24 = vpack.c.bf16 %v5018_v55, %v1445_v63  ;;  %vm813_vm10 = vcmp.eq.f32.partialorder %v812_v0, 8.507059e+37  ;;  %v815_v4 = vor.u32 1.1754944e-38, %v814_v53 }
 0x160   : > { %v5019_v39 = vsub.f32 1.0, %v3852_v25  ;;  %v1105_v19 = vmul.f32 %v1081_v43, %v906_v7  ;;  %v1151_v29 = vmul.f32 %v1127_v3, %v876_v51  ;;  %vm838_vm11 = vweird.f32 %v3759_v14 }
 0x161   : > { %vm839_vm12 = vweird.f32 %v3796_v33  ;;  %v1481_v18 = vunpack.c.l.bf16 %v4226_v24  ;;  %v1482_v37 = vunpack.c.h.bf16 %v4226_v24  ;;  %v816_v17 = vsel %vm813_vm10, %v815_v4, %v811_v52 }
 0x162   : > { %v836_v59 = vmul.f32 %v3796_v33, %v5019_v39  ;;  %v1129_v22 = vadd.f32 0.3480242, %v1105_v19  ;;  %v1271_v62 = vmul.f32 %v5020_v35, %v1151_v29  ;;  %vm4237_vm13 = vmor %vm838_vm11, %vm839_vm12  ;;  %v842_v51 = vand.u32 2147483647, %v3759_v14  ;;  %v5026_v39 = vld [vmem:[#allocation43_spill] sm:$0xff]  ;;  %v5027_v19 = vld [vmem:[#allocation45_spill] sm:$0xff] }
 0x163   : > { %v844_v40 = vand.u32 2147483648, %v3759_v14  ;;  %vm1321_vm14 = vcmp.ge.f32.partialorder %v5023_v13, 0.0  ;;  %v1505_v41 = vsub.f32 %v1445_v63, %v1481_v18  ;;  %v1506_v48 = vsub.f32 %v5018_v55, %v1482_v37  ;;  %v5025_v14 = vld [vmem:[#allocation50_spill] sm:$0xff] }
 0x164   : > { %v837_v36 = vadd.f32 %v3796_v33, %v836_v59  ;;  %v1051_v56 = vmul.f32 0.7478556, %v816_v17  ;;  %v1153_v27 = vmul.f32 %v1129_v22, %v906_v7  ;;  %v1295_v50 = vsub.f32 1.0, %v1271_v62 }
 0x165   : > { %vm843_vm15 = vcmp.eq.f32.partialorder %v842_v51, 8.507059e+37  ;;  %v845_v52 = vor.u32 1.1754944e-38, %v844_v40  ;;  %v1519_v0 = vpack.c.bf16 %v1505_v41, %v1503_v6  ;;  %v1520_v53 = vpack.c.bf16 %v1506_v48, %v1504_v34  ;;  %v5031_v41 = vld [vmem:[#allocation38_spill] sm:$0xff]  ;;  %v5032_v48 = vld [vmem:[#allocation28_spill] sm:$0xff] }
 0x166   : > { %v841_v45 = vsel %vm4237_vm13, %v3796_v33, %v837_v36  ;;  %v1075_v43 = vadd.f32 -0.0958798, %v1051_v56  ;;  %v5024_v3 = vsub.f32 1.0, %v3908_v26  ;;  %v1273_v63 = vmul.f32 %v5026_v39, %v1153_v27 }
 0x167   : > { %v1343_v59 = vsub.f32 0.0, %v1295_v50  ;;  %v846_v55 = vsel %vm843_vm15, %v845_v52, %v841_v45  ;;  %vm748_vm0 = vweird.f32 %v5027_v19  ;;  %1575 = vmatpush.bf16.msra.mxu0 %v1519_v0  ;;  %2829 = vmatpush.bf16.msra.mxu2 %v1519_v0  ;;  %vm749_vm1 = vweird.f32 %v5025_v14 }
 0x168   : > { %v746_v4 = vmul.f32 %v5025_v14, %v5024_v3  ;;  %v1053_v33 = vmul.f32 0.7478556, %v846_v55  ;;  %v1099_v7 = vmul.f32 %v1075_v43, %v816_v17  ;;  %1614 = vmatpush.bf16.msra.mxu1 %v1520_v53  ;;  %2835 = vmatpush.bf16.msra.mxu3 %v1520_v53  ;;  %v1297_v6 = vsub.f32 1.0, %v1273_v63  ;;  %vm4257_vm2 = vmor %vm748_vm0, %vm749_vm1 }
 0x169   : > { %v1367_v26 = vsel %vm1319_vm9, %v1295_v50, %v1343_v59  ;;  %v752_v18 = vand.u32 2147483647, %v5027_v19  ;;  %v754_v37 = vand.u32 2147483648, %v5027_v19  ;;  %v5030_v47 = vsub.f32 1.0, %v3968_v30  ;;  %v5033_v30 = vld [vmem:[#allocation47_spill] sm:$0xff] }
 0x16a   : > { %v747_v29 = vadd.f32 %v5025_v14, %v746_v4  ;;  %v1415_v36 = vadd.f32 1.0, %v1367_v26  ;;  %v1077_v22 = vadd.f32 -0.0958798, %v1053_v33  ;;  %v1123_v35 = vadd.f32 0.3480242, %v1099_v7  ;;  %v5038_v33 = vld [vmem:[#allocation37_spill] sm:$0xff] }
 0x16b   : > { %v1345_v25 = vsub.f32 0.0, %v1297_v6  ;;  %vm753_vm3 = vcmp.eq.f32.partialorder %v752_v18, 8.507059e+37  ;;  %v755_v51 = vor.u32 1.1754944e-38, %v754_v37  ;;  %v776_v40 = vmul.f32 %v3947_v11, %v5030_v47 }
 0x16c   : > { %v751_v62 = vsel %vm4257_vm2, %v5025_v14, %v747_v29  ;;  %vm1315_vm4 = vcmp.ge.f32.partialorder %v5031_v41, 0.0  ;;  %v1439_v45 = vmul.f32 %v1415_v36, %v5032_v48  ;;  %v1101_v56 = vmul.f32 %v1077_v22, %v846_v55  ;;  %v5034_v14 = vld [vmem:[#allocation53_spill] sm:$0xff]  ;;  %v5039_v36 = vld [vmem:[#allocation51_spill] sm:$0xff] }
 0x16d   : > { %v1147_v27 = vmul.f32 %v1123_v35, %v816_v17  ;;  %vm778_vm5 = vweird.f32 %v3904_v60  ;;  %v1369_v50 = vsel %vm1321_vm14, %v1297_v6, %v1345_v25  ;;  %v756_v52 = vsel %vm753_vm3, %v755_v51, %v751_v62  ;;  %v5037_v17 = vld [vmem:[#allocation36_spill] sm:$0xff]  ;;  %v5040_v62 = vld [vmem:[#allocation54_spill] sm:$0xff] }
 0x16e   : > { %v777_v0 = vadd.f32 %v3947_v11, %v776_v40  ;;  %vm779_vm6 = vweird.f32 %v3947_v11  ;;  %v1417_v53 = vadd.f32 1.0, %v1369_v50  ;;  %v4277_v43 = vpack.c.bf16 %v5033_v30, %v1439_v45 }
 0x16f   : > { %v1125_v3 = vadd.f32 0.3480242, %v1101_v56  ;;  %v1267_v4 = vmul.f32 %v5034_v14, %v1147_v27  ;;  %vm4280_vm7 = vmor %vm778_vm5, %vm779_vm6  ;;  %vm1317_vm8 = vcmp.ge.f32.partialorder %v5037_v17, 0.0  ;;  %v782_v63 = vand.u32 2147483647, %v3904_v60 }
 0x170   : > { %v781_v13 = vsel %vm4280_vm7, %v3947_v11, %v777_v0  ;;  %v784_v59 = vand.u32 2147483648, %v3904_v60  ;;  %v1047_v19 = vmul.f32 0.7478556, %v756_v52  ;;  %v1441_v7 = vmul.f32 %v1417_v53, %v5038_v33  ;;  %v5041_v53 = vld [vmem:[#allocation44_spill] sm:$0xff] }
 0x171   : > { %v1475_v29 = vunpack.c.l.bf16 %v4277_v43  ;;  %v1476_v6 = vunpack.c.h.bf16 %v4277_v43  ;;  %v1149_v26 = vmul.f32 %v1125_v3, %v846_v55  ;;  %v1291_v34 = vsub.f32 1.0, %v1267_v4 }
 0x172   : > { %vm783_vm9 = vcmp.eq.f32.partialorder %v782_v63, 8.507059e+37  ;;  %v785_v18 = vor.u32 1.1754944e-38, %v784_v59  ;;  %v1071_v37 = vadd.f32 -0.0958798, %v1047_v19  ;;  %v4294_v22 = vpack.c.bf16 %v5039_v36, %v1441_v7  ;;  %v5042_v59 = vld [vmem:[#allocation42_spill] sm:$0xff] }
 0x173   : > { %v1499_v11 = vsub.f32 %v1439_v45, %v1475_v29  ;;  %v1500_v35 = vsub.f32 %v5033_v30, %v1476_v6  ;;  %v1269_v60 = vmul.f32 %v5040_v62, %v1149_v26  ;;  %v1339_v25 = vsub.f32 0.0, %v1291_v34  ;;  %v5045_v6 = vld [vmem:[#allocation58_spill] sm:$0xff] }
 0x174   : > { %v786_v51 = vsel %vm783_vm9, %v785_v18, %v781_v13  ;;  %v1095_v47 = vmul.f32 %v1071_v37, %v756_v52  ;;  %v686_v40 = vmul.f32 %v3985_v38, %v685_v12  ;;  %v1477_v55 = vunpack.c.l.bf16 %v4294_v22  ;;  %v5049_v62 = vld [vmem:[#allocation46_spill] sm:$0xff] }
 0x175   : > { %v1478_v48 = vunpack.c.h.bf16 %v4294_v22  ;;  %v1293_v56 = vsub.f32 1.0, %v1269_v60  ;;  %v1049_v27 = vmul.f32 0.7478556, %v786_v51  ;;  %v1363_v45 = vsel %vm1315_vm4, %v1291_v34, %v1339_v25 }
 0x176   : > { %v1119_v50 = vadd.f32 0.3480242, %v1095_v47  ;;  %v687_v0 = vadd.f32 %v3985_v38, %v686_v40  ;;  %vm688_vm10 = vweird.f32 %v3953_v23  ;;  %vm1311_vm11 = vcmp.ge.f32.partialorder %v5041_v53, 0.0 }
 0x177   : > { %v1501_v30 = vsub.f32 %v1441_v7, %v1477_v55  ;;  %v1502_v57 = vsub.f32 %v5039_v36, %v1478_v48  ;;  %v1341_v12 = vsub.f32 0.0, %v1293_v56  ;;  %v1411_v3 = vadd.f32 1.0, %v1363_v45  ;;  %v5048_v36 = vld [vmem:[#allocation48_spill] sm:$0xff] }
 0x178   : > { %v1073_v14 = vadd.f32 -0.0958798, %v1049_v27  ;;  %v1143_v4 = vmul.f32 %v1119_v50, %v756_v52  ;;  %vm689_vm12 = vweird.f32 %v3985_v38  ;;  %v692_v39 = vand.u32 2147483647, %v3953_v23 }
 0x179   : > { %v1517_v41 = vpack.c.bf16 %v1501_v30, %v1499_v11  ;;  %v1518_v13 = vpack.c.bf16 %v1502_v57, %v1500_v35  ;;  %v1365_v63 = vsel %vm1317_vm8, %v1293_v56, %v1341_v12  ;;  %v1435_v19 = vmul.f32 %v1411_v3, %v5042_v59  ;;  %vm4314_vm13 = vmor %vm688_vm10, %vm689_vm12  ;;  %v5054_v3 = vld [vmem:[#allocation57_spill] sm:$0xff] }
 0x17a   : > { %v1413_v7 = vadd.f32 1.0, %v1365_v63  ;;  %v1097_v29 = vmul.f32 %v1073_v14, %v786_v51  ;;  %v1263_v26 = vmul.f32 %v5045_v6, %v1143_v4  ;;  %v691_v52 = vsel %vm4314_vm13, %v3985_v38, %v687_v0 }
 0x17b   : > { %1576 = vmatpush.bf16.msra.mxu0 %v1517_v41  ;;  %2830 = vmatpush.bf16.msra.mxu2 %v1517_v41  ;;  %v4323_v34 = vpack.c.bf16 %v3971_v20, %v1435_v19  ;;  %vm4325_vm14 = vcmp.eq.f32.partialorder %v692_v39, 8.507059e+37  ;;  %v694_v18 = vand.u32 2147483648, %v3953_v23  ;;  %v716_v37 = vmul.f32 %v4058_v15, %v715_v46  ;;  %v5055_v41 = vld [vmem:[#allocation52_spill] sm:$0xff] }
 0x17c   : > { %1615 = vmatpush.bf16.msra.mxu1 %v1518_v13  ;;  %2836 = vmatpush.bf16.msra.mxu3 %v1518_v13  ;;  %v1437_v11 = vmul.f32 %v1413_v7, %v5048_v36  ;;  %v1121_v38 = vadd.f32 0.3480242, %v1097_v29  ;;  %v1287_v35 = vsub.f32 1.0, %v1263_v26  ;;  %vm718_vm15 = vweird.f32 %v4008_v10 }
 0x17d   : > { %vm1313_vm0 = vcmp.ge.f32.partialorder %v5049_v62, 0.0  ;;  %v1471_v60 = vunpack.c.l.bf16 %v4323_v34  ;;  %v1472_v25 = vunpack.c.h.bf16 %v4323_v34  ;;  %v695_v47 = vor.u32 1.1754944e-38, %v694_v18 }
 0x17e   : > { %v717_v23 = vadd.f32 %v4058_v15, %v716_v37  ;;  %v4340_v5 = vpack.c.bf16 %v3988_v61, %v1437_v11  ;;  %v1145_v46 = vmul.f32 %v1121_v38, %v786_v51  ;;  %v1335_v40 = vsub.f32 0.0, %v1287_v35 }
 0x17f   : > { %vm719_vm1 = vweird.f32 %v4058_v15  ;;  %v1495_v55 = vsub.f32 %v1435_v19, %v1471_v60  ;;  %v1496_v48 = vsub.f32 %v3971_v20, %v1472_v25  ;;  %v696_v56 = vsel %vm4325_vm14, %v695_v47, %v691_v52 }
 0x180   : > { %v722_v27 = vand.u32 2147483647, %v4008_v10  ;;  %v1473_v45 = vunpack.c.l.bf16 %v4340_v5  ;;  %v1474_v50 = vunpack.c.h.bf16 %v4340_v5  ;;  %v1265_v0 = vmul.f32 %v3994_v1, %v1145_v46  ;;  %vm4354_vm2 = vmor %vm718_vm15, %vm719_vm1 }
 0x181   : > { %v1359_v51 = vsel %vm1311_vm11, %v1287_v35, %v1335_v40  ;;  %v721_v57 = vsel %vm4354_vm2, %v4058_v15, %v717_v23  ;;  %v724_v1 = vand.u32 2147483648, %v4008_v10  ;;  %vm1308_vm4 = vcmp.ge.f32.partialorder %v5054_v3, 0.0  ;;  %v5056_v3 = vld [vmem:[#allocation56_spill] sm:$0xff] }
 0x182   : > { %v1407_v20 = vadd.f32 1.0, %v1359_v51  ;;  %vm4361_vm3 = vcmp.eq.f32.partialorder %v722_v27, 8.507059e+37  ;;  %v1497_v53 = vsub.f32 %v1437_v11, %v1473_v45  ;;  %v1498_v14 = vsub.f32 %v3988_v61, %v1474_v50 }
 0x183   : > { %v1289_v4 = vsub.f32 1.0, %v1265_v0  ;;  %v1043_v39 = vmul.f32 0.7478556, %v696_v56  ;;  %v725_v63 = vor.u32 1.1754944e-38, %v724_v1  ;;  %v1682_v59 = vunpack.c.l.b16 %v4164_v49 }
 0x184   : > { %v1431_v13 = vmul.f32 %v1407_v20, %v5055_v41  ;;  %v1684_v15 = vunpack.c.l.b16 %v4175_v58  ;;  %v1515_v19 = vpack.c.bf16 %v1497_v53, %v1495_v55  ;;  %v1516_v33 = vpack.c.bf16 %v1498_v14, %v1496_v48  ;;  %v5057_v53 = vld [vmem:[#allocation55_spill] sm:$0xff] }
 0x185   : > { %v1337_v7 = vsub.f32 0.0, %v1289_v4  ;;  %v1067_v29 = vadd.f32 -0.0958798, %v1043_v39  ;;  %v726_v6 = vsel %vm4361_vm3, %v725_v63, %v721_v57  ;;  %v1683_v26 = vunpack.c.h.b16 %v4164_v49 }
 0x186   : > { %v4372_v10 = vpack.c.bf16 %v4083_v21, %v1431_v13  ;;  %v4376_v61 = vpack.c.b16 %v1684_v15, %v1682_v59  ;;  %1577 = vmatpush.bf16.msra.mxu0 %v1515_v19  ;;  %2831 = vmatpush.bf16.msra.mxu2 %v1515_v19  ;;  %v1045_v17 = vmul.f32 0.7478556, %v726_v6  ;;  %v1685_v37 = vunpack.c.h.b16 %v4175_v58 }
 0x187   : > { %v1361_v52 = vsel %vm1313_vm0, %v1289_v4, %v1337_v7  ;;  %v1091_v18 = vmul.f32 %v1067_v29, %v696_v56  ;;  %v1434_v36 = vmul.f32 %v4128_v28, %v3982_v2  ;;  %v1332_v11 = vsub.f32 0.0, %v1284_v54  ;;  %1616 = vmatpush.bf16.msra.mxu1 %v1516_v33  ;;  %2837 = vmatpush.bf16.msra.mxu3 %v1516_v33  ;;  %v5060_v33 = vld [vmem:[#allocation60_spill] sm:$0xff] }
 0x188   : > { %v1286_v38 = vsub.f32 1.0, %v4155_v44  ;;  %v1409_v49 = vadd.f32 1.0, %v1361_v52  ;;  %v1069_v35 = vadd.f32 -0.0958798, %v1045_v17  ;;  %v4387_v25 = vpack.c.b16 %v1685_v37, %v1683_v26  ;;  %v5061_v26 = vld [vmem:[#allocation59_spill] sm:$0xff] }
 0x189   : > { %v1115_v60 = vadd.f32 0.3480242, %v1091_v18  ;;  %v1678_v62 = vunpack.c.l.b16 %v4203_v32  ;;  %v1467_v58 = vunpack.c.l.bf16 %v4372_v10  ;;  %v1468_v2 = vunpack.c.h.bf16 %v4372_v10 }
 0x18a   : > { %v1433_v47 = vmul.f32 %v1409_v49, %v3977_v8  ;;  %v1680_v28 = vunpack.c.l.b16 %v4226_v24  ;;  %v1093_v23 = vmul.f32 %v1069_v35, %v726_v6  ;;  %v1679_v44 = vunpack.c.h.b16 %v4203_v32 }
 0x18b   : > { %v1139_v46 = vmul.f32 %v1115_v60, %v696_v56  ;;  %v1681_v40 = vunpack.c.h.b16 %v4226_v24  ;;  %v1356_v55 = vsel %vm1308_vm4, %v1284_v54, %v1332_v11  ;;  %v1334_v27 = vsub.f32 0.0, %v1286_v38 }
 0x18c   : > { %v4400_v48 = vpack.c.bf16 %v1434_v36, %v1433_v47  ;;  %v4402_v8 = vpack.c.b16 %v1680_v28, %v1678_v62  ;;  %v1117_v45 = vadd.f32 0.3480242, %v1093_v23  ;;  %v1491_v32 = vsub.f32 %v1431_v13, %v1467_v58 }
 0x18d   : > { %v1259_v50 = vmul.f32 %v4037_v42, %v1139_v46  ;;  %v4405_v0 = vpack.c.b16 %v1681_v40, %v1679_v44  ;;  %v1492_v31 = vsub.f32 %v4083_v21, %v1468_v2  ;;  %v1404_v54 = vadd.f32 1.0, %v1356_v55  ;;  %v5058_v21 = vld [vmem:[#allocation49_spill] sm:$0xff]  ;;  %v4429_v46 = vld [vmem:[%s4852_s3 + $0x18] sm:$0xff]  ;;  %v4434_v44 = vld [vmem:[%s4852_s3] sm:$0xff] }
 0x18e   : > { %v1469_v56 = vunpack.c.l.bf16 %v4400_v48  ;;  %v1470_v24 = vunpack.c.h.bf16 %v4400_v48  ;;  %v1141_v51 = vmul.f32 %v1117_v45, %v726_v6  ;;  %vm1310_vm5 = vcmp.ge.f32.partialorder %v3974_v9, 0.0 }
 0x18f   : > { %v1283_v30 = vsub.f32 1.0, %v1259_v50  ;;  %v1358_v12 = vsel %vm1310_vm5, %v1286_v38, %v1334_v27  ;;  %vm1307_vm6 = vcmp.ge.f32.partialorder %v5056_v3, 0.0  ;;  %v1380_v14 = vmul.f32 0.5, %v5057_v53  ;;  %v2810_v3 = vld [vmem:[%s4852_s3 + $0x10] sm:$0xff]  ;;  %v2814_v53 = vld [vmem:[%s4853_s4] sm:$0xff] }
 0x190   : > { %v1493_v20 = vsub.f32 %v1433_v47, %v1469_v56  ;;  %v1494_v57 = vsub.f32 %v1434_v36, %v1470_v24  ;;  %v1261_v1 = vmul.f32 %v4131_v16, %v1141_v51  ;;  %v1379_v63 = vmul.f32 0.5, %v5058_v21  ;;  %v5059_v16 = vld [vmem:[#allocation61_spill] sm:$0xff] }
 0x191   : > { %v1331_v42 = vsub.f32 0.0, %v1283_v30  ;;  %v1428_v59 = vmul.f32 %v1404_v54, %v1380_v14  ;;  %v1406_v15 = vadd.f32 1.0, %v1358_v12  ;;  %vm1309_vm7 = vcmp.ge.f32.partialorder %v5059_v16, 0.0  ;;  %v2809_v54 = vld [vmem:[%s4852_s3 + $0x8] sm:$0xff] }
 0x192   : > { %v1513_v4 = vpack.c.bf16 %v1493_v20, %v1491_v32  ;;  %v1514_v39 = vpack.c.bf16 %v1494_v57, %v1492_v31  ;;  %v1285_v41 = vsub.f32 1.0, %v1261_v1  ;;  %v1382_v7 = vmul.f32 0.5, %v5060_v33  ;;  %v2815_v14 = vld [vmem:[%s4853_s4 + $0x8] sm:$0xff] }
 0x193   : > { %v1355_v13 = vsel %vm1307_vm6, %v1283_v30, %v1331_v42  ;;  %v1381_v52 = vmul.f32 0.5, %v5061_v26  ;;  %vm1553_vm8 = vcmask 785408   ;;  %v1676_v40 = vunpack.c.l.b16 %v4294_v22  ;;  %v4467_v30 = vld [vmem:[%s4852_s3 + $0x20] sm:$0xff]  ;;  %v2813_v42 = vld [vmem:[%s4852_s3 + $0x28] sm:$0xff] }
 0x194   : > { %1578 = vmatpush.bf16.msra.mxu0 %v1513_v4  ;;  %2832 = vmatpush.bf16.msra.mxu2 %v1513_v4  ;;  %v1403_v9 = vadd.f32 1.0, %v1355_v13  ;;  %v1333_v19 = vsub.f32 0.0, %v1285_v41  ;;  %v1430_v17 = vmul.f32 %v1406_v15, %v1382_v7  ;;  %v1677_v55 = vunpack.c.h.b16 %v4294_v22  ;;  %v2827_v4 = vld [vmem:[%s4855_s6 + $0x38] sm:$0xff]  ;;  %v2825_v21 = vld [vmem:[%s4855_s6 + $0x28] sm:$0xff] }
 0x195   : > { %1617 = vmatpush.bf16.msra.mxu1 %v1514_v39  ;;  %2838 = vmatpush.bf16.msra.mxu3 %v1514_v39  ;;  %v1672_v22 = vunpack.c.l.b16 %v4340_v5  ;;  %v1673_v27 = vunpack.c.h.b16 %v4340_v5  ;;  %v1670_v56 = vunpack.c.l.b16 %v4323_v34  ;;  %v1671_v32 = vunpack.c.h.b16 %v4323_v34  ;;  %v2816_v39 = vld [vmem:[%s4853_s4 + $0x10] sm:$0xff]  ;;  %v2817_v13 = vld [vmem:[%s4853_s4 + $0x18] sm:$0xff] }
 0x196   : > { %v1427_v29 = vmul.f32 %v1403_v9, %v1379_v63  ;;  %v1357_v6 = vsel %vm1309_vm7, %v1285_v41, %v1333_v19  ;;  %v1667_v31 = vunpack.c.h.b16 %v4372_v10  ;;  %v1669_v5 = vunpack.c.h.b16 %v4400_v48  ;;  %v2826_v41 = vld [vmem:[%s4855_s6 + $0x30] sm:$0xff]  ;;  %v2818_v63 = vld [vmem:[%s4853_s4 + $0x20] sm:$0xff]  ;;  %v2823_v15 = vld [vmem:[%s4855_s6 + $0x18] sm:$0xff] }
 0x197   : > { %v1405_v18 = vadd.f32 1.0, %v1357_v6  ;;  %v1690_v24 = vpack.c.b16 %v1672_v22, %v1670_v56  ;;  %v2819_v9 = vld [vmem:[%s4853_s4 + $0x28] sm:$0xff]  ;;  %v2822_v6 = vld [vmem:[%s4855_s6 + $0x10] sm:$0xff]  ;;  %vm2286_vm9 = vcmask 523264   ;;  %vm2563_vm10 = vcmask 1048064  }
 0x198   : > { %v4418_v37 = vpack.c.bf16 %v1428_v59, %v1427_v29  ;;  %v1689_v34 = vpack.c.b16 %v1669_v5, %v1667_v31 }
 0x199   : > { %v1429_v36 = vmul.f32 %v1405_v18, %v1381_v52 }
 0x19a   : > { %v1463_v38 = vunpack.c.l.bf16 %v4418_v37  ;;  %v1464_v49 = vunpack.c.h.bf16 %v4418_v37  ;;  %v1663_v57 = vunpack.c.h.b16 %v4418_v37 }
 0x19b   : > { %v4420_v11 = vpack.c.bf16 %v1430_v17, %v1429_v36 }
 0x19c   : > { %v1487_v62 = vsub.f32 %v1427_v29, %v1463_v38  ;;  %v1488_v58 = vsub.f32 %v1428_v59, %v1464_v49  ;;  %v2824_v59 = vld [vmem:[%s4855_s6 + $0x20] sm:$0xff] }
 0x19d   : > { %v1465_v35 = vunpack.c.l.bf16 %v4420_v11  ;;  %v1466_v60 = vunpack.c.h.bf16 %v4420_v11  ;;  %v1664_v20 = vunpack.c.l.b16 %v4420_v11 }
 0x19f   : > { %v1489_v47 = vsub.f32 %v1429_v36, %v1465_v35  ;;  %v1490_v2 = vsub.f32 %v1430_v17, %v1466_v60 }
 0x1a1   : > { %v1511_v28 = vpack.c.bf16 %v1489_v47, %v1487_v62  ;;  %v1512_v23 = vpack.c.bf16 %v1490_v2, %v1488_v58 }
 0x1a3   : > { %1579 = vmatpush.bf16.msra.mxu0 %v1511_v28  ;;  %2833 = vmatpush.bf16.msra.mxu2 %v1511_v28 }
 0x1a4   : > { %1618 = vmatpush.bf16.msra.mxu1 %v1512_v23  ;;  %2839 = vmatpush.bf16.msra.mxu3 %v1512_v23 }
 0x1a6   : > { %2716 = vmatmul.msk.bf16.vlgmr.msra.gmra.mxu2 %vm1553_vm8, %v4429_v46  ;;  %2713 = vmatmul.msk.bf16.vlgmr.msra.gmra.mxu0 %vm1553_vm8, %v4434_v44 }
 0x1a7   : > { %1712 = vmatpush.bf16.msrb.mxu2 %v4376_v61  ;;  %1838 = vmatpush.bf16.msrb.mxu0 %v4376_v61  ;;  %v1674_v61 = vunpack.c.l.b16 %v4277_v43 }
 0x1a8   : > { %1751 = vmatpush.bf16.msrb.mxu3 %v4387_v25  ;;  %1877 = vmatpush.bf16.msrb.mxu1 %v4387_v25  ;;  %v1675_v25 = vunpack.c.h.b16 %v4277_v43  ;;  %v1691_v43 = vpack.c.b16 %v1673_v27, %v1671_v32 }
 0x1a9   : > { %2719 = vmatmul.msk.bf16.vlgmr.msra.gmra.mxu1 %vm1553_vm8, %v4434_v44  ;;  %2722 = vmatmul.msk.bf16.vlgmr.msra.gmra.mxu3 %vm1553_vm8, %v4429_v46  ;;  %v1692_v45 = vpack.c.b16 %v1676_v40, %v1674_v61 }
 0x1aa   : > { %v1693_v50 = vpack.c.b16 %v1677_v55, %v1675_v25 }
 0x1ab   : > { %1713 = vmatpush.bf16.msrb.mxu2 %v4402_v8  ;;  %1839 = vmatpush.bf16.msrb.mxu0 %v4402_v8  ;;  %v1666_v8 = vunpack.c.l.b16 %v4372_v10  ;;  %v1665_v10 = vunpack.c.h.b16 %v4420_v11 }
 0x1ac   : > { %1752 = vmatpush.bf16.msrb.mxu3 %v4405_v0  ;;  %1878 = vmatpush.bf16.msrb.mxu1 %v4405_v0  ;;  %v1668_v0 = vunpack.c.l.b16 %v4400_v48  ;;  %v1662_v48 = vunpack.c.l.b16 %v4418_v37  ;;  %v2821_v37 = vld [vmem:[%s4855_s6 + $0x8] sm:$0xff] }
 0x1ad   : > { %v1687_v1 = vpack.c.b16 %v1665_v10, %v1663_v57  ;;  %v1946_v57 = vpop.permute.xlu1 %1945 }
 0x1ae   : > { %v1688_v51 = vpack.c.b16 %v1668_v0, %v1666_v8  ;;  %v1686_v12 = vpack.c.b16 %v1664_v20, %v1662_v48  ;;  %v1941_v8 = vpop.permute.xlu0 %1940 }
 0x1af   : > { %1714 = vmatpush.bf16.msrb.mxu2 %v1692_v45  ;;  %1840 = vmatpush.bf16.msrb.mxu0 %v1692_v45 }
 0x1b0   : > { %1753 = vmatpush.bf16.msrb.mxu3 %v1693_v50  ;;  %1879 = vmatpush.bf16.msrb.mxu1 %v1693_v50 }
 0x1b3   : > { %1715 = vmatpush.bf16.msrb.mxu2 %v1690_v24  ;;  %1841 = vmatpush.bf16.msrb.mxu0 %v1690_v24 }
 0x1b4   : > { %1754 = vmatpush.bf16.msrb.mxu3 %v1691_v43  ;;  %1880 = vmatpush.bf16.msrb.mxu1 %v1691_v43 }
 0x1b6   : > { %2717 = vmatmul.msk.bf16.gmra.mxu2 %vm1553_vm8, %v4467_v30  ;;  %2714 = vmatmul.msk.bf16.gmra.mxu0 %vm1553_vm8, %v2809_v54 }
 0x1b7   : > { %1716 = vmatpush.bf16.msrb.mxu2 %v1688_v51  ;;  %1842 = vmatpush.bf16.msrb.mxu0 %v1688_v51 }
 0x1b8   : > { %1755 = vmatpush.bf16.msrb.mxu3 %v1689_v34  ;;  %1881 = vmatpush.bf16.msrb.mxu1 %v1689_v34 }
 0x1b9   : > { %2720 = vmatmul.msk.bf16.gmra.mxu1 %vm1553_vm8, %v2809_v54  ;;  %2723 = vmatmul.msk.bf16.gmra.mxu3 %vm1553_vm8, %v4467_v30 }
 0x1bb   : > { %1717 = vmatpush.bf16.msrb.mxu2 %v1686_v12  ;;  %1843 = vmatpush.bf16.msrb.mxu0 %v1686_v12 }
 0x1bc   : > { %1756 = vmatpush.bf16.msrb.mxu3 %v1687_v1  ;;  %1882 = vmatpush.bf16.msrb.mxu1 %v1687_v1 }
 0x1bf   : > { %2341 = vmatpush.bf16.msra.mxu0 %v2827_v4  ;;  %2112 = vmatpush.bf16.msra.mxu2 %v2827_v4 }
 0x1c0   : > { %2416 = vmatpush.bf16.msra.mxu1 %v2827_v4  ;;  %2187 = vmatpush.bf16.msra.mxu3 %v2827_v4 }
 0x1c3   : > { %2342 = vmatpush.bf16.msra.mxu0 %v2826_v41  ;;  %2113 = vmatpush.bf16.msra.mxu2 %v2826_v41 }
 0x1c4   : > { %2417 = vmatpush.bf16.msra.mxu1 %v2826_v41  ;;  %2188 = vmatpush.bf16.msra.mxu3 %v2826_v41 }
 0x1c6   : > { %2718 = vmatmul.msk.bf16.gmra.mxu2 %vm1553_vm8, %v2813_v42  ;;  %2715 = vmatmul.msk.bf16.gmra.mxu0 %vm1553_vm8, %v2810_v3 }
 0x1c7   : > { %2343 = vmatpush.bf16.msra.mxu0 %v2825_v21  ;;  %2114 = vmatpush.bf16.msra.mxu2 %v2825_v21 }
 0x1c8   : > { %2418 = vmatpush.bf16.msra.mxu1 %v2825_v21  ;;  %2189 = vmatpush.bf16.msra.mxu3 %v2825_v21 }
 0x1c9   : > { %2721 = vmatmul.msk.bf16.gmra.mxu1 %vm1553_vm8, %v2810_v3  ;;  %2724 = vmatmul.msk.bf16.gmra.mxu3 %vm1553_vm8, %v2813_v42 }
 0x1cb   : > { %2344 = vmatpush.bf16.msra.mxu0 %v2824_v59  ;;  %2115 = vmatpush.bf16.msra.mxu2 %v2824_v59 }
 0x1cc   : > { %2419 = vmatpush.bf16.msra.mxu1 %v2824_v59  ;;  %2190 = vmatpush.bf16.msra.mxu3 %v2824_v59 }
 0x1cf   : > { %2345 = vmatpush.bf16.msra.mxu0 %v2823_v15  ;;  %2116 = vmatpush.bf16.msra.mxu2 %v2823_v15 }
 0x1d0   : > { %2420 = vmatpush.bf16.msra.mxu1 %v2823_v15  ;;  %2191 = vmatpush.bf16.msra.mxu3 %v2823_v15 }
 0x1d3   : > { %2346 = vmatpush.bf16.msra.mxu0 %v2822_v6  ;;  %2117 = vmatpush.bf16.msra.mxu2 %v2822_v6 }
 0x1d4   : > { %2421 = vmatpush.bf16.msra.mxu1 %v2822_v6  ;;  %2192 = vmatpush.bf16.msra.mxu3 %v2822_v6 }
 0x1d6   : > { %2725 = vmatmul.msk.bf16.vlgmr.msrb.gmra.mxu2 %vm1553_vm8, %v4434_v44  ;;  %2761 = vmatmul.msk.bf16.vlgmr.msrb.gmra.mxu0 %vm1553_vm8, %v2814_v53 }
 0x1d7   : > { %2347 = vmatpush.bf16.msra.mxu0 %v2821_v37  ;;  %2118 = vmatpush.bf16.msra.mxu2 %v2821_v37 }
 0x1d8   : > { %2422 = vmatpush.bf16.msra.mxu1 %v2821_v37  ;;  %2193 = vmatpush.bf16.msra.mxu3 %v2821_v37 }
 0x1d9   : > { %2767 = vmatmul.msk.bf16.vlgmr.msrb.gmra.mxu1 %vm1553_vm8, %v2814_v53  ;;  %2731 = vmatmul.msk.bf16.vlgmr.msrb.gmra.mxu3 %vm1553_vm8, %v4434_v44  ;;  %v2820_v44 = vld [vmem:[%s4855_s6] sm:$0xff] }
 0x1db   : > { %2348 = vmatpush.bf16.msra.mxu0 %v2820_v44  ;;  %2119 = vmatpush.bf16.msra.mxu2 %v2820_v44 }
 0x1dc   : > { %2423 = vmatpush.bf16.msra.mxu1 %v2820_v44  ;;  %2194 = vmatpush.bf16.msra.mxu3 %v2820_v44 }
 0x1e6   : > { %2726 = vmatmul.msk.bf16.gmra.mxu2 %vm1553_vm8, %v2809_v54  ;;  %2762 = vmatmul.msk.bf16.gmra.mxu0 %vm1553_vm8, %v2815_v14 }
 0x1e9   : > { %2768 = vmatmul.msk.bf16.gmra.mxu1 %vm1553_vm8, %v2815_v14  ;;  %2732 = vmatmul.msk.bf16.gmra.mxu3 %vm1553_vm8, %v2809_v54 }
 0x1f6   : > { %2727 = vmatmul.msk.bf16.gmra.mxu2 %vm1553_vm8, %v2810_v3  ;;  %2763 = vmatmul.msk.bf16.gmra.mxu0 %vm1553_vm8, %v2816_v39 }
 0x1f9   : > { %2769 = vmatmul.msk.bf16.gmra.mxu1 %vm1553_vm8, %v2816_v39  ;;  %2733 = vmatmul.msk.bf16.gmra.mxu3 %vm1553_vm8, %v2810_v3 }
 0x206   : > { %2728 = vmatmul.msk.bf16.gmra.mxu2 %vm1553_vm8, %v4429_v46  ;;  %2764 = vmatmul.msk.bf16.gmra.mxu0 %vm1553_vm8, %v2817_v13 }
 0x209   : > { %2770 = vmatmul.msk.bf16.gmra.mxu1 %vm1553_vm8, %v2817_v13  ;;  %2734 = vmatmul.msk.bf16.gmra.mxu3 %vm1553_vm8, %v4429_v46 }
 0x216   : > { %2729 = vmatmul.msk.bf16.gmra.mxu2 %vm1553_vm8, %v4467_v30  ;;  %2765 = vmatmul.msk.bf16.gmra.mxu0 %vm1553_vm8, %v2818_v63 }
 0x219   : > { %2771 = vmatmul.msk.bf16.gmra.mxu1 %vm1553_vm8, %v2818_v63  ;;  %2735 = vmatmul.msk.bf16.gmra.mxu3 %vm1553_vm8, %v4467_v30 }
 0x223   : > { %v1581_v16 = vpop.f32.mrf.mxu0 }
 0x226   : > { %v1620_v19 = vpop.f32.mrf.mxu1  ;;  %2730 = vmatmul.msk.bf16.gmra.mxu2 %vm1553_vm8, %v2813_v42  ;;  %2766 = vmatmul.msk.bf16.gmra.mxu0 %vm1553_vm8, %v2819_v9 }
 0x229   : > { %2772 = vmatmul.msk.bf16.gmra.mxu1 %vm1553_vm8, %v2819_v9  ;;  %2736 = vmatmul.msk.bf16.gmra.mxu3 %vm1553_vm8, %v2813_v42  ;;  %v4555_v33 = vpop.f32.mrf.mxu2 }
 0x22b   : > { %v1583_v26 = vpop.f32.mrf.mxu0 }
 0x22c   : > { %v4557_v7 = vpop.f32.mrf.mxu3 }
 0x22e   : > { %v1622_v29 = vpop.f32.mrf.mxu1 }
 0x231   : > { %v4562_v52 = vpop.f32.mrf.mxu2 }
 0x233   : > { %v1586_v36 = vpop.f32.mrf.mxu0 }
 0x234   : > { %v4564_v17 = vpop.f32.mrf.mxu3 }
 0x236   : > { %v4566_v18 = vpop.f32.mrf.mxu1 }
 0x239   : > { %v4571_v11 = vpop.f32.mrf.mxu2 }
 0x23b   : > { %v4577_v35 = vpop.f32.mrf.mxu0 }
 0x23c   : > { %v4573_v38 = vpop.f32.mrf.mxu3 }
 0x23e   : > { %v4575_v49 = vpop.f32.mrf.mxu1 }
 0x241   : > { %v4579_v60 = vpop.f32.mrf.mxu2 }
 0x243   : > { %v4585_v58 = vpop.f32.mrf.mxu0 }
 0x244   : > { %v4581_v62 = vpop.f32.mrf.mxu3 }
 0x246   : > { %v4583_v47 = vpop.f32.mrf.mxu1 }
 0x249   : > { %v4587_v2 = vpop.f32.mrf.mxu2 }
 0x24b   : > { %v4593_v46 = vpop.f32.mrf.mxu0 }
 0x24c   : > { %v4589_v28 = vpop.f32.mrf.mxu3 }
 0x24e   : > { %v4591_v23 = vpop.f32.mrf.mxu1 }
 0x251   : > { %v4598_v40 = vpop.f32.mrf.mxu2 }
 0x253   : > { %v1845_v25 = vpop.f32.mrf.mxu0 }
 0x254   : > { %v4600_v55 = vpop.f32.mrf.mxu3 }
 0x256   : > { %v1884_v61 = vpop.f32.mrf.mxu1 }
 0x259   : > { %v1719_v22 = vpop.f32.mrf.mxu2 }
 0x25a   : > { %v1720_v27 = vadd.f32 %v1719_v22, %v1581_v16 }
 0x25b   : > { %v1847_v24 = vpop.f32.mrf.mxu0 }
 0x25c   : > { %v1758_v45 = vpop.f32.mrf.mxu3  ;;  %v1914_v32 = vadd.f32 %v1845_v25, %v1720_v27 }
 0x25d   : > { %v1759_v50 = vadd.f32 %v1758_v45, %v1620_v19 }
 0x25e   : > { %v1886_v56 = vpop.f32.mrf.mxu1  ;;  %v1998_v0 = vadd.f32 %v1941_v8, %v1914_v32  ;;  %v1951_v32 = vpop.permute.xlu2 %1950 }
 0x25f   : > { %v1915_v43 = vadd.f32 %v1884_v61, %v1759_v50 }
 0x260   : > { %v2022_v20 = vpack.c.bf16 %v1998_v0, %v1998_v0 }
 0x261   : > { %v1999_v31 = vadd.f32 %v1941_v8, %v1915_v43  ;;  %v1721_v5 = vpop.f32.mrf.mxu2 }
 0x262   : > { %v1722_v51 = vadd.f32 %v1721_v5, %v1583_v26  ;;  %v2034_v53 = vunpack.c.l.bf16 %v2022_v20  ;;  %v2163_v13 = vunpack.c.l.b16 %v2022_v20 }
 0x263   : > { %v1850_v48 = vpop.f32.mrf.mxu0  ;;  %v2299_v12 = vpack.c.bf16 %v1999_v31, %v1999_v31 }
 0x264   : > { %v1760_v34 = vpop.f32.mrf.mxu3  ;;  %v1916_v10 = vadd.f32 %v1847_v24, %v1722_v51  ;;  %v2046_v26 = vsub.f32 %v1998_v0, %v2034_v53 }
 0x265   : > { %v1761_v30 = vadd.f32 %v1760_v34, %v1622_v29  ;;  %v2311_v4 = vunpack.c.l.bf16 %v2299_v12  ;;  %v2392_v9 = vunpack.c.l.b16 %v2299_v12 }
 0x266   : > { %v1889_v54 = vpop.f32.mrf.mxu1  ;;  %v2000_v42 = vadd.f32 %v1946_v57, %v1916_v10 }
 0x267   : > { %v1917_v1 = vadd.f32 %v1886_v56, %v1761_v30  ;;  %v2323_v22 = vsub.f32 %v1999_v31, %v2311_v4 }
 0x268   : > { %v2023_v14 = vpack.c.bf16 %v2000_v42, %v2000_v42 }
 0x269   : > { %v2001_v3 = vadd.f32 %v1946_v57, %v1917_v1  ;;  %v1724_v41 = vpop.f32.mrf.mxu2 }
 0x26a   : > { %v2035_v21 = vunpack.c.l.bf16 %v2023_v14  ;;  %v2164_v63 = vunpack.c.l.b16 %v2023_v14  ;;  %v1725_v59 = vadd.f32 %v1724_v41, %v1586_v36 }
 0x26b   : > { %v2300_v39 = vpack.c.bf16 %v2001_v3, %v2001_v3  ;;  %v1852_v25 = vpop.f32.mrf.mxu0 }
 0x26c   : > { %v1763_v15 = vpop.f32.mrf.mxu3  ;;  %v2047_v37 = vsub.f32 %v2000_v42, %v2035_v21  ;;  %v1918_v44 = vadd.f32 %v1850_v48, %v1725_v59  ;;  %v2175_v61 = vpack.c.b16 %v2164_v63, %v2163_v13 }
 0x26d   : > { %v2312_v19 = vunpack.c.l.bf16 %v2300_v39  ;;  %v2393_v16 = vunpack.c.l.b16 %v2300_v39  ;;  %v1764_v29 = vadd.f32 %v1763_v15, %v4566_v18 }
 0x26e   : > { %v1891_v6 = vpop.f32.mrf.mxu1  ;;  %v2058_v56 = vpack.c.bf16 %v2047_v37, %v2046_v26  ;;  %2195 = vmatmul.bf16.vlgmr.msra.gmra.mxu3 %v2175_v61  ;;  %v2002_v24 = vadd.f32 %v1951_v32, %v1918_v44  ;;  %v1961_v61 = vpop.permute.xlu1 %1960 }
 0x26f   : > { %v2324_v27 = vsub.f32 %v2001_v3, %v2312_v19  ;;  %v1919_v45 = vadd.f32 %v1889_v54, %v1764_v29  ;;  %v2404_v50 = vpack.c.b16 %v2393_v16, %v2392_v9  ;;  %v1956_v54 = vpop.permute.xlu0 %1955 }
 0x270   : > { %2120 = vmatmul.bf16.vlgmr.msra.gmra.mxu2 %v2058_v56  ;;  %v2024_v31 = vpack.c.bf16 %v2002_v24, %v2002_v24 }
 0x271   : > { %2424 = vmatmul.bf16.vlgmr.msra.gmra.mxu1 %v2404_v50  ;;  %v2335_v36 = vpack.c.bf16 %v2324_v27, %v2323_v22  ;;  %v2003_v43 = vadd.f32 %v1951_v32, %v1919_v45  ;;  %v1726_v18 = vpop.f32.mrf.mxu2 }
 0x272   : > { %v1727_v8 = vadd.f32 %v1726_v18, %v4577_v35  ;;  %v2036_v1 = vunpack.c.l.bf16 %v2024_v31  ;;  %v2165_v4 = vunpack.c.l.b16 %v2024_v31  ;;  %v1966_v18 = vpop.permute.xlu2 %1965 }
 0x273   : > { %2349 = vmatmul.bf16.vlgmr.msra.gmra.mxu0 %v2335_v36  ;;  %v1855_v30 = vpop.f32.mrf.mxu0  ;;  %v2301_v10 = vpack.c.bf16 %v2003_v43, %v2003_v43 }
 0x274   : > { %v1765_v0 = vpop.f32.mrf.mxu3  ;;  %v1920_v34 = vadd.f32 %v1852_v25, %v1727_v8  ;;  %v2048_v19 = vsub.f32 %v2002_v24, %v2036_v1 }
 0x275   : > { %v1766_v5 = vadd.f32 %v1765_v0, %v4575_v49  ;;  %v2313_v53 = vunpack.c.l.bf16 %v2301_v10  ;;  %v2394_v21 = vunpack.c.l.b16 %v2301_v10 }
 0x276   : > { %v1894_v51 = vpop.f32.mrf.mxu1  ;;  %v2004_v48 = vadd.f32 %v1956_v54, %v1920_v34 }
 0x277   : > { %v1921_v20 = vadd.f32 %v1891_v6, %v1766_v5  ;;  %v2325_v37 = vsub.f32 %v2003_v43, %v2313_v53 }
 0x278   : > { %v2025_v12 = vpack.c.bf16 %v2004_v48, %v2004_v48 }
 0x279   : > { %v2005_v57 = vadd.f32 %v1956_v54, %v1921_v20  ;;  %v1729_v42 = vpop.f32.mrf.mxu2 }
 0x27a   : > { %v1730_v14 = vadd.f32 %v1729_v42, %v4585_v58  ;;  %v2166_v39 = vunpack.c.l.b16 %v2025_v12  ;;  %v2037_v49 = vunpack.c.l.bf16 %v2025_v12 }
 0x27b   : > { %v2302_v3 = vpack.c.bf16 %v2005_v57, %v2005_v57  ;;  %v1857_v29 = vpop.f32.mrf.mxu0 }
 0x27c   : > { %v1768_v35 = vpop.f32.mrf.mxu3  ;;  %v1922_v15 = vadd.f32 %v1855_v30, %v1730_v14  ;;  %v2176_v9 = vpack.c.b16 %v2166_v39, %v2165_v4  ;;  %v2049_v16 = vsub.f32 %v2004_v48, %v2037_v49 }
 0x27d   : > { %v1769_v41 = vadd.f32 %v1768_v35, %v4583_v47  ;;  %v2395_v63 = vunpack.c.l.b16 %v2302_v3  ;;  %v2314_v59 = vunpack.c.l.bf16 %v2302_v3 }
 0x27e   : > { %v1896_v13 = vpop.f32.mrf.mxu1  ;;  %2200 = vmatmul.bf16.gmra.mxu3 %v2176_v9  ;;  %v2059_v58 = vpack.c.bf16 %v2049_v16, %v2048_v19  ;;  %v2006_v22 = vadd.f32 %v1961_v61, %v1922_v15 }
 0x27f   : > { %v1923_v6 = vadd.f32 %v1894_v51, %v1769_v41  ;;  %v2405_v26 = vpack.c.b16 %v2395_v63, %v2394_v21  ;;  %v2326_v44 = vsub.f32 %v2005_v57, %v2314_v59  ;;  %v1971_v59 = vpop.permute.xlu0 %1970 }
 0x280   : > { %2125 = vmatmul.bf16.gmra.mxu2 %v2059_v58  ;;  %v2026_v36 = vpack.c.bf16 %v2006_v22, %v2006_v22  ;;  %v1976_v58 = vpop.permute.xlu1 %1975 }
 0x281   : > { %2429 = vmatmul.bf16.gmra.mxu1 %v2405_v26  ;;  %v2336_v25 = vpack.c.bf16 %v2326_v44, %v2325_v37  ;;  %v2007_v47 = vadd.f32 %v1961_v61, %v1923_v6  ;;  %v1731_v27 = vpop.f32.mrf.mxu2 }
 0x282   : > { %v1732_v45 = vadd.f32 %v1731_v27, %v4593_v46  ;;  %v2038_v34 = vunpack.c.l.bf16 %v2026_v36  ;;  %v2167_v48 = vunpack.c.l.b16 %v2026_v36 }
 0x283   : > { %2354 = vmatmul.bf16.gmra.mxu0 %v2336_v25  ;;  %v1860_v43 = vpop.f32.mrf.mxu0  ;;  %v2303_v0 = vpack.c.bf16 %v2007_v47, %v2007_v47 }
 0x284   : > { %v1770_v50 = vpop.f32.mrf.mxu3  ;;  %v1924_v24 = vadd.f32 %v1857_v29, %v1732_v45  ;;  %v2050_v4 = vsub.f32 %v2006_v22, %v2038_v34 }
 0x285   : > { %v1771_v56 = vadd.f32 %v1770_v50, %v4591_v23  ;;  %v2315_v20 = vunpack.c.l.bf16 %v2303_v0  ;;  %v2396_v1 = vunpack.c.l.b16 %v2303_v0 }
 0x286   : > { %v1899_v32 = vpop.f32.mrf.mxu1  ;;  %v2008_v5 = vadd.f32 %v1966_v18, %v1924_v24 }
 0x287   : > { %v1925_v8 = vadd.f32 %v1896_v13, %v1771_v56  ;;  %v2327_v21 = vsub.f32 %v2007_v47, %v2315_v20 }
 0x288   : > { %v2027_v31 = vpack.c.bf16 %v2008_v5, %v2008_v5 }
 0x289   : > { %v2009_v51 = vadd.f32 %v1966_v18, %v1925_v8  ;;  %v1734_v30 = vpop.f32.mrf.mxu2 }
 0x28a   : > { %v1735_v10 = vadd.f32 %v1734_v30, %v4555_v33  ;;  %v2168_v57 = vunpack.c.l.b16 %v2027_v31  ;;  %v2039_v23 = vunpack.c.l.bf16 %v2027_v31 }
 0x28b   : > { %v2304_v54 = vpack.c.bf16 %v2009_v51, %v2009_v51  ;;  %v1862_v49 = vpop.f32.mrf.mxu0 }
 0x28c   : > { %v1773_v46 = vpop.f32.mrf.mxu3  ;;  %v1926_v53 = vadd.f32 %v1860_v43, %v1735_v10  ;;  %v2177_v35 = vpack.c.b16 %v2168_v57, %v2167_v48  ;;  %v2051_v39 = vsub.f32 %v2008_v5, %v2039_v23 }
 0x28d   : > { %v1774_v12 = vadd.f32 %v1773_v46, %v4557_v7  ;;  %v2397_v42 = vunpack.c.l.b16 %v2304_v54  ;;  %v2316_v3 = vunpack.c.l.bf16 %v2304_v54 }
 0x28e   : > { %v1901_v14 = vpop.f32.mrf.mxu1  ;;  %2205 = vmatmul.bf16.gmra.mxu3 %v2177_v35  ;;  %v2060_v33 = vpack.c.bf16 %v2051_v39, %v2050_v4  ;;  %v2010_v9 = vadd.f32 %v1971_v59, %v1926_v53 }
 0x28f   : > { %v1927_v41 = vadd.f32 %v1899_v32, %v1774_v12  ;;  %v2406_v13 = vpack.c.b16 %v2397_v42, %v2396_v1  ;;  %v2328_v63 = vsub.f32 %v2009_v51, %v2316_v3 }
 0x290   : > { %2130 = vmatmul.bf16.gmra.mxu2 %v2060_v33  ;;  %v2028_v26 = vpack.c.bf16 %v2010_v9, %v2010_v9 }
 0x291   : > { %2434 = vmatmul.bf16.gmra.mxu1 %v2406_v13  ;;  %v2337_v15 = vpack.c.bf16 %v2328_v63, %v2327_v21  ;;  %v2011_v7 = vadd.f32 %v1971_v59, %v1927_v41  ;;  %v1736_v19 = vpop.f32.mrf.mxu2 }
 0x292   : > { %v1737_v16 = vadd.f32 %v1736_v19, %v4562_v52  ;;  %v2040_v45 = vunpack.c.l.bf16 %v2028_v26  ;;  %v2169_v18 = vunpack.c.l.b16 %v2028_v26 }
 0x293   : > { %2359 = vmatmul.bf16.gmra.mxu0 %v2337_v15  ;;  %v1865_v44 = vpop.f32.mrf.mxu0  ;;  %v2305_v61 = vpack.c.bf16 %v2011_v7, %v2011_v7 }
 0x294   : > { %v1775_v29 = vpop.f32.mrf.mxu3  ;;  %v1928_v37 = vadd.f32 %v1862_v49, %v1737_v16  ;;  %v2052_v31 = vsub.f32 %v2010_v9, %v2040_v45  ;;  %v1986_v49 = vpop.permute.xlu0 %1985 }
 0x295   : > { %v1776_v6 = vadd.f32 %v1775_v29, %v4564_v17  ;;  %v2317_v36 = vunpack.c.l.bf16 %v2305_v61  ;;  %v2398_v0 = vunpack.c.l.b16 %v2305_v61 }
 0x296   : > { %v2012_v22 = vadd.f32 %v1976_v58, %v1928_v37  ;;  %v1904_v47 = vpop.f32.mrf.mxu1 }
 0x297   : > { %v1929_v25 = vadd.f32 %v1901_v14, %v1776_v6  ;;  %v2329_v46 = vsub.f32 %v2011_v7, %v2317_v36 }
 0x298   : > { %v2029_v50 = vpack.c.bf16 %v2012_v22, %v2012_v22 }
 0x299   : > { %v2013_v27 = vadd.f32 %v1976_v58, %v1929_v25  ;;  %v1739_v32 = vpop.f32.mrf.mxu2 }
 0x29a   : > { %v2041_v24 = vunpack.c.l.bf16 %v2029_v50  ;;  %v1740_v52 = vadd.f32 %v1739_v32, %v4571_v11  ;;  %v2170_v17 = vunpack.c.l.b16 %v2029_v50  ;;  %v1981_v11 = vpop.permute.xlu2 %1980 }
 0x29b   : > { %v2306_v56 = vpack.c.bf16 %v2013_v27, %v2013_v27  ;;  %v1867_v57 = vpop.f32.mrf.mxu0 }
 0x29c   : > { %v1778_v43 = vpop.f32.mrf.mxu3  ;;  %v2053_v34 = vsub.f32 %v2012_v22, %v2041_v24  ;;  %v1930_v30 = vadd.f32 %v1865_v44, %v1740_v52  ;;  %v2178_v54 = vpack.c.b16 %v2170_v17, %v2169_v18  ;;  %v1991_v24 = vpop.permute.xlu1 %1990 }
 0x29d   : > { %v1779_v8 = vadd.f32 %v1778_v43, %v4573_v38  ;;  %v2399_v5 = vunpack.c.l.b16 %v2306_v56  ;;  %v2318_v51 = vunpack.c.l.bf16 %v2306_v56 }
 0x29e   : > { %2210 = vmatmul.bf16.gmra.mxu3 %v2178_v54  ;;  %v2061_v23 = vpack.c.bf16 %v2053_v34, %v2052_v31  ;;  %v2014_v1 = vadd.f32 %v1981_v11, %v1930_v30  ;;  %v1906_v42 = vpop.f32.mrf.mxu1 }
 0x29f   : > { %v1931_v20 = vadd.f32 %v1904_v47, %v1779_v8  ;;  %v2407_v10 = vpack.c.b16 %v2399_v5, %v2398_v0  ;;  %v2330_v48 = vsub.f32 %v2013_v27, %v2318_v51 }
 0x2a0   : > { %2135 = vmatmul.bf16.gmra.mxu2 %v2061_v23  ;;  %v2030_v4 = vpack.c.bf16 %v2014_v1, %v2014_v1 }
 0x2a1   : > { %2439 = vmatmul.bf16.gmra.mxu1 %v2407_v10  ;;  %v2338_v12 = vpack.c.bf16 %v2330_v48, %v2329_v46  ;;  %v2015_v38 = vadd.f32 %v1981_v11, %v1931_v20  ;;  %v1741_v3 = vpop.f32.mrf.mxu2 }
 0x2a2   : > { %v1742_v53 = vadd.f32 %v1741_v3, %v4579_v60  ;;  %v2042_v59 = vunpack.c.l.bf16 %v2030_v4  ;;  %v2171_v26 = vunpack.c.l.b16 %v2030_v4  ;;  %v1996_v34 = vpop.permute.xlu2 %1995 }
 0x2a3   : > { %2364 = vmatmul.bf16.gmra.mxu0 %v2338_v12  ;;  %v2307_v41 = vpack.c.bf16 %v2015_v38, %v2015_v38  ;;  %v1870_v33 = vpop.f32.mrf.mxu0 }
 0x2a4   : > { %v1780_v14 = vpop.f32.mrf.mxu3  ;;  %v1932_v39 = vadd.f32 %v1867_v57, %v1742_v53  ;;  %v2054_v25 = vsub.f32 %v2014_v1, %v2042_v59 }
 0x2a5   : > { %v1781_v35 = vadd.f32 %v1780_v14, %v4581_v62  ;;  %v2319_v19 = vunpack.c.l.bf16 %v2307_v41  ;;  %v2400_v44 = vunpack.c.l.b16 %v2307_v41 }
 0x2a6   : > { %v2016_v21 = vadd.f32 %v1986_v49, %v1932_v39  ;;  %v1909_v29 = vpop.f32.mrf.mxu1 }
 0x2a7   : > { %v1933_v13 = vadd.f32 %v1906_v42, %v1781_v35  ;;  %v2331_v56 = vsub.f32 %v2015_v38, %v2319_v19 }
 0x2a8   : > { %v2031_v15 = vpack.c.bf16 %v2016_v21, %v2016_v21 }
 0x2a9   : > { %v2017_v63 = vadd.f32 %v1986_v49, %v1933_v13  ;;  %v1744_v7 = vpop.f32.mrf.mxu2 }
 0x2aa   : > { %v2043_v16 = vunpack.c.l.bf16 %v2031_v15  ;;  %v1745_v60 = vadd.f32 %v1744_v7, %v4587_v2  ;;  %v2172_v62 = vunpack.c.l.b16 %v2031_v15 }
 0x2ab   : > { %v2308_v9 = vpack.c.bf16 %v2017_v63, %v2017_v63  ;;  %v1872_v18 = vpop.f32.mrf.mxu0 }
 0x2ac   : > { %v1783_v6 = vpop.f32.mrf.mxu3  ;;  %v2055_v22 = vsub.f32 %v2016_v21, %v2043_v16  ;;  %v1934_v47 = vadd.f32 %v1870_v33, %v1745_v60  ;;  %v2179_v27 = vpack.c.b16 %v2172_v62, %v2171_v26 }
 0x2ad   : > { %v1784_v37 = vadd.f32 %v1783_v6, %v4589_v28  ;;  %v2401_v58 = vunpack.c.l.b16 %v2308_v9  ;;  %v2320_v61 = vunpack.c.l.bf16 %v2308_v9 }
 0x2ae   : > { %2215 = vmatmul.bf16.gmra.mxu3 %v2179_v27  ;;  %v2062_v36 = vpack.c.bf16 %v2055_v22, %v2054_v25  ;;  %v2018_v52 = vadd.f32 %v1991_v24, %v1934_v47  ;;  %v1911_v51 = vpop.f32.mrf.mxu1 }
 0x2af   : > { %v1935_v45 = vadd.f32 %v1909_v29, %v1784_v37  ;;  %v2408_v50 = vpack.c.b16 %v2401_v58, %v2400_v44  ;;  %v2332_v32 = vsub.f32 %v2017_v63, %v2320_v61 }
 0x2b0   : > { %2140 = vmatmul.bf16.gmra.mxu2 %v2062_v36  ;;  %v2032_v5 = vpack.c.bf16 %v2018_v52, %v2018_v52 }
 0x2b1   : > { %2444 = vmatmul.bf16.gmra.mxu1 %v2408_v50  ;;  %v2339_v2 = vpack.c.bf16 %v2332_v32, %v2331_v56  ;;  %v2019_v43 = vadd.f32 %v1991_v24, %v1935_v45  ;;  %v1746_v28 = vpop.f32.mrf.mxu2 }
 0x2b2   : > { %v1747_v17 = vadd.f32 %v1746_v28, %v4598_v40  ;;  %v2044_v46 = vunpack.c.l.bf16 %v2032_v5  ;;  %v2173_v12 = vunpack.c.l.b16 %v2032_v5 }
 0x2b3   : > { %2369 = vmatmul.bf16.gmra.mxu0 %v2339_v2  ;;  %v2309_v30 = vpack.c.bf16 %v2019_v43, %v2019_v43 }
 0x2b4   : > { %v1785_v8 = vpop.f32.mrf.mxu3  ;;  %v1936_v31 = vadd.f32 %v1872_v18, %v1747_v17  ;;  %v2056_v3 = vsub.f32 %v2018_v52, %v2044_v46 }
 0x2b5   : > { %v1786_v0 = vadd.f32 %v1785_v8, %v4600_v55  ;;  %v2321_v23 = vunpack.c.l.bf16 %v2309_v30  ;;  %v2402_v42 = vunpack.c.l.b16 %v2309_v30 }
 0x2b6   : > { %v2020_v20 = vadd.f32 %v1996_v34, %v1936_v31 }
 0x2b7   : > { %v1937_v54 = vadd.f32 %v1911_v51, %v1786_v0  ;;  %v2333_v35 = vsub.f32 %v2019_v43, %v2321_v23 }
 0x2b8   : > { %v2033_v48 = vpack.c.bf16 %v2020_v20, %v2020_v20 }
 0x2b9   : > { %v2021_v10 = vadd.f32 %v1996_v34, %v1937_v54 }
 0x2ba   : > { %v2045_v11 = vunpack.c.l.bf16 %v2033_v48  ;;  %v2174_v1 = vunpack.c.l.b16 %v2033_v48 }
 0x2bb   : > { %v2310_v57 = vpack.c.bf16 %v2021_v10, %v2021_v10 }
 0x2bc   : > { %v2057_v55 = vsub.f32 %v2020_v20, %v2045_v11  ;;  %v2180_v53 = vpack.c.b16 %v2174_v1, %v2173_v12 }
 0x2bd   : > { %v2403_v40 = vunpack.c.l.b16 %v2310_v57  ;;  %v2322_v38 = vunpack.c.l.bf16 %v2310_v57 }
 0x2be   : > { %2220 = vmatmul.bf16.gmra.mxu3 %v2180_v53  ;;  %v2063_v39 = vpack.c.bf16 %v2057_v55, %v2056_v3 }
 0x2bf   : > { %v2409_v14 = vpack.c.b16 %v2403_v40, %v2402_v42  ;;  %v2334_v4 = vsub.f32 %v2021_v10, %v2322_v38 }
 0x2c0   : > { %2145 = vmatmul.bf16.gmra.mxu2 %v2063_v39 }
 0x2c1   : > { %2449 = vmatmul.bf16.gmra.mxu1 %v2409_v14  ;;  %v2340_v49 = vpack.c.bf16 %v2334_v4, %v2333_v35 }
 0x2c3   : > { %2374 = vmatmul.bf16.gmra.mxu0 %v2340_v49 }
 0x2ee   : > { %v2425_v41 = vpop.f32.mrf.mxu1 }
 0x2f0   : > { %v2350_v13 = vpop.f32.mrf.mxu0 }
 0x2f1   : > { %v4621_v21 = vadd.f32 %v2425_v41, %v2350_v13  ;;  %v2196_v63 = vpop.f32.mrf.mxu3 }
 0x2f3   : > { %2467 = vrot.lane.b32.xlu0 %v4621_v21, %s3164_s15  ;;  %v2121_v33 = vpop.f32.mrf.mxu2 }
 0x2f4   : > { %v4625_v9 = vadd.f32 %v2196_v63, %v2121_v33 }
 0x2f6   : > { %v2427_v59 = vpop.f32.mrf.mxu1 }
 0x2f8   : > { %v2352_v15 = vpop.f32.mrf.mxu0 }
 0x2f9   : > { %v4627_v7 = vadd.f32 %v2427_v59, %v2352_v15  ;;  %v2198_v19 = vpop.f32.mrf.mxu3 }
 0x2fb   : > { %2238 = vrot.lane.b32.xlu0 %v4625_v9, %s3164_s15  ;;  %2469 = vrot.lane.b32.xlu1 %v4627_v7, %s3164_s15  ;;  %v2123_v16 = vpop.f32.mrf.mxu2 }
 0x2fc   : > { %v4633_v6 = vadd.f32 %v2198_v19, %v2123_v16 }
 0x2fe   : > { %v2430_v29 = vpop.f32.mrf.mxu1 }
 0x300   : > { %v2355_v60 = vpop.f32.mrf.mxu0 }
 0x301   : > { %v4635_v26 = vadd.f32 %v2430_v29, %v2355_v60  ;;  %v2201_v62 = vpop.f32.mrf.mxu3 }
 0x303   : > { %2240 = vrot.lane.b32.xlu1 %v4633_v6, %s3164_s15  ;;  %2471 = vrot.lane.b32.xlu2 %v4635_v26, %s3164_s15  ;;  %v2126_v37 = vpop.f32.mrf.mxu2 }
 0x304   : > { %v4641_v61 = vadd.f32 %v2201_v62, %v2126_v37 }
 0x306   : > { %v2432_v44 = vpop.f32.mrf.mxu1 }
 0x308   : > { %v2357_v58 = vpop.f32.mrf.mxu0 }
 0x309   : > { %v4643_v25 = vadd.f32 %v2432_v44, %v2357_v58  ;;  %v2203_v22 = vpop.f32.mrf.mxu3 }
 0x30b   : > { %2473 = vrot.lane.b32.xlu0 %v4643_v25, %s3164_s15  ;;  %2242 = vrot.lane.b32.xlu2 %v4641_v61, %s3164_s15  ;;  %v2128_v47 = vpop.f32.mrf.mxu2 }
 0x30c   : > { %v4649_v50 = vadd.f32 %v2203_v22, %v2128_v47 }
 0x30e   : > { %v2435_v27 = vpop.f32.mrf.mxu1 }
 0x310   : > { %v2360_v45 = vpop.f32.mrf.mxu0 }
 0x311   : > { %v4651_v56 = vadd.f32 %v2435_v27, %v2360_v45  ;;  %v2206_v32 = vpop.f32.mrf.mxu3 }
 0x313   : > { %2244 = vrot.lane.b32.xlu0 %v4649_v50, %s3164_s15  ;;  %2475 = vrot.lane.b32.xlu1 %v4651_v56, %s3164_s15  ;;  %v2131_v36 = vpop.f32.mrf.mxu2 }
 0x314   : > { %v4657_v52 = vadd.f32 %v2206_v32, %v2131_v36 }
 0x316   : > { %v2437_v24 = vpop.f32.mrf.mxu1 }
 0x318   : > { %v2362_v2 = vpop.f32.mrf.mxu0 }
 0x319   : > { %v4659_v43 = vadd.f32 %v2437_v24, %v2362_v2  ;;  %v2208_v28 = vpop.f32.mrf.mxu3 }
 0x31b   : > { %2477 = vrot.lane.b32.xlu2 %v4659_v43, %s3164_s15  ;;  %2246 = vrot.lane.b32.xlu1 %v4657_v52, %s3164_s15  ;;  %v2133_v18 = vpop.f32.mrf.mxu2 }
 0x31c   : > { %v4665_v0 = vadd.f32 %v2208_v28, %v2133_v18 }
 0x31e   : > { %v2440_v17 = vpop.f32.mrf.mxu1 }
 0x320   : > { %v2365_v8 = vpop.f32.mrf.mxu0 }
 0x321   : > { %v4667_v5 = vadd.f32 %v2440_v17, %v2365_v8  ;;  %v2211_v51 = vpop.f32.mrf.mxu3 }
 0x323   : > { %2479 = vrot.lane.b32.xlu0 %v4667_v5, %s3164_s15  ;;  %2248 = vrot.lane.b32.xlu2 %v4665_v0, %s3164_s15  ;;  %v2136_v31 = vpop.f32.mrf.mxu2 }
 0x324   : > { %v4673_v54 = vadd.f32 %v2211_v51, %v2136_v31 }
 0x326   : > { %v2442_v34 = vpop.f32.mrf.mxu1 }
 0x328   : > { %v2367_v30 = vpop.f32.mrf.mxu0 }
 0x329   : > { %v4675_v20 = vadd.f32 %v2442_v34, %v2367_v30  ;;  %v2213_v10 = vpop.f32.mrf.mxu3 }
 0x32b   : > { %2481 = vrot.lane.b32.xlu1 %v4675_v20, %s3164_s15  ;;  %2250 = vrot.lane.b32.xlu0 %v4673_v54, %s3164_s15  ;;  %v2138_v46 = vpop.f32.mrf.mxu2 }
 0x32c   : > { %v4681_v23 = vadd.f32 %v2213_v10, %v2138_v46 }
 0x32e   : > { %v2445_v48 = vpop.f32.mrf.mxu1 }
 0x330   : > { %v2370_v57 = vpop.f32.mrf.mxu0 }
 0x331   : > { %v4683_v11 = vadd.f32 %v2445_v48, %v2370_v57  ;;  %v2216_v12 = vpop.f32.mrf.mxu3 }
 0x333   : > { %2252 = vrot.lane.b32.xlu1 %v4681_v23, %s3164_s15  ;;  %2483 = vrot.lane.b32.xlu2 %v4683_v11, %s3164_s15  ;;  %v2141_v1 = vpop.f32.mrf.mxu2 }
 0x334   : > { %v4689_v38 = vadd.f32 %v2216_v12, %v2141_v1 }
 0x336   : > { %v2447_v42 = vpop.f32.mrf.mxu1 }
 0x338   : > { %v2372_v40 = vpop.f32.mrf.mxu0 }
 0x339   : > { %v4691_v3 = vadd.f32 %v2447_v42, %v2372_v40  ;;  %v2218_v55 = vpop.f32.mrf.mxu3 }
 0x33b   : > { %2485 = vrot.lane.b32.xlu0 %v4691_v3, %s3164_s15  ;;  %2254 = vrot.lane.b32.xlu2 %v4689_v38, %s3164_s15  ;;  %v2143_v53 = vpop.f32.mrf.mxu2 }
 0x33c   : > { %v4697_v4 = vadd.f32 %v2218_v55, %v2143_v53 }
 0x33e   : > { %v2450_v14 = vpop.f32.mrf.mxu1 }
 0x340   : > { %v2375_v35 = vpop.f32.mrf.mxu0 }
 0x341   : > { %v4699_v39 = vadd.f32 %v2450_v14, %v2375_v35  ;;  %v2221_v41 = vpop.f32.mrf.mxu3 }
 0x343   : > { %2256 = vrot.lane.b32.xlu0 %v4697_v4, %s3164_s15  ;;  %2487 = vrot.lane.b32.xlu1 %v4699_v39, %s3164_s15  ;;  %v2146_v49 = vpop.f32.mrf.mxu2 }
 0x344   : > { %v4705_v33 = vadd.f32 %v2221_v41, %v2146_v49 }
 0x346   : > { %v2452_v13 = vpop.f32.mrf.mxu1 }
 0x348   : > { %v2377_v63 = vpop.f32.mrf.mxu0 }
 0x349   : > { %v4707_v59 = vadd.f32 %v2452_v13, %v2377_v63  ;;  %v2223_v19 = vpop.f32.mrf.mxu3 }
 0x34b   : > { %2489 = vrot.lane.b32.xlu2 %v4707_v59, %s3164_s15  ;;  %2258 = vrot.lane.b32.xlu1 %v4705_v33, %s3164_s15  ;;  %v2148_v15 = vpop.f32.mrf.mxu2 }
 0x34c   : > { %v4713_v16 = vadd.f32 %v2223_v19, %v2148_v15 }
 0x353   : > { %2260 = vrot.lane.b32.xlu2 %v4713_v16, %s3164_s15 }
 0x35d   : > { %v2472_v29 = vpop.permute.xlu2 %2471 }
 0x35e   : > { %v2505_v60 = vmax.f32 %v4635_v26, %v2472_v29 }
 0x360   : > { %2531 = vrot.lane.b32.xlu2 %v2505_v60, %s3164_s15 }
 0x365   : > { %v2468_v62 = vpop.permute.xlu0 %2467  ;;  %v2243_v37 = vpop.permute.xlu2 %2242 }
 0x366   : > { %v2503_v44 = vmax.f32 %v4621_v21, %v2468_v62  ;;  %v2276_v58 = vmax.f32 %v4641_v61, %v2243_v37 }
 0x368   : > { %2289 = vst.msk [vmem:[%s4722_s20 + $0x10] sm:$0xff] %vm2286_vm9, %v2276_v58  ;;  %2527 = vrot.lane.b32.xlu0 %v2503_v44, %s3164_s15 }
 0x36d   : > { %v2239_v26 = vpop.permute.xlu0 %2238  ;;  %v2470_v22 = vpop.permute.xlu1 %2469 }
 0x36e   : > { %v2274_v47 = vmax.f32 %v4625_v9, %v2239_v26  ;;  %v2504_v27 = vmax.f32 %v4627_v7, %v2470_v22 }
 0x370   : > { %2287 = vst.msk [vmem:[%s4722_s20] sm:$0xff] %vm2286_vm9, %v2274_v47  ;;  %2529 = vrot.lane.b32.xlu1 %v2504_v27, %s3164_s15 }
 0x375   : > { %v2241_v21 = vpop.permute.xlu1 %2240  ;;  %v2478_v61 = vpop.permute.xlu2 %2477 }
 0x376   : > { %v2275_v45 = vmax.f32 %v4633_v6, %v2241_v21  ;;  %v2508_v32 = vmax.f32 %v4659_v43, %v2478_v61 }
 0x378   : > { %2288 = vst.msk [vmem:[%s4722_s20 + $0x8] sm:$0xff] %vm2286_vm9, %v2275_v45  ;;  %2537 = vrot.lane.b32.xlu2 %v2508_v32, %s3164_s15 }
 0x37d   : > { %v2474_v36 = vpop.permute.xlu0 %2473  ;;  %v2249_v9 = vpop.permute.xlu2 %2248 }
 0x37e   : > { %v2506_v7 = vmax.f32 %v4643_v25, %v2474_v36  ;;  %v2279_v24 = vmax.f32 %v4665_v0, %v2249_v9 }
 0x380   : > { %2292 = vst.msk [vmem:[%s4722_s20 + $0x28] sm:$0xff] %vm2286_vm9, %v2279_v24  ;;  %2533 = vrot.lane.b32.xlu0 %v2506_v7, %s3164_s15 }
 0x385   : > { %v2245_v2 = vpop.permute.xlu0 %2244  ;;  %v2476_v6 = vpop.permute.xlu1 %2475 }
 0x386   : > { %v2277_v43 = vmax.f32 %v4649_v50, %v2245_v2  ;;  %v2507_v28 = vmax.f32 %v4651_v56, %v2476_v6 }
 0x388   : > { %2290 = vst.msk [vmem:[%s4722_s20 + $0x18] sm:$0xff] %vm2286_vm9, %v2277_v43  ;;  %2535 = vrot.lane.b32.xlu1 %v2507_v28, %s3164_s15 }
 0x38d   : > { %v2247_v18 = vpop.permute.xlu1 %2246  ;;  %v2484_v25 = vpop.permute.xlu2 %2483 }
 0x38e   : > { %v2278_v17 = vmax.f32 %v4657_v52, %v2247_v18  ;;  %v2511_v8 = vmax.f32 %v4683_v11, %v2484_v25 }
 0x390   : > { %2291 = vst.msk [vmem:[%s4722_s20 + $0x20] sm:$0xff] %vm2286_vm9, %v2278_v17  ;;  %2543 = vrot.lane.b32.xlu2 %v2511_v8, %s3164_s15 }
 0x395   : > { %v2480_v0 = vpop.permute.xlu0 %2479  ;;  %v2255_v50 = vpop.permute.xlu2 %2254 }
 0x396   : > { %v2509_v56 = vmax.f32 %v4667_v5, %v2480_v0  ;;  %v2282_v51 = vmax.f32 %v4689_v38, %v2255_v50 }
 0x398   : > { %2295 = vst.msk [vmem:[%s4722_s20 + $0x40] sm:$0xff] %vm2286_vm9, %v2282_v51  ;;  %2539 = vrot.lane.b32.xlu0 %v2509_v56, %s3164_s15 }
 0x39d   : > { %v2482_v31 = vpop.permute.xlu1 %2481  ;;  %v2251_v52 = vpop.permute.xlu0 %2250 }
 0x39e   : > { %v2510_v34 = vmax.f32 %v4675_v20, %v2482_v31  ;;  %v2280_v30 = vmax.f32 %v4673_v54, %v2251_v52 }
 0x3a0   : > { %2293 = vst.msk [vmem:[%s4722_s20 + $0x30] sm:$0xff] %vm2286_vm9, %v2280_v30  ;;  %2541 = vrot.lane.b32.xlu1 %v2510_v34, %s3164_s15 }
 0x3a5   : > { %v2253_v10 = vpop.permute.xlu1 %2252  ;;  %v2490_v5 = vpop.permute.xlu2 %2489 }
 0x3a6   : > { %v2281_v46 = vmax.f32 %v4681_v23, %v2253_v10  ;;  %v2514_v48 = vmax.f32 %v4707_v59, %v2490_v5 }
 0x3a8   : > { %2294 = vst.msk [vmem:[%s4722_s20 + $0x38] sm:$0xff] %vm2286_vm9, %v2281_v46  ;;  %2549 = vrot.lane.b32.xlu2 %v2514_v48, %s3164_s15 }
 0x3ad   : > { %v2486_v57 = vpop.permute.xlu0 %2485  ;;  %v2261_v20 = vpop.permute.xlu2 %2260 }
 0x3ae   : > { %v2512_v54 = vmax.f32 %v4691_v3, %v2486_v57  ;;  %v2285_v11 = vmax.f32 %v4713_v16, %v2261_v20 }
 0x3b0   : > { %2298 = vst.msk [vmem:[%s4722_s20 + $0x58] sm:$0xff] %vm2286_vm9, %v2285_v11  ;;  %2545 = vrot.lane.b32.xlu0 %v2512_v54, %s3164_s15 }
 0x3b5   : > { %v2257_v23 = vpop.permute.xlu0 %2256  ;;  %v2488_v12 = vpop.permute.xlu1 %2487 }
 0x3b6   : > { %v2283_v1 = vmax.f32 %v4697_v4, %v2257_v23  ;;  %v2513_v42 = vmax.f32 %v4699_v39, %v2488_v12 }
 0x3b8   : > { %2296 = vst.msk [vmem:[%s4722_s20 + $0x48] sm:$0xff] %vm2286_vm9, %v2283_v1  ;;  %2547 = vrot.lane.b32.xlu1 %v2513_v42, %s3164_s15 }
 0x3ba   : > { %v2532_v40 = vpop.permute.xlu2 %2531 }
 0x3bb   : > { %2566 = vst.msk [vmem:[%s4722_s20 + $0x10] sm:$0xff] %vm2563_vm10, %v2532_v40 }
 0x3bd   : > { %v2259_v38 = vpop.permute.xlu1 %2258 }
 0x3be   : > { %v2284_v3 = vmax.f32 %v4705_v33, %v2259_v38 }
 0x3c0   : > { %2297 = vst.msk [vmem:[%s4722_s20 + $0x50] sm:$0xff] %vm2286_vm9, %v2284_v3 }
 0x3d2   : > { %v2538_v55 = vpop.permute.xlu2 %2537 }
 0x3d3   : > { %2569 = vst.msk [vmem:[%s4722_s20 + $0x28] sm:$0xff] %vm2563_vm10, %v2538_v55 }
 0x3da   : > { %v2528_v53 = vpop.permute.xlu0 %2527 }
 0x3db   : > { %2564 = vst.msk [vmem:[%s4722_s20] sm:$0xff] %vm2563_vm10, %v2528_v53 }
 0x3e2   : > { %v2530_v14 = vpop.permute.xlu1 %2529 }
 0x3e3   : > { %2565 = vst.msk [vmem:[%s4722_s20 + $0x8] sm:$0xff] %vm2563_vm10, %v2530_v14 }
 0x3ea   : > { %v2544_v35 = vpop.permute.xlu2 %2543 }
 0x3eb   : > { %2572 = vst.msk [vmem:[%s4722_s20 + $0x40] sm:$0xff] %vm2563_vm10, %v2544_v35 }
 0x3f2   : > { %v2534_v4 = vpop.permute.xlu0 %2533 }
 0x3f3   : > { %2567 = vst.msk [vmem:[%s4722_s20 + $0x18] sm:$0xff] %vm2563_vm10, %v2534_v4 }
 0x3fa   : > { %v2536_v39 = vpop.permute.xlu1 %2535 }
 0x3fb   : > { %2568 = vst.msk [vmem:[%s4722_s20 + $0x20] sm:$0xff] %vm2563_vm10, %v2536_v39 }
 0x402   : > { %v2550_v49 = vpop.permute.xlu2 %2549 }
 0x403   : > { %2575 = vst.msk [vmem:[%s4722_s20 + $0x58] sm:$0xff] %vm2563_vm10, %v2550_v49 }
 0x40a   : > { %v2540_v41 = vpop.permute.xlu0 %2539 }
 0x40b   : > { %2570 = vst.msk [vmem:[%s4722_s20 + $0x30] sm:$0xff] %vm2563_vm10, %v2540_v41 }
 0x412   : > { %v2542_v13 = vpop.permute.xlu1 %2541 }
 0x413   : > { %2571 = vst.msk [vmem:[%s4722_s20 + $0x38] sm:$0xff] %vm2563_vm10, %v2542_v13 }
 0x422   : > { %v2546_v63 = vpop.permute.xlu0 %2545 }
 0x423   : > { %2573 = vst.msk [vmem:[%s4722_s20 + $0x48] sm:$0xff] %vm2563_vm10, %v2546_v63 }
 0x42a   : > { %v2548_v33 = vpop.permute.xlu1 %2547 }
 0x42b   : > { %2574 = vst.msk [vmem:[%s4722_s20 + $0x50] sm:$0xff] %vm2563_vm10, %v2548_v33 }
 0x42c   : > { %3087 = shalt.err (!%p3084_p11)
}
 0x42d   : > { %s3165_s11 = smov 128   ;;  %s3166_s15 = smov 256  }
 0x42e   : > { %s3167_s12 = smov 8  }
 0x42f   : > { %2847 = dma.vmem_to_hbm [thread:$0]  (%p3273_p9), %s2591_s16, 1536, %s2593_s9, %s2577_s23, %s3165_s11, %s3166_s15, %s3167_s12  }
 0x430 PF: > { %s5062_s20 = sld [smem:[#allocation8_spill]]  ;;  %p2858_p13 = scmp.ge.s32.totalorder %s3158_s8, 2 }
 0x432   : > { %p2854_p0 = pnand %p2858_p13, %p3279_p12 }
 0x434   : > { %p2855_p1 = pneg %p2854_p0 }
 0x436   : > { %s2607_s26 = sand.u32 1, %s5062_s20  }
 0x437   : > { %s2608_s29 = scalar_lea.sflag [#allocation4], %s2607_s26 }
 0x438   : > { %3125 = dma.done.wait (%p2855_p1), %s2608_s29, 1536  }
 0x439   : > { %3127 = vsyncadd (%p2855_p1), %s2608_s29, 4294965760  ;;  %s23_s8 = sadd.s32 1, %s3158_s8   ;;  %s5064_s30 = sld [smem:[#allocation9_spill]] }
 0x43a   : > { %p20_p2 = scmp.ge.s32.totalorder %s23_s8, 6   ;;  %s5065_s26 = sld [smem:[#allocation15_spill]] }
 0x43b   : > { %s5066_s27 = sld [smem:[#allocation10_spill]]  ;;  %s5070_s24 = smov %s3134_s25 }
 0x43c   : > { %s5067_s28 = sld [smem:[#allocation11_spill]] }
 0x43d   : > { %s5068_s29 = sld [smem:[#allocation12_spill]] }
 0x43e   : > { %s5069_s17 = sld [smem:[#allocation13_spill]] }
 0x43f   : > { %s5071_s25 = smov %s5064_s30 }
 0x440   :  { %22 = sbr.rel (!%p20_p2) target bundleno = 7 (0x7), region = 93 }
 0x444   : > { %s5072_s30 = smov %s5069_s17 }
 0x445   :  { %2614 = vsyncpa [#allocation3], 1 }
 0x446   :  { %2616 = vsyncpa [#allocation3 + $0x1], 1 }
 0x447   :  { %2617 = vsyncpa [#allocation4], 1 }
 0x448   :  { %2619 = vsyncpa [#allocation4 + $0x1], 1 }

</bundles_post_ra>
